<compile_context>
chip_gen: v7x
topology: tpu7x:2x2x1
jax: 0.10.0
libtpu: 0.0.40
codegen_flags: <defaults>
</compile_context>

<pallas_src>
import math
import functools

import jax
import jax.numpy as jnp
from jax import lax
from jax.experimental import pallas as pl
from jax.experimental.pallas import tpu as pltpu

F32 = jnp.float32
EPS = 1e-6  # matches nn.LayerNorm(d_model, eps=1e-06) in the reference


# ------------------------------ in-kernel helpers ----------------------------

def _layernorm(x, g, b, eps):
    mu = jnp.mean(x, axis=-1, keepdims=True)
    var = jnp.mean(jnp.square(x - mu), axis=-1, keepdims=True)
    return (x - mu) * lax.rsqrt(var + eps) * g + b


def _softmax_lastdim(s):
    s = s - jnp.max(s, axis=-1, keepdims=True)
    p = jnp.exp(s)
    return p * pl.reciprocal(jnp.sum(p, axis=-1, keepdims=True), approx=True)


def _mha(q, k, v, mask2d, wfc, n_head, d_k, d_v):
    """Multi-head attention on packed (L, n_head*d) activations.

    Scores/softmax/context are per-head (static unroll; data stays in
    vregs/VMEM).  The output projection is a single concat(o_h) @ W_fc matmul
    (contraction K = n_head*d_v).  1/sqrt(d_k) is pre-folded into W_q.
    """
    heads = []
    for h in range(n_head):
        qh = q[:, h * d_k:(h + 1) * d_k]
        kh = k[:, h * d_k:(h + 1) * d_k]
        vh = v[:, h * d_v:(h + 1) * d_v]
        s = lax.dot_general(qh, kh, (((1,), (1,)), ((), ())),
                            preferred_element_type=F32)
        if mask2d is not None:
            s = jnp.where(mask2d, s, -1e9)          # masked_fill(mask == 0, -1e9)
        p = _softmax_lastdim(s)
        heads.append(jnp.dot(p, vh, preferred_element_type=F32))
    o = jnp.concatenate(heads, axis=-1)             # (Lq, n_head*d_v)
    return jnp.dot(o, wfc, preferred_element_type=F32)


def _self_attn_sublayer(x, wqkv, wfc, ln, mask2d, n_head, d_k, d_v, eps):
    hk = n_head * d_k
    qkv = jnp.dot(x, wqkv, preferred_element_type=F32)        # fused QKV proj
    y = _mha(qkv[:, :hk], qkv[:, hk:2 * hk], qkv[:, 2 * hk:],
             mask2d, wfc, n_head, d_k, d_v)
    return _layernorm(y + x, ln[0:1, :], ln[1:2, :], eps)     # residual + LN


def _cross_attn_sublayer(x, enc, wq, wkv, wfc, ln, n_head, d_k, d_v, eps):
    hk = n_head * d_k
    q = jnp.dot(x, wq, preferred_element_type=F32)
    kv = jnp.dot(enc, wkv, preferred_element_type=F32)        # fused KV proj
    y = _mha(q, kv[:, :hk], kv[:, hk:], None, wfc, n_head, d_k, d_v)
    return _layernorm(y + x, ln[0:1, :], ln[1:2, :], eps)


def _ffn_sublayer(x, w1, b1, w2, b2, ln, eps):
    h = jnp.maximum(jnp.dot(x, w1, preferred_element_type=F32) + b1, 0.0)
    y = jnp.dot(h, w2, preferred_element_type=F32) + b2
    return _layernorm(y + x, ln[0:1, :], ln[1:2, :], eps)


# ------------------------------- fused kernel --------------------------------

def _transformer_kernel(inp_ref, idsl_ref, idss_ref, pe_ref,
                        semb_ref, eeln_ref,
                        e_wqkv_ref, e_fc_ref, e_aln_ref,
                        e_w1_ref, e_b1_ref, e_w2_ref, e_b2_ref, e_fln_ref,
                        demb_ref, deln_ref,
                        d_wqkv_ref, d_sfc_ref, d_sln_ref,
                        d_wq_ref, d_wkv_ref, d_cfc_ref, d_cln_ref,
                        d_w1_ref, d_b1_ref, d_w2_ref, d_b2_ref, d_fln_ref,
                        prj_ref, out_ref,
                        *, n_layers, n_head, d_k, d_v, eps, pad_idx, emb_scale):
    L_src, dff = inp_ref.shape[1], inp_ref.shape[2]
    L_trg = idsl_ref.shape[2]
    dm = semb_ref.shape[1]
    V = demb_ref.shape[0]
    Vp = prj_ref.shape[1]

    pe = pe_ref[...].reshape(1, dm)       # pe[b] added to every position (quirk)

    # ------------------------------ encoder ------------------------------
    x = jnp.dot(inp_ref[...].reshape(L_src, dff), semb_ref[...],
                preferred_element_type=F32) + pe                # src_word_emb
    x = _layernorm(x, eeln_ref[0:1, :], eeln_ref[1:2, :], eps)
    for l in range(n_layers):
        x = _self_attn_sublayer(x, e_wqkv_ref[l], e_fc_ref[l], e_aln_ref[l],
                                None, n_head, d_k, d_v, eps)    # src_mask=None
        x = _ffn_sublayer(x, e_w1_ref[l], e_b1_ref[l], e_w2_ref[l],
                          e_b2_ref[l], e_fln_ref[l], eps)
    enc = x

    # --------------------------- decoder embed ---------------------------
    # Embedding lookup as one-hot @ table (MXU) instead of serialized row copies.
    ids_sub = idss_ref[...].reshape(L_trg, 1)                   # tokens on sublanes
    onehot = (lax.broadcasted_iota(jnp.int32, (L_trg, V), 1) == ids_sub).astype(F32)
    y = jnp.dot(onehot, demb_ref[...], preferred_element_type=F32) * emb_scale + pe
    y = _layernorm(y, deln_ref[0:1, :], deln_ref[1:2, :], eps)

    # pad & causal mask built in-register (keys along lanes)
    ids_lane = idsl_ref[...].reshape(1, L_trg)
    rows = lax.broadcasted_iota(jnp.int32, (L_trg, L_trg), 0)
    cols = lax.broadcasted_iota(jnp.int32, (L_trg, L_trg), 1)
    mask2d = jnp.logical_and(ids_lane != pad_idx, cols <= rows)

    # --------------------------- decoder layers --------------------------
    for l in range(n_layers):
        y = _self_attn_sublayer(y, d_wqkv_ref[l], d_sfc_ref[l], d_sln_ref[l],
                                mask2d, n_head, d_k, d_v, eps)
        y = _cross_attn_sublayer(y, enc, d_wq_ref[l], d_wkv_ref[l],
                                 d_cfc_ref[l], d_cln_ref[l],
                                 n_head, d_k, d_v, eps)         # dec_enc mask None
        y = _ffn_sublayer(y, d_w1_ref[l], d_b1_ref[l], d_w2_ref[l],
                          d_b2_ref[l], d_fln_ref[l], eps)

    # ---------------- vocab projection (lane-dense, V padded) ------------
    out_ref[...] = jnp.dot(y, prj_ref[...],
                           preferred_element_type=F32).reshape(1, L_trg, Vp)


# --------------------------------- wrapper ------------------------------------

_WEIGHT_ORDER = ('src_word_emb', 'enc_emb_ln',
                 'e_wqkv', 'e_attn_fc', 'e_attn_ln',
                 'e_w1', 'e_b1', 'e_w2', 'e_b2', 'e_ffn_ln',
                 'dec_emb', 'dec_emb_ln',
                 'd_wqkv', 'd_slf_fc', 'd_slf_ln',
                 'd_wq', 'd_wkv', 'd_enc_fc', 'd_enc_ln',
                 'd_w1', 'd_b1', 'd_w2', 'd_b2', 'd_ffn_ln',
                 'prj')


def _resident(a):
    """Full-array block with a constant block index -> DMA'd once, stays in VMEM."""
    nd = a.ndim
    return pl.BlockSpec(a.shape, lambda b: (0,) * nd)


def transformer_forward(inp, trg_seq, params, cfg):
    B, L_src, dff = inp.shape
    L_trg = trg_seq.shape[1]
    dm, V = cfg['d_model'], cfg['n_trg_vocab']
    Vp = params['prj'].shape[1]

    ids = trg_seq.astype(jnp.int32)
    ids_lane = ids.reshape(B, 1, L_trg)     # keys along lanes (mask build)
    ids_sub = ids.reshape(B, L_trg, 1)      # tokens along sublanes (one-hot embed)
    pe_b = params['pe'][:B]                 # (B, 1, dm): reference pe[:x.size(0)] quirk

    weights = [params[k] for k in _WEIGHT_ORDER]

    in_specs = ([pl.BlockSpec((1, L_src, dff), lambda b: (b, 0, 0)),
                 pl.BlockSpec((1, 1, L_trg), lambda b: (b, 0, 0)),
                 pl.BlockSpec((1, L_trg, 1), lambda b: (b, 0, 0)),
                 pl.BlockSpec((1, 1, dm), lambda b: (b, 0, 0))]
                + [_resident(w) for w in weights])

    kernel = functools.partial(
        _transformer_kernel,
        n_layers=cfg['n_layers'], n_head=cfg['n_head'],
        d_k=cfg['d_k'], d_v=cfg['d_v'], eps=EPS,
        pad_idx=cfg['trg_pad_idx'], emb_scale=float(dm) ** 0.5)

    out_pad = pl.pallas_call(
        kernel,
        out_shape=jax.ShapeDtypeStruct((B, L_trg, Vp), F32),
        grid=(B,),
        in_specs=in_specs,
        out_specs=pl.BlockSpec((1, L_trg, Vp), lambda b: (b, 0, 0)),
        compiler_params=pltpu.CompilerParams(dimension_semantics=("parallel",)),
    )(inp, ids_lane, ids_sub, pe_b, *weights)

    return out_pad[..., :V]    # strip lane padding (store inside was lane-dense)


# ------------------------------- parameter init ------------------------------

def _xavier_uniform(key, shape):
    bound = math.sqrt(6.0 / (shape[0] + shape[1]))
    return jax.random.uniform(key, shape, F32, -bound, bound)


def _bias(key, fan_in, n):
    bound = 1.0 / math.sqrt(fan_in)
    return jax.random.uniform(key, (1, n), F32, -bound, bound)


def _positional_encoding(max_len, d_model):
    position = jnp.arange(max_len, dtype=F32)[:, None]
    div_term = jnp.exp(jnp.arange(0.0, d_model, 2.0) * (-math.log(10000.0) / d_model))
    pe = jnp.zeros((max_len, d_model), F32)
    pe = pe.at[:, 0::2].set(jnp.sin(position * div_term))
    pe = pe.at[:, 1::2].set(jnp.cos(position * div_term))
    return pe[:, None, :]                                   # (max_len, 1, d_model)


def init_params(key, cfg, max_len=64):
    dm, dff = cfg['d_model'], cfg['dff']
    H, dk, dv = cfg['n_head'], cfg['d_k'], cfg['d_v']
    nl, V = cfg['n_layers'], cfg['n_trg_vocab']
    Vp = ((V + 127) // 128) * 128            # lane-dense vocab padding (50 -> 128)

    k_semb, k_enc, k_emb, k_dec, k_prj = jax.random.split(key, 5)

    ln2 = jnp.concatenate([jnp.ones((1, dm), F32), jnp.zeros((1, dm), F32)], 0)

    def self_attn_w(k):
        k0, k1, k2, k3 = jax.random.split(k, 4)
        # 1/sqrt(d_k) folded into W_q (trace-time weight transform; scores are
        # identical to (q @ k^T) / sqrt(d_k)).
        wq = _xavier_uniform(k0, (dm, H * dk)) * (1.0 / math.sqrt(dk))
        wk = _xavier_uniform(k1, (dm, H * dk))
        wv = _xavier_uniform(k2, (dm, H * dv))
        return (jnp.concatenate([wq, wk, wv], axis=1),
                _xavier_uniform(k3, (H * dv, dm)))

    def cross_attn_w(k):
        k0, k1, k2, k3 = jax.random.split(k, 4)
        wq = _xavier_uniform(k0, (dm, H * dk)) * (1.0 / math.sqrt(dk))
        wk = _xavier_uniform(k1, (dm, H * dk))
        wv = _xavier_uniform(k2, (dm, H * dv))
        return wq, jnp.concatenate([wk, wv], axis=1), _xavier_uniform(k3, (H * dv, dm))

    def ffn_w(k):
        k0, k1, k2, k3 = jax.random.split(k, 4)
        return (_xavier_uniform(k0, (dm, dff)), _bias(k1, dm, dff),
                _xavier_uniform(k2, (dff, dm)), _bias(k3, dff, dm))

    # encoder layers (stacked on leading layer axis)
    e_wqkv, e_fc, e_w1, e_b1, e_w2, e_b2 = [], [], [], [], [], []
    for kl in jax.random.split(k_enc, nl):
        ka, kf = jax.random.split(kl)
        wqkv, fc = self_attn_w(ka)
        w1, b1, w2, b2 = ffn_w(kf)
        e_wqkv.append(wqkv); e_fc.append(fc)
        e_w1.append(w1); e_b1.append(b1); e_w2.append(w2); e_b2.append(b2)

    # decoder layers
    d_wqkv, d_sfc, d_wq, d_wkv, d_cfc = [], [], [], [], []
    d_w1, d_b1, d_w2, d_b2 = [], [], [], []
    for kl in jax.random.split(k_dec, nl):
        ka, kb, kf = jax.random.split(kl, 3)
        wqkv, sfc = self_attn_w(ka)
        wq, wkv, cfc = cross_attn_w(kb)
        w1, b1, w2, b2 = ffn_w(kf)
        d_wqkv.append(wqkv); d_sfc.append(sfc)
        d_wq.append(wq); d_wkv.append(wkv); d_cfc.append(cfc)
        d_w1.append(w1); d_b1.append(b1); d_w2.append(w2); d_b2.append(b2)

    ln_stack = jnp.stack([ln2] * nl)

    # vocab projection zero-padded to Vp lanes; pad sliced off outside kernel.
    prj = jnp.zeros((dm, Vp), F32).at[:, :V].set(_xavier_uniform(k_prj, (dm, V)))

    return {
        'src_word_emb': _xavier_uniform(k_semb, (dff, dm)),
        'enc_emb_ln': ln2,
        'e_wqkv': jnp.stack(e_wqkv), 'e_attn_fc': jnp.stack(e_fc),
        'e_attn_ln': ln_stack,
        'e_w1': jnp.stack(e_w1), 'e_b1': jnp.stack(e_b1),
        'e_w2': jnp.stack(e_w2), 'e_b2': jnp.stack(e_b2),
        'e_ffn_ln': ln_stack,
        # Reference init_weights xavier-overrides every >1-dim parameter (also
        # overwriting nn.Embedding's zeroed padding row) -> plain xavier here.
        'dec_emb': _xavier_uniform(k_emb, (V, dm)),
        'dec_emb_ln': ln2,
        'd_wqkv': jnp.stack(d_wqkv), 'd_slf_fc': jnp.stack(d_sfc),
        'd_slf_ln': ln_stack,
        'd_wq': jnp.stack(d_wq), 'd_wkv': jnp.stack(d_wkv),
        'd_enc_fc': jnp.stack(d_cfc), 'd_enc_ln': ln_stack,
        'd_w1': jnp.stack(d_w1), 'd_b1': jnp.stack(d_b1),
        'd_w2': jnp.stack(d_w2), 'd_b2': jnp.stack(d_b2),
        'd_ffn_ln': ln_stack,
        'prj': prj,
        'pe': _positional_encoding(max_len, dm),   # same values used by enc & dec
    }


# ------------------------------------ main ------------------------------------

if __name__ == "__main__":
    cfg = dict(n_trg_vocab=50, trg_pad_idx=0, d_model=32, dff=64,
               n_layers=2, n_head=4, d_k=8, d_v=8)

    B, L_src, L_trg = 2, 8, 8

    key = jax.random.PRNGKey(0)
    k_p, k_x, k_t = jax.random.split(key, 3)

    params = init_params(k_p, cfg)
    inp = jax.random.normal(k_x, (B, L_src, cfg['dff']), F32)
    trg_seq = jax.random.randint(k_t, (B, L_trg), 0, cfg['n_trg_vocab'], jnp.int32)

    fwd = jax.jit(functools.partial(transformer_forward, cfg=cfg))
    out = jax.block_until_ready(fwd(inp, trg_seq, params))

    assert out.shape == (B, L_trg, cfg['n_trg_vocab'])
    assert bool(jnp.all(jnp.isfinite(out)))
    print("KERNEL_OK")
</pallas_src>

<mosaic_0001>
module attributes {stable_mosaic.version = 11 : i64} {
  func.func @_transformer_kernel(%arg0: i32, %arg1: memref<1x8x64xf32, #tpu.memory_space<vmem>>, %arg2: memref<1x1x8xi32, #tpu.memory_space<vmem>>, %arg3: memref<1x8x1xi32, #tpu.memory_space<vmem>>, %arg4: memref<1x1x32xf32, #tpu.memory_space<vmem>>, %arg5: memref<64x32xf32, #tpu.memory_space<vmem>>, %arg6: memref<2x32xf32, #tpu.memory_space<vmem>>, %arg7: memref<2x32x96xf32, #tpu.memory_space<vmem>>, %arg8: memref<2x32x32xf32, #tpu.memory_space<vmem>>, %arg9: memref<2x2x32xf32, #tpu.memory_space<vmem>>, %arg10: memref<2x32x64xf32, #tpu.memory_space<vmem>>, %arg11: memref<2x1x64xf32, #tpu.memory_space<vmem>>, %arg12: memref<2x64x32xf32, #tpu.memory_space<vmem>>, %arg13: memref<2x1x32xf32, #tpu.memory_space<vmem>>, %arg14: memref<2x2x32xf32, #tpu.memory_space<vmem>>, %arg15: memref<50x32xf32, #tpu.memory_space<vmem>>, %arg16: memref<2x32xf32, #tpu.memory_space<vmem>>, %arg17: memref<2x32x96xf32, #tpu.memory_space<vmem>>, %arg18: memref<2x32x32xf32, #tpu.memory_space<vmem>>, %arg19: memref<2x2x32xf32, #tpu.memory_space<vmem>>, %arg20: memref<2x32x32xf32, #tpu.memory_space<vmem>>, %arg21: memref<2x32x64xf32, #tpu.memory_space<vmem>>, %arg22: memref<2x32x32xf32, #tpu.memory_space<vmem>>, %arg23: memref<2x2x32xf32, #tpu.memory_space<vmem>>, %arg24: memref<2x32x64xf32, #tpu.memory_space<vmem>>, %arg25: memref<2x1x64xf32, #tpu.memory_space<vmem>>, %arg26: memref<2x64x32xf32, #tpu.memory_space<vmem>>, %arg27: memref<2x1x32xf32, #tpu.memory_space<vmem>>, %arg28: memref<2x2x32xf32, #tpu.memory_space<vmem>>, %arg29: memref<32x128xf32, #tpu.memory_space<vmem>>, %arg30: memref<1x8x128xf32, #tpu.memory_space<vmem>>) attributes {dimension_semantics = [#tpu.dimension_semantics<parallel>], iteration_bounds = array<i64: 2>, scalar_prefetch = 0 : i64, scratch_operands = 0 : i64, tpu.core_type = #tpu.core_type<tc>, window_params = [{transform_indices = @transform_0, window_bounds = array<i64: 1, 8, 64>}, {transform_indices = @transform_1, window_bounds = array<i64: 1, 1, 8>}, {transform_indices = @transform_2, window_bounds = array<i64: 1, 8, 1>}, {transform_indices = @transform_3, window_bounds = array<i64: 1, 1, 32>}, {pipeline_mode = #tpu.pipeline_mode<synchronous>, transform_indices = @transform_4, window_bounds = array<i64: 64, 32>}, {pipeline_mode = #tpu.pipeline_mode<synchronous>, transform_indices = @transform_5, window_bounds = array<i64: 2, 32>}, {pipeline_mode = #tpu.pipeline_mode<synchronous>, transform_indices = @transform_6, window_bounds = array<i64: 2, 32, 96>}, {pipeline_mode = #tpu.pipeline_mode<synchronous>, transform_indices = @transform_7, window_bounds = array<i64: 2, 32, 32>}, {pipeline_mode = #tpu.pipeline_mode<synchronous>, transform_indices = @transform_8, window_bounds = array<i64: 2, 2, 32>}, {pipeline_mode = #tpu.pipeline_mode<synchronous>, transform_indices = @transform_9, window_bounds = array<i64: 2, 32, 64>}, {pipeline_mode = #tpu.pipeline_mode<synchronous>, transform_indices = @transform_10, window_bounds = array<i64: 2, 1, 64>}, {pipeline_mode = #tpu.pipeline_mode<synchronous>, transform_indices = @transform_11, window_bounds = array<i64: 2, 64, 32>}, {pipeline_mode = #tpu.pipeline_mode<synchronous>, transform_indices = @transform_12, window_bounds = array<i64: 2, 1, 32>}, {pipeline_mode = #tpu.pipeline_mode<synchronous>, transform_indices = @transform_13, window_bounds = array<i64: 2, 2, 32>}, {pipeline_mode = #tpu.pipeline_mode<synchronous>, transform_indices = @transform_14, window_bounds = array<i64: 50, 32>}, {pipeline_mode = #tpu.pipeline_mode<synchronous>, transform_indices = @transform_15, window_bounds = array<i64: 2, 32>}, {pipeline_mode = #tpu.pipeline_mode<synchronous>, transform_indices = @transform_16, window_bounds = array<i64: 2, 32, 96>}, {pipeline_mode = #tpu.pipeline_mode<synchronous>, transform_indices = @transform_17, window_bounds = array<i64: 2, 32, 32>}, {pipeline_mode = #tpu.pipeline_mode<synchronous>, transform_indices = @transform_18, window_bounds = array<i64: 2, 2, 32>}, {pipeline_mode = #tpu.pipeline_mode<synchronous>, transform_indices = @transform_19, window_bounds = array<i64: 2, 32, 32>}, {pipeline_mode = #tpu.pipeline_mode<synchronous>, transform_indices = @transform_20, window_bounds = array<i64: 2, 32, 64>}, {pipeline_mode = #tpu.pipeline_mode<synchronous>, transform_indices = @transform_21, window_bounds = array<i64: 2, 32, 32>}, {pipeline_mode = #tpu.pipeline_mode<synchronous>, transform_indices = @transform_22, window_bounds = array<i64: 2, 2, 32>}, {pipeline_mode = #tpu.pipeline_mode<synchronous>, transform_indices = @transform_23, window_bounds = array<i64: 2, 32, 64>}, {pipeline_mode = #tpu.pipeline_mode<synchronous>, transform_indices = @transform_24, window_bounds = array<i64: 2, 1, 64>}, {pipeline_mode = #tpu.pipeline_mode<synchronous>, transform_indices = @transform_25, window_bounds = array<i64: 2, 64, 32>}, {pipeline_mode = #tpu.pipeline_mode<synchronous>, transform_indices = @transform_26, window_bounds = array<i64: 2, 1, 32>}, {pipeline_mode = #tpu.pipeline_mode<synchronous>, transform_indices = @transform_27, window_bounds = array<i64: 2, 2, 32>}, {pipeline_mode = #tpu.pipeline_mode<synchronous>, transform_indices = @transform_28, window_bounds = array<i64: 32, 128>}, {transform_indices = @transform_29, window_bounds = array<i64: 1, 8, 128>}]} {
    %c0 = arith.constant 0 : index
    %c0_0 = arith.constant 0 : index
    %c0_1 = arith.constant 0 : index
    %0 = vector.load %arg4[%c0, %c0_0, %c0_1] : memref<1x1x32xf32, #tpu.memory_space<vmem>>, vector<1x1x32xf32>
    %1 = vector.shape_cast %0 : vector<1x1x32xf32> to vector<1x32xf32>
    %c0_2 = arith.constant 0 : index
    %c0_3 = arith.constant 0 : index
    %c0_4 = arith.constant 0 : index
    %2 = vector.load %arg1[%c0_2, %c0_3, %c0_4] : memref<1x8x64xf32, #tpu.memory_space<vmem>>, vector<1x8x64xf32>
    %3 = vector.shape_cast %2 : vector<1x8x64xf32> to vector<8x64xf32>
    %c0_5 = arith.constant 0 : index
    %c0_6 = arith.constant 0 : index
    %4 = vector.load %arg5[%c0_5, %c0_6] : memref<64x32xf32, #tpu.memory_space<vmem>>, vector<64x32xf32>
    %cst = arith.constant dense<0.000000e+00> : vector<8x32xf32>
    %5 = tpu.matmul %3, %4, %cst {dimension_numbers = #tpu.dot_dimension_numbers<[1], [0], [0], [1], [0, 0, 1, 1], [], []>} : vector<8x64xf32>, vector<64x32xf32>, vector<8x32xf32> -> vector<8x32xf32>
    %6 = vector.broadcast %1 : vector<1x32xf32> to vector<8x32xf32>
    %7 = arith.addf %5, %6 : vector<8x32xf32>
    %c0_7 = arith.constant 0 : index
    %c0_8 = arith.constant 0 : index
    %8 = vector.load %arg6[%c0_7, %c0_8] : memref<2x32xf32, #tpu.memory_space<vmem>>, vector<1x32xf32>
    %c1 = arith.constant 1 : index
    %c0_9 = arith.constant 0 : index
    %9 = vector.load %arg6[%c1, %c0_9] : memref<2x32xf32, #tpu.memory_space<vmem>>, vector<1x32xf32>
    %cst_10 = arith.constant dense<0.000000e+00> : vector<8xf32>
    %10 = vector.multi_reduction <add>, %7, %cst_10 [1] : vector<8x32xf32> to vector<8xf32>
    %11 = vector.shape_cast %10 : vector<8xf32> to vector<8x1xf32>
    %cst_11 = arith.constant 3.200000e+01 : f32
    %12 = vector.broadcast %cst_11 : f32 to vector<8x1xf32>
    %13 = arith.divf %11, %12 : vector<8x1xf32>
    %14 = vector.broadcast %13 : vector<8x1xf32> to vector<8x32xf32>
    %15 = arith.subf %7, %14 : vector<8x32xf32>
    %16 = arith.mulf %15, %15 : vector<8x32xf32>
    %cst_12 = arith.constant dense<0.000000e+00> : vector<8xf32>
    %17 = vector.multi_reduction <add>, %16, %cst_12 [1] : vector<8x32xf32> to vector<8xf32>
    %18 = vector.shape_cast %17 : vector<8xf32> to vector<8x1xf32>
    %cst_13 = arith.constant 3.200000e+01 : f32
    %19 = vector.broadcast %cst_13 : f32 to vector<8x1xf32>
    %20 = arith.divf %18, %19 : vector<8x1xf32>
    %21 = vector.broadcast %13 : vector<8x1xf32> to vector<8x32xf32>
    %22 = arith.subf %7, %21 : vector<8x32xf32>
    %cst_14 = arith.constant 9.99999997E-7 : f32
    %23 = vector.broadcast %cst_14 : f32 to vector<8x1xf32>
    %24 = arith.addf %20, %23 : vector<8x1xf32>
    %25 = math.rsqrt %24 : vector<8x1xf32>
    %26 = vector.broadcast %25 : vector<8x1xf32> to vector<8x32xf32>
    %27 = arith.mulf %22, %26 : vector<8x32xf32>
    %28 = vector.broadcast %8 : vector<1x32xf32> to vector<8x32xf32>
    %29 = arith.mulf %27, %28 : vector<8x32xf32>
    %30 = vector.broadcast %9 : vector<1x32xf32> to vector<8x32xf32>
    %31 = arith.addf %29, %30 : vector<8x32xf32>
    %c0_15 = arith.constant 0 : index
    %c0_16 = arith.constant 0 : index
    %c0_17 = arith.constant 0 : index
    %32 = vector.load %arg7[%c0_15, %c0_16, %c0_17] : memref<2x32x96xf32, #tpu.memory_space<vmem>>, vector<1x32x96xf32>
    %33 = vector.shape_cast %32 : vector<1x32x96xf32> to vector<32x96xf32>
    %c0_18 = arith.constant 0 : index
    %c0_19 = arith.constant 0 : index
    %c0_20 = arith.constant 0 : index
    %34 = vector.load %arg8[%c0_18, %c0_19, %c0_20] : memref<2x32x32xf32, #tpu.memory_space<vmem>>, vector<1x32x32xf32>
    %35 = vector.shape_cast %34 : vector<1x32x32xf32> to vector<32x32xf32>
    %c0_21 = arith.constant 0 : index
    %c0_22 = arith.constant 0 : index
    %c0_23 = arith.constant 0 : index
    %36 = vector.load %arg9[%c0_21, %c0_22, %c0_23] : memref<2x2x32xf32, #tpu.memory_space<vmem>>, vector<1x2x32xf32>
    %37 = vector.shape_cast %36 : vector<1x2x32xf32> to vector<2x32xf32>
    %cst_24 = arith.constant dense<0.000000e+00> : vector<8x96xf32>
    %38 = tpu.matmul %31, %33, %cst_24 {dimension_numbers = #tpu.dot_dimension_numbers<[1], [0], [0], [1], [0, 0, 1, 1], [], []>} : vector<8x32xf32>, vector<32x96xf32>, vector<8x96xf32> -> vector<8x96xf32>
    %39 = vector.extract_strided_slice %38 {offsets = [0, 0], sizes = [8, 32], strides = [1, 1]} : vector<8x96xf32> to vector<8x32xf32>
    %40 = vector.extract_strided_slice %38 {offsets = [0, 32], sizes = [8, 32], strides = [1, 1]} : vector<8x96xf32> to vector<8x32xf32>
    %41 = vector.extract_strided_slice %38 {offsets = [0, 64], sizes = [8, 32], strides = [1, 1]} : vector<8x96xf32> to vector<8x32xf32>
    %42 = vector.extract_strided_slice %39 {offsets = [0, 0], sizes = [8, 8], strides = [1, 1]} : vector<8x32xf32> to vector<8x8xf32>
    %43 = vector.extract_strided_slice %40 {offsets = [0, 0], sizes = [8, 8], strides = [1, 1]} : vector<8x32xf32> to vector<8x8xf32>
    %44 = vector.extract_strided_slice %41 {offsets = [0, 0], sizes = [8, 8], strides = [1, 1]} : vector<8x32xf32> to vector<8x8xf32>
    %cst_25 = arith.constant dense<0.000000e+00> : vector<8x8xf32>
    %45 = tpu.matmul %42, %43, %cst_25 {dimension_numbers = #tpu.dot_dimension_numbers<[1], [1], [0], [0], [0, 0, 1, 0], [], []>} : vector<8x8xf32>, vector<8x8xf32>, vector<8x8xf32> -> vector<8x8xf32>
    %cst_26 = arith.constant dense<0xFF800000> : vector<8xf32>
    %46 = vector.multi_reduction <maximumf>, %45, %cst_26 [1] : vector<8x8xf32> to vector<8xf32>
    %47 = vector.shape_cast %46 : vector<8xf32> to vector<8x1xf32>
    %48 = vector.broadcast %47 : vector<8x1xf32> to vector<8x8xf32>
    %49 = arith.subf %45, %48 : vector<8x8xf32>
    %50 = math.exp %49 : vector<8x8xf32>
    %cst_27 = arith.constant dense<0.000000e+00> : vector<8xf32>
    %51 = vector.multi_reduction <add>, %50, %cst_27 [1] : vector<8x8xf32> to vector<8xf32>
    %52 = vector.shape_cast %51 : vector<8xf32> to vector<8x1xf32>
    %53 = tpu.reciprocal %52 {approx = true} : vector<8x1xf32> -> vector<8x1xf32>
    %54 = vector.broadcast %53 : vector<8x1xf32> to vector<8x8xf32>
    %55 = arith.mulf %50, %54 : vector<8x8xf32>
    %cst_28 = arith.constant dense<0.000000e+00> : vector<8x8xf32>
    %56 = tpu.matmul %55, %44, %cst_28 {dimension_numbers = #tpu.dot_dimension_numbers<[1], [0], [0], [1], [0, 0, 1, 1], [], []>} : vector<8x8xf32>, vector<8x8xf32>, vector<8x8xf32> -> vector<8x8xf32>
    %57 = vector.extract_strided_slice %39 {offsets = [0, 8], sizes = [8, 8], strides = [1, 1]} : vector<8x32xf32> to vector<8x8xf32>
    %58 = vector.extract_strided_slice %40 {offsets = [0, 8], sizes = [8, 8], strides = [1, 1]} : vector<8x32xf32> to vector<8x8xf32>
    %59 = vector.extract_strided_slice %41 {offsets = [0, 8], sizes = [8, 8], strides = [1, 1]} : vector<8x32xf32> to vector<8x8xf32>
    %cst_29 = arith.constant dense<0.000000e+00> : vector<8x8xf32>
    %60 = tpu.matmul %57, %58, %cst_29 {dimension_numbers = #tpu.dot_dimension_numbers<[1], [1], [0], [0], [0, 0, 1, 0], [], []>} : vector<8x8xf32>, vector<8x8xf32>, vector<8x8xf32> -> vector<8x8xf32>
    %cst_30 = arith.constant dense<0xFF800000> : vector<8xf32>
    %61 = vector.multi_reduction <maximumf>, %60, %cst_30 [1] : vector<8x8xf32> to vector<8xf32>
    %62 = vector.shape_cast %61 : vector<8xf32> to vector<8x1xf32>
    %63 = vector.broadcast %62 : vector<8x1xf32> to vector<8x8xf32>
    %64 = arith.subf %60, %63 : vector<8x8xf32>
    %65 = math.exp %64 : vector<8x8xf32>
    %cst_31 = arith.constant dense<0.000000e+00> : vector<8xf32>
    %66 = vector.multi_reduction <add>, %65, %cst_31 [1] : vector<8x8xf32> to vector<8xf32>
    %67 = vector.shape_cast %66 : vector<8xf32> to vector<8x1xf32>
    %68 = tpu.reciprocal %67 {approx = true} : vector<8x1xf32> -> vector<8x1xf32>
    %69 = vector.broadcast %68 : vector<8x1xf32> to vector<8x8xf32>
    %70 = arith.mulf %65, %69 : vector<8x8xf32>
    %cst_32 = arith.constant dense<0.000000e+00> : vector<8x8xf32>
    %71 = tpu.matmul %70, %59, %cst_32 {dimension_numbers = #tpu.dot_dimension_numbers<[1], [0], [0], [1], [0, 0, 1, 1], [], []>} : vector<8x8xf32>, vector<8x8xf32>, vector<8x8xf32> -> vector<8x8xf32>
    %72 = vector.extract_strided_slice %39 {offsets = [0, 16], sizes = [8, 8], strides = [1, 1]} : vector<8x32xf32> to vector<8x8xf32>
    %73 = vector.extract_strided_slice %40 {offsets = [0, 16], sizes = [8, 8], strides = [1, 1]} : vector<8x32xf32> to vector<8x8xf32>
    %74 = vector.extract_strided_slice %41 {offsets = [0, 16], sizes = [8, 8], strides = [1, 1]} : vector<8x32xf32> to vector<8x8xf32>
    %cst_33 = arith.constant dense<0.000000e+00> : vector<8x8xf32>
    %75 = tpu.matmul %72, %73, %cst_33 {dimension_numbers = #tpu.dot_dimension_numbers<[1], [1], [0], [0], [0, 0, 1, 0], [], []>} : vector<8x8xf32>, vector<8x8xf32>, vector<8x8xf32> -> vector<8x8xf32>
    %cst_34 = arith.constant dense<0xFF800000> : vector<8xf32>
    %76 = vector.multi_reduction <maximumf>, %75, %cst_34 [1] : vector<8x8xf32> to vector<8xf32>
    %77 = vector.shape_cast %76 : vector<8xf32> to vector<8x1xf32>
    %78 = vector.broadcast %77 : vector<8x1xf32> to vector<8x8xf32>
    %79 = arith.subf %75, %78 : vector<8x8xf32>
    %80 = math.exp %79 : vector<8x8xf32>
    %cst_35 = arith.constant dense<0.000000e+00> : vector<8xf32>
    %81 = vector.multi_reduction <add>, %80, %cst_35 [1] : vector<8x8xf32> to vector<8xf32>
    %82 = vector.shape_cast %81 : vector<8xf32> to vector<8x1xf32>
    %83 = tpu.reciprocal %82 {approx = true} : vector<8x1xf32> -> vector<8x1xf32>
    %84 = vector.broadcast %83 : vector<8x1xf32> to vector<8x8xf32>
    %85 = arith.mulf %80, %84 : vector<8x8xf32>
    %cst_36 = arith.constant dense<0.000000e+00> : vector<8x8xf32>
    %86 = tpu.matmul %85, %74, %cst_36 {dimension_numbers = #tpu.dot_dimension_numbers<[1], [0], [0], [1], [0, 0, 1, 1], [], []>} : vector<8x8xf32>, vector<8x8xf32>, vector<8x8xf32> -> vector<8x8xf32>
    %87 = vector.extract_strided_slice %39 {offsets = [0, 24], sizes = [8, 8], strides = [1, 1]} : vector<8x32xf32> to vector<8x8xf32>
    %88 = vector.extract_strided_slice %40 {offsets = [0, 24], sizes = [8, 8], strides = [1, 1]} : vector<8x32xf32> to vector<8x8xf32>
    %89 = vector.extract_strided_slice %41 {offsets = [0, 24], sizes = [8, 8], strides = [1, 1]} : vector<8x32xf32> to vector<8x8xf32>
    %cst_37 = arith.constant dense<0.000000e+00> : vector<8x8xf32>
    %90 = tpu.matmul %87, %88, %cst_37 {dimension_numbers = #tpu.dot_dimension_numbers<[1], [1], [0], [0], [0, 0, 1, 0], [], []>} : vector<8x8xf32>, vector<8x8xf32>, vector<8x8xf32> -> vector<8x8xf32>
    %cst_38 = arith.constant dense<0xFF800000> : vector<8xf32>
    %91 = vector.multi_reduction <maximumf>, %90, %cst_38 [1] : vector<8x8xf32> to vector<8xf32>
    %92 = vector.shape_cast %91 : vector<8xf32> to vector<8x1xf32>
    %93 = vector.broadcast %92 : vector<8x1xf32> to vector<8x8xf32>
    %94 = arith.subf %90, %93 : vector<8x8xf32>
    %95 = math.exp %94 : vector<8x8xf32>
    %cst_39 = arith.constant dense<0.000000e+00> : vector<8xf32>
    %96 = vector.multi_reduction <add>, %95, %cst_39 [1] : vector<8x8xf32> to vector<8xf32>
    %97 = vector.shape_cast %96 : vector<8xf32> to vector<8x1xf32>
    %98 = tpu.reciprocal %97 {approx = true} : vector<8x1xf32> -> vector<8x1xf32>
    %99 = vector.broadcast %98 : vector<8x1xf32> to vector<8x8xf32>
    %100 = arith.mulf %95, %99 : vector<8x8xf32>
    %cst_40 = arith.constant dense<0.000000e+00> : vector<8x8xf32>
    %101 = tpu.matmul %100, %89, %cst_40 {dimension_numbers = #tpu.dot_dimension_numbers<[1], [0], [0], [1], [0, 0, 1, 1], [], []>} : vector<8x8xf32>, vector<8x8xf32>, vector<8x8xf32> -> vector<8x8xf32>
    %102 = tpu.concatenate %56, %71, %86, %101 in 1 : vector<8x8xf32>, vector<8x8xf32>, vector<8x8xf32>, vector<8x8xf32> -> vector<8x32xf32>
    %cst_41 = arith.constant dense<0.000000e+00> : vector<8x32xf32>
    %103 = tpu.matmul %102, %35, %cst_41 {dimension_numbers = #tpu.dot_dimension_numbers<[1], [0], [0], [1], [0, 0, 1, 1], [], []>} : vector<8x32xf32>, vector<32x32xf32>, vector<8x32xf32> -> vector<8x32xf32>
    %104 = arith.addf %103, %31 : vector<8x32xf32>
    %105 = vector.extract_strided_slice %37 {offsets = [0, 0], sizes = [1, 32], strides = [1, 1]} : vector<2x32xf32> to vector<1x32xf32>
    %106 = vector.extract_strided_slice %37 {offsets = [1, 0], sizes = [1, 32], strides = [1, 1]} : vector<2x32xf32> to vector<1x32xf32>
    %cst_42 = arith.constant dense<0.000000e+00> : vector<8xf32>
    %107 = vector.multi_reduction <add>, %104, %cst_42 [1] : vector<8x32xf32> to vector<8xf32>
    %108 = vector.shape_cast %107 : vector<8xf32> to vector<8x1xf32>
    %cst_43 = arith.constant 3.200000e+01 : f32
    %109 = vector.broadcast %cst_43 : f32 to vector<8x1xf32>
    %110 = arith.divf %108, %109 : vector<8x1xf32>
    %111 = vector.broadcast %110 : vector<8x1xf32> to vector<8x32xf32>
    %112 = arith.subf %104, %111 : vector<8x32xf32>
    %113 = arith.mulf %112, %112 : vector<8x32xf32>
    %cst_44 = arith.constant dense<0.000000e+00> : vector<8xf32>
    %114 = vector.multi_reduction <add>, %113, %cst_44 [1] : vector<8x32xf32> to vector<8xf32>
    %115 = vector.shape_cast %114 : vector<8xf32> to vector<8x1xf32>
    %cst_45 = arith.constant 3.200000e+01 : f32
    %116 = vector.broadcast %cst_45 : f32 to vector<8x1xf32>
    %117 = arith.divf %115, %116 : vector<8x1xf32>
    %118 = vector.broadcast %110 : vector<8x1xf32> to vector<8x32xf32>
    %119 = arith.subf %104, %118 : vector<8x32xf32>
    %cst_46 = arith.constant 9.99999997E-7 : f32
    %120 = vector.broadcast %cst_46 : f32 to vector<8x1xf32>
    %121 = arith.addf %117, %120 : vector<8x1xf32>
    %122 = math.rsqrt %121 : vector<8x1xf32>
    %123 = vector.broadcast %122 : vector<8x1xf32> to vector<8x32xf32>
    %124 = arith.mulf %119, %123 : vector<8x32xf32>
    %125 = vector.broadcast %105 : vector<1x32xf32> to vector<8x32xf32>
    %126 = arith.mulf %124, %125 : vector<8x32xf32>
    %127 = vector.broadcast %106 : vector<1x32xf32> to vector<8x32xf32>
    %128 = arith.addf %126, %127 : vector<8x32xf32>
    %c0_47 = arith.constant 0 : index
    %c0_48 = arith.constant 0 : index
    %c0_49 = arith.constant 0 : index
    %129 = vector.load %arg10[%c0_47, %c0_48, %c0_49] : memref<2x32x64xf32, #tpu.memory_space<vmem>>, vector<1x32x64xf32>
    %130 = vector.shape_cast %129 : vector<1x32x64xf32> to vector<32x64xf32>
    %c0_50 = arith.constant 0 : index
    %c0_51 = arith.constant 0 : index
    %c0_52 = arith.constant 0 : index
    %131 = vector.load %arg11[%c0_50, %c0_51, %c0_52] : memref<2x1x64xf32, #tpu.memory_space<vmem>>, vector<1x1x64xf32>
    %132 = vector.shape_cast %131 : vector<1x1x64xf32> to vector<1x64xf32>
    %c0_53 = arith.constant 0 : index
    %c0_54 = arith.constant 0 : index
    %c0_55 = arith.constant 0 : index
    %133 = vector.load %arg12[%c0_53, %c0_54, %c0_55] : memref<2x64x32xf32, #tpu.memory_space<vmem>>, vector<1x64x32xf32>
    %134 = vector.shape_cast %133 : vector<1x64x32xf32> to vector<64x32xf32>
    %c0_56 = arith.constant 0 : index
    %c0_57 = arith.constant 0 : index
    %c0_58 = arith.constant 0 : index
    %135 = vector.load %arg13[%c0_56, %c0_57, %c0_58] : memref<2x1x32xf32, #tpu.memory_space<vmem>>, vector<1x1x32xf32>
    %136 = vector.shape_cast %135 : vector<1x1x32xf32> to vector<1x32xf32>
    %c0_59 = arith.constant 0 : index
    %c0_60 = arith.constant 0 : index
    %c0_61 = arith.constant 0 : index
    %137 = vector.load %arg14[%c0_59, %c0_60, %c0_61] : memref<2x2x32xf32, #tpu.memory_space<vmem>>, vector<1x2x32xf32>
    %138 = vector.shape_cast %137 : vector<1x2x32xf32> to vector<2x32xf32>
    %cst_62 = arith.constant dense<0.000000e+00> : vector<8x64xf32>
    %139 = tpu.matmul %128, %130, %cst_62 {dimension_numbers = #tpu.dot_dimension_numbers<[1], [0], [0], [1], [0, 0, 1, 1], [], []>} : vector<8x32xf32>, vector<32x64xf32>, vector<8x64xf32> -> vector<8x64xf32>
    %140 = vector.broadcast %132 : vector<1x64xf32> to vector<8x64xf32>
    %141 = arith.addf %139, %140 : vector<8x64xf32>
    %cst_63 = arith.constant 0.000000e+00 : f32
    %142 = vector.broadcast %cst_63 : f32 to vector<8x64xf32>
    %143 = arith.maximumf %141, %142 : vector<8x64xf32>
    %cst_64 = arith.constant dense<0.000000e+00> : vector<8x32xf32>
    %144 = tpu.matmul %143, %134, %cst_64 {dimension_numbers = #tpu.dot_dimension_numbers<[1], [0], [0], [1], [0, 0, 1, 1], [], []>} : vector<8x64xf32>, vector<64x32xf32>, vector<8x32xf32> -> vector<8x32xf32>
    %145 = vector.broadcast %136 : vector<1x32xf32> to vector<8x32xf32>
    %146 = arith.addf %144, %145 : vector<8x32xf32>
    %147 = arith.addf %146, %128 : vector<8x32xf32>
    %148 = vector.extract_strided_slice %138 {offsets = [0, 0], sizes = [1, 32], strides = [1, 1]} : vector<2x32xf32> to vector<1x32xf32>
    %149 = vector.extract_strided_slice %138 {offsets = [1, 0], sizes = [1, 32], strides = [1, 1]} : vector<2x32xf32> to vector<1x32xf32>
    %cst_65 = arith.constant dense<0.000000e+00> : vector<8xf32>
    %150 = vector.multi_reduction <add>, %147, %cst_65 [1] : vector<8x32xf32> to vector<8xf32>
    %151 = vector.shape_cast %150 : vector<8xf32> to vector<8x1xf32>
    %cst_66 = arith.constant 3.200000e+01 : f32
    %152 = vector.broadcast %cst_66 : f32 to vector<8x1xf32>
    %153 = arith.divf %151, %152 : vector<8x1xf32>
    %154 = vector.broadcast %153 : vector<8x1xf32> to vector<8x32xf32>
    %155 = arith.subf %147, %154 : vector<8x32xf32>
    %156 = arith.mulf %155, %155 : vector<8x32xf32>
    %cst_67 = arith.constant dense<0.000000e+00> : vector<8xf32>
    %157 = vector.multi_reduction <add>, %156, %cst_67 [1] : vector<8x32xf32> to vector<8xf32>
    %158 = vector.shape_cast %157 : vector<8xf32> to vector<8x1xf32>
    %cst_68 = arith.constant 3.200000e+01 : f32
    %159 = vector.broadcast %cst_68 : f32 to vector<8x1xf32>
    %160 = arith.divf %158, %159 : vector<8x1xf32>
    %161 = vector.broadcast %153 : vector<8x1xf32> to vector<8x32xf32>
    %162 = arith.subf %147, %161 : vector<8x32xf32>
    %cst_69 = arith.constant 9.99999997E-7 : f32
    %163 = vector.broadcast %cst_69 : f32 to vector<8x1xf32>
    %164 = arith.addf %160, %163 : vector<8x1xf32>
    %165 = math.rsqrt %164 : vector<8x1xf32>
    %166 = vector.broadcast %165 : vector<8x1xf32> to vector<8x32xf32>
    %167 = arith.mulf %162, %166 : vector<8x32xf32>
    %168 = vector.broadcast %148 : vector<1x32xf32> to vector<8x32xf32>
    %169 = arith.mulf %167, %168 : vector<8x32xf32>
    %170 = vector.broadcast %149 : vector<1x32xf32> to vector<8x32xf32>
    %171 = arith.addf %169, %170 : vector<8x32xf32>
    %c1_70 = arith.constant 1 : index
    %c0_71 = arith.constant 0 : index
    %c0_72 = arith.constant 0 : index
    %172 = vector.load %arg7[%c1_70, %c0_71, %c0_72] : memref<2x32x96xf32, #tpu.memory_space<vmem>>, vector<1x32x96xf32>
    %173 = vector.shape_cast %172 : vector<1x32x96xf32> to vector<32x96xf32>
    %c1_73 = arith.constant 1 : index
    %c0_74 = arith.constant 0 : index
    %c0_75 = arith.constant 0 : index
    %174 = vector.load %arg8[%c1_73, %c0_74, %c0_75] : memref<2x32x32xf32, #tpu.memory_space<vmem>>, vector<1x32x32xf32>
    %175 = vector.shape_cast %174 : vector<1x32x32xf32> to vector<32x32xf32>
    %c1_76 = arith.constant 1 : index
    %c0_77 = arith.constant 0 : index
    %c0_78 = arith.constant 0 : index
    %176 = vector.load %arg9[%c1_76, %c0_77, %c0_78] : memref<2x2x32xf32, #tpu.memory_space<vmem>>, vector<1x2x32xf32>
    %177 = vector.shape_cast %176 : vector<1x2x32xf32> to vector<2x32xf32>
    %cst_79 = arith.constant dense<0.000000e+00> : vector<8x96xf32>
    %178 = tpu.matmul %171, %173, %cst_79 {dimension_numbers = #tpu.dot_dimension_numbers<[1], [0], [0], [1], [0, 0, 1, 1], [], []>} : vector<8x32xf32>, vector<32x96xf32>, vector<8x96xf32> -> vector<8x96xf32>
    %179 = vector.extract_strided_slice %178 {offsets = [0, 0], sizes = [8, 32], strides = [1, 1]} : vector<8x96xf32> to vector<8x32xf32>
    %180 = vector.extract_strided_slice %178 {offsets = [0, 32], sizes = [8, 32], strides = [1, 1]} : vector<8x96xf32> to vector<8x32xf32>
    %181 = vector.extract_strided_slice %178 {offsets = [0, 64], sizes = [8, 32], strides = [1, 1]} : vector<8x96xf32> to vector<8x32xf32>
    %182 = vector.extract_strided_slice %179 {offsets = [0, 0], sizes = [8, 8], strides = [1, 1]} : vector<8x32xf32> to vector<8x8xf32>
    %183 = vector.extract_strided_slice %180 {offsets = [0, 0], sizes = [8, 8], strides = [1, 1]} : vector<8x32xf32> to vector<8x8xf32>
    %184 = vector.extract_strided_slice %181 {offsets = [0, 0], sizes = [8, 8], strides = [1, 1]} : vector<8x32xf32> to vector<8x8xf32>
    %cst_80 = arith.constant dense<0.000000e+00> : vector<8x8xf32>
    %185 = tpu.matmul %182, %183, %cst_80 {dimension_numbers = #tpu.dot_dimension_numbers<[1], [1], [0], [0], [0, 0, 1, 0], [], []>} : vector<8x8xf32>, vector<8x8xf32>, vector<8x8xf32> -> vector<8x8xf32>
    %cst_81 = arith.constant dense<0xFF800000> : vector<8xf32>
    %186 = vector.multi_reduction <maximumf>, %185, %cst_81 [1] : vector<8x8xf32> to vector<8xf32>
    %187 = vector.shape_cast %186 : vector<8xf32> to vector<8x1xf32>
    %188 = vector.broadcast %187 : vector<8x1xf32> to vector<8x8xf32>
    %189 = arith.subf %185, %188 : vector<8x8xf32>
    %190 = math.exp %189 : vector<8x8xf32>
    %cst_82 = arith.constant dense<0.000000e+00> : vector<8xf32>
    %191 = vector.multi_reduction <add>, %190, %cst_82 [1] : vector<8x8xf32> to vector<8xf32>
    %192 = vector.shape_cast %191 : vector<8xf32> to vector<8x1xf32>
    %193 = tpu.reciprocal %192 {approx = true} : vector<8x1xf32> -> vector<8x1xf32>
    %194 = vector.broadcast %193 : vector<8x1xf32> to vector<8x8xf32>
    %195 = arith.mulf %190, %194 : vector<8x8xf32>
    %cst_83 = arith.constant dense<0.000000e+00> : vector<8x8xf32>
    %196 = tpu.matmul %195, %184, %cst_83 {dimension_numbers = #tpu.dot_dimension_numbers<[1], [0], [0], [1], [0, 0, 1, 1], [], []>} : vector<8x8xf32>, vector<8x8xf32>, vector<8x8xf32> -> vector<8x8xf32>
    %197 = vector.extract_strided_slice %179 {offsets = [0, 8], sizes = [8, 8], strides = [1, 1]} : vector<8x32xf32> to vector<8x8xf32>
    %198 = vector.extract_strided_slice %180 {offsets = [0, 8], sizes = [8, 8], strides = [1, 1]} : vector<8x32xf32> to vector<8x8xf32>
    %199 = vector.extract_strided_slice %181 {offsets = [0, 8], sizes = [8, 8], strides = [1, 1]} : vector<8x32xf32> to vector<8x8xf32>
    %cst_84 = arith.constant dense<0.000000e+00> : vector<8x8xf32>
    %200 = tpu.matmul %197, %198, %cst_84 {dimension_numbers = #tpu.dot_dimension_numbers<[1], [1], [0], [0], [0, 0, 1, 0], [], []>} : vector<8x8xf32>, vector<8x8xf32>, vector<8x8xf32> -> vector<8x8xf32>
    %cst_85 = arith.constant dense<0xFF800000> : vector<8xf32>
    %201 = vector.multi_reduction <maximumf>, %200, %cst_85 [1] : vector<8x8xf32> to vector<8xf32>
    %202 = vector.shape_cast %201 : vector<8xf32> to vector<8x1xf32>
    %203 = vector.broadcast %202 : vector<8x1xf32> to vector<8x8xf32>
    %204 = arith.subf %200, %203 : vector<8x8xf32>
    %205 = math.exp %204 : vector<8x8xf32>
    %cst_86 = arith.constant dense<0.000000e+00> : vector<8xf32>
    %206 = vector.multi_reduction <add>, %205, %cst_86 [1] : vector<8x8xf32> to vector<8xf32>
    %207 = vector.shape_cast %206 : vector<8xf32> to vector<8x1xf32>
    %208 = tpu.reciprocal %207 {approx = true} : vector<8x1xf32> -> vector<8x1xf32>
    %209 = vector.broadcast %208 : vector<8x1xf32> to vector<8x8xf32>
    %210 = arith.mulf %205, %209 : vector<8x8xf32>
    %cst_87 = arith.constant dense<0.000000e+00> : vector<8x8xf32>
    %211 = tpu.matmul %210, %199, %cst_87 {dimension_numbers = #tpu.dot_dimension_numbers<[1], [0], [0], [1], [0, 0, 1, 1], [], []>} : vector<8x8xf32>, vector<8x8xf32>, vector<8x8xf32> -> vector<8x8xf32>
    %212 = vector.extract_strided_slice %179 {offsets = [0, 16], sizes = [8, 8], strides = [1, 1]} : vector<8x32xf32> to vector<8x8xf32>
    %213 = vector.extract_strided_slice %180 {offsets = [0, 16], sizes = [8, 8], strides = [1, 1]} : vector<8x32xf32> to vector<8x8xf32>
    %214 = vector.extract_strided_slice %181 {offsets = [0, 16], sizes = [8, 8], strides = [1, 1]} : vector<8x32xf32> to vector<8x8xf32>
    %cst_88 = arith.constant dense<0.000000e+00> : vector<8x8xf32>
    %215 = tpu.matmul %212, %213, %cst_88 {dimension_numbers = #tpu.dot_dimension_numbers<[1], [1], [0], [0], [0, 0, 1, 0], [], []>} : vector<8x8xf32>, vector<8x8xf32>, vector<8x8xf32> -> vector<8x8xf32>
    %cst_89 = arith.constant dense<0xFF800000> : vector<8xf32>
    %216 = vector.multi_reduction <maximumf>, %215, %cst_89 [1] : vector<8x8xf32> to vector<8xf32>
    %217 = vector.shape_cast %216 : vector<8xf32> to vector<8x1xf32>
    %218 = vector.broadcast %217 : vector<8x1xf32> to vector<8x8xf32>
    %219 = arith.subf %215, %218 : vector<8x8xf32>
    %220 = math.exp %219 : vector<8x8xf32>
    %cst_90 = arith.constant dense<0.000000e+00> : vector<8xf32>
    %221 = vector.multi_reduction <add>, %220, %cst_90 [1] : vector<8x8xf32> to vector<8xf32>
    %222 = vector.shape_cast %221 : vector<8xf32> to vector<8x1xf32>
    %223 = tpu.reciprocal %222 {approx = true} : vector<8x1xf32> -> vector<8x1xf32>
    %224 = vector.broadcast %223 : vector<8x1xf32> to vector<8x8xf32>
    %225 = arith.mulf %220, %224 : vector<8x8xf32>
    %cst_91 = arith.constant dense<0.000000e+00> : vector<8x8xf32>
    %226 = tpu.matmul %225, %214, %cst_91 {dimension_numbers = #tpu.dot_dimension_numbers<[1], [0], [0], [1], [0, 0, 1, 1], [], []>} : vector<8x8xf32>, vector<8x8xf32>, vector<8x8xf32> -> vector<8x8xf32>
    %227 = vector.extract_strided_slice %179 {offsets = [0, 24], sizes = [8, 8], strides = [1, 1]} : vector<8x32xf32> to vector<8x8xf32>
    %228 = vector.extract_strided_slice %180 {offsets = [0, 24], sizes = [8, 8], strides = [1, 1]} : vector<8x32xf32> to vector<8x8xf32>
    %229 = vector.extract_strided_slice %181 {offsets = [0, 24], sizes = [8, 8], strides = [1, 1]} : vector<8x32xf32> to vector<8x8xf32>
    %cst_92 = arith.constant dense<0.000000e+00> : vector<8x8xf32>
    %230 = tpu.matmul %227, %228, %cst_92 {dimension_numbers = #tpu.dot_dimension_numbers<[1], [1], [0], [0], [0, 0, 1, 0], [], []>} : vector<8x8xf32>, vector<8x8xf32>, vector<8x8xf32> -> vector<8x8xf32>
    %cst_93 = arith.constant dense<0xFF800000> : vector<8xf32>
    %231 = vector.multi_reduction <maximumf>, %230, %cst_93 [1] : vector<8x8xf32> to vector<8xf32>
    %232 = vector.shape_cast %231 : vector<8xf32> to vector<8x1xf32>
    %233 = vector.broadcast %232 : vector<8x1xf32> to vector<8x8xf32>
    %234 = arith.subf %230, %233 : vector<8x8xf32>
    %235 = math.exp %234 : vector<8x8xf32>
    %cst_94 = arith.constant dense<0.000000e+00> : vector<8xf32>
    %236 = vector.multi_reduction <add>, %235, %cst_94 [1] : vector<8x8xf32> to vector<8xf32>
    %237 = vector.shape_cast %236 : vector<8xf32> to vector<8x1xf32>
    %238 = tpu.reciprocal %237 {approx = true} : vector<8x1xf32> -> vector<8x1xf32>
    %239 = vector.broadcast %238 : vector<8x1xf32> to vector<8x8xf32>
    %240 = arith.mulf %235, %239 : vector<8x8xf32>
    %cst_95 = arith.constant dense<0.000000e+00> : vector<8x8xf32>
    %241 = tpu.matmul %240, %229, %cst_95 {dimension_numbers = #tpu.dot_dimension_numbers<[1], [0], [0], [1], [0, 0, 1, 1], [], []>} : vector<8x8xf32>, vector<8x8xf32>, vector<8x8xf32> -> vector<8x8xf32>
    %242 = tpu.concatenate %196, %211, %226, %241 in 1 : vector<8x8xf32>, vector<8x8xf32>, vector<8x8xf32>, vector<8x8xf32> -> vector<8x32xf32>
    %cst_96 = arith.constant dense<0.000000e+00> : vector<8x32xf32>
    %243 = tpu.matmul %242, %175, %cst_96 {dimension_numbers = #tpu.dot_dimension_numbers<[1], [0], [0], [1], [0, 0, 1, 1], [], []>} : vector<8x32xf32>, vector<32x32xf32>, vector<8x32xf32> -> vector<8x32xf32>
    %244 = arith.addf %243, %171 : vector<8x32xf32>
    %245 = vector.extract_strided_slice %177 {offsets = [0, 0], sizes = [1, 32], strides = [1, 1]} : vector<2x32xf32> to vector<1x32xf32>
    %246 = vector.extract_strided_slice %177 {offsets = [1, 0], sizes = [1, 32], strides = [1, 1]} : vector<2x32xf32> to vector<1x32xf32>
    %cst_97 = arith.constant dense<0.000000e+00> : vector<8xf32>
    %247 = vector.multi_reduction <add>, %244, %cst_97 [1] : vector<8x32xf32> to vector<8xf32>
    %248 = vector.shape_cast %247 : vector<8xf32> to vector<8x1xf32>
    %cst_98 = arith.constant 3.200000e+01 : f32
    %249 = vector.broadcast %cst_98 : f32 to vector<8x1xf32>
    %250 = arith.divf %248, %249 : vector<8x1xf32>
    %251 = vector.broadcast %250 : vector<8x1xf32> to vector<8x32xf32>
    %252 = arith.subf %244, %251 : vector<8x32xf32>
    %253 = arith.mulf %252, %252 : vector<8x32xf32>
    %cst_99 = arith.constant dense<0.000000e+00> : vector<8xf32>
    %254 = vector.multi_reduction <add>, %253, %cst_99 [1] : vector<8x32xf32> to vector<8xf32>
    %255 = vector.shape_cast %254 : vector<8xf32> to vector<8x1xf32>
    %cst_100 = arith.constant 3.200000e+01 : f32
    %256 = vector.broadcast %cst_100 : f32 to vector<8x1xf32>
    %257 = arith.divf %255, %256 : vector<8x1xf32>
    %258 = vector.broadcast %250 : vector<8x1xf32> to vector<8x32xf32>
    %259 = arith.subf %244, %258 : vector<8x32xf32>
    %cst_101 = arith.constant 9.99999997E-7 : f32
    %260 = vector.broadcast %cst_101 : f32 to vector<8x1xf32>
    %261 = arith.addf %257, %260 : vector<8x1xf32>
    %262 = math.rsqrt %261 : vector<8x1xf32>
    %263 = vector.broadcast %262 : vector<8x1xf32> to vector<8x32xf32>
    %264 = arith.mulf %259, %263 : vector<8x32xf32>
    %265 = vector.broadcast %245 : vector<1x32xf32> to vector<8x32xf32>
    %266 = arith.mulf %264, %265 : vector<8x32xf32>
    %267 = vector.broadcast %246 : vector<1x32xf32> to vector<8x32xf32>
    %268 = arith.addf %266, %267 : vector<8x32xf32>
    %c1_102 = arith.constant 1 : index
    %c0_103 = arith.constant 0 : index
    %c0_104 = arith.constant 0 : index
    %269 = vector.load %arg10[%c1_102, %c0_103, %c0_104] : memref<2x32x64xf32, #tpu.memory_space<vmem>>, vector<1x32x64xf32>
    %270 = vector.shape_cast %269 : vector<1x32x64xf32> to vector<32x64xf32>
    %c1_105 = arith.constant 1 : index
    %c0_106 = arith.constant 0 : index
    %c0_107 = arith.constant 0 : index
    %271 = vector.load %arg11[%c1_105, %c0_106, %c0_107] : memref<2x1x64xf32, #tpu.memory_space<vmem>>, vector<1x1x64xf32>
    %272 = vector.shape_cast %271 : vector<1x1x64xf32> to vector<1x64xf32>
    %c1_108 = arith.constant 1 : index
    %c0_109 = arith.constant 0 : index
    %c0_110 = arith.constant 0 : index
    %273 = vector.load %arg12[%c1_108, %c0_109, %c0_110] : memref<2x64x32xf32, #tpu.memory_space<vmem>>, vector<1x64x32xf32>
    %274 = vector.shape_cast %273 : vector<1x64x32xf32> to vector<64x32xf32>
    %c1_111 = arith.constant 1 : index
    %c0_112 = arith.constant 0 : index
    %c0_113 = arith.constant 0 : index
    %275 = vector.load %arg13[%c1_111, %c0_112, %c0_113] : memref<2x1x32xf32, #tpu.memory_space<vmem>>, vector<1x1x32xf32>
    %276 = vector.shape_cast %275 : vector<1x1x32xf32> to vector<1x32xf32>
    %c1_114 = arith.constant 1 : index
    %c0_115 = arith.constant 0 : index
    %c0_116 = arith.constant 0 : index
    %277 = vector.load %arg14[%c1_114, %c0_115, %c0_116] : memref<2x2x32xf32, #tpu.memory_space<vmem>>, vector<1x2x32xf32>
    %278 = vector.shape_cast %277 : vector<1x2x32xf32> to vector<2x32xf32>
    %cst_117 = arith.constant dense<0.000000e+00> : vector<8x64xf32>
    %279 = tpu.matmul %268, %270, %cst_117 {dimension_numbers = #tpu.dot_dimension_numbers<[1], [0], [0], [1], [0, 0, 1, 1], [], []>} : vector<8x32xf32>, vector<32x64xf32>, vector<8x64xf32> -> vector<8x64xf32>
    %280 = vector.broadcast %272 : vector<1x64xf32> to vector<8x64xf32>
    %281 = arith.addf %279, %280 : vector<8x64xf32>
    %cst_118 = arith.constant 0.000000e+00 : f32
    %282 = vector.broadcast %cst_118 : f32 to vector<8x64xf32>
    %283 = arith.maximumf %281, %282 : vector<8x64xf32>
    %cst_119 = arith.constant dense<0.000000e+00> : vector<8x32xf32>
    %284 = tpu.matmul %283, %274, %cst_119 {dimension_numbers = #tpu.dot_dimension_numbers<[1], [0], [0], [1], [0, 0, 1, 1], [], []>} : vector<8x64xf32>, vector<64x32xf32>, vector<8x32xf32> -> vector<8x32xf32>
    %285 = vector.broadcast %276 : vector<1x32xf32> to vector<8x32xf32>
    %286 = arith.addf %284, %285 : vector<8x32xf32>
    %287 = arith.addf %286, %268 : vector<8x32xf32>
    %288 = vector.extract_strided_slice %278 {offsets = [0, 0], sizes = [1, 32], strides = [1, 1]} : vector<2x32xf32> to vector<1x32xf32>
    %289 = vector.extract_strided_slice %278 {offsets = [1, 0], sizes = [1, 32], strides = [1, 1]} : vector<2x32xf32> to vector<1x32xf32>
    %cst_120 = arith.constant dense<0.000000e+00> : vector<8xf32>
    %290 = vector.multi_reduction <add>, %287, %cst_120 [1] : vector<8x32xf32> to vector<8xf32>
    %291 = vector.shape_cast %290 : vector<8xf32> to vector<8x1xf32>
    %cst_121 = arith.constant 3.200000e+01 : f32
    %292 = vector.broadcast %cst_121 : f32 to vector<8x1xf32>
    %293 = arith.divf %291, %292 : vector<8x1xf32>
    %294 = vector.broadcast %293 : vector<8x1xf32> to vector<8x32xf32>
    %295 = arith.subf %287, %294 : vector<8x32xf32>
    %296 = arith.mulf %295, %295 : vector<8x32xf32>
    %cst_122 = arith.constant dense<0.000000e+00> : vector<8xf32>
    %297 = vector.multi_reduction <add>, %296, %cst_122 [1] : vector<8x32xf32> to vector<8xf32>
    %298 = vector.shape_cast %297 : vector<8xf32> to vector<8x1xf32>
    %cst_123 = arith.constant 3.200000e+01 : f32
    %299 = vector.broadcast %cst_123 : f32 to vector<8x1xf32>
    %300 = arith.divf %298, %299 : vector<8x1xf32>
    %301 = vector.broadcast %293 : vector<8x1xf32> to vector<8x32xf32>
    %302 = arith.subf %287, %301 : vector<8x32xf32>
    %cst_124 = arith.constant 9.99999997E-7 : f32
    %303 = vector.broadcast %cst_124 : f32 to vector<8x1xf32>
    %304 = arith.addf %300, %303 : vector<8x1xf32>
    %305 = math.rsqrt %304 : vector<8x1xf32>
    %306 = vector.broadcast %305 : vector<8x1xf32> to vector<8x32xf32>
    %307 = arith.mulf %302, %306 : vector<8x32xf32>
    %308 = vector.broadcast %288 : vector<1x32xf32> to vector<8x32xf32>
    %309 = arith.mulf %307, %308 : vector<8x32xf32>
    %310 = vector.broadcast %289 : vector<1x32xf32> to vector<8x32xf32>
    %311 = arith.addf %309, %310 : vector<8x32xf32>
    %c0_125 = arith.constant 0 : index
    %c0_126 = arith.constant 0 : index
    %c0_127 = arith.constant 0 : index
    %312 = vector.load %arg3[%c0_125, %c0_126, %c0_127] : memref<1x8x1xi32, #tpu.memory_space<vmem>>, vector<1x8x1xi32>
    %313 = vector.shape_cast %312 : vector<1x8x1xi32> to vector<8x1xi32>
    %314 = tpu.iota {dimensions = array<i32: 1>} : vector<8x50xi32>
    %315 = vector.broadcast %313 : vector<8x1xi32> to vector<8x50xi32>
    %316 = arith.cmpi eq, %314, %315 : vector<8x50xi32>
    %317 = arith.extui %316 : vector<8x50xi1> to vector<8x50xi32>
    %318 = arith.sitofp %317 : vector<8x50xi32> to vector<8x50xf32>
    %c0_128 = arith.constant 0 : index
    %c0_129 = arith.constant 0 : index
    %319 = vector.load %arg15[%c0_128, %c0_129] : memref<50x32xf32, #tpu.memory_space<vmem>>, vector<50x32xf32>
    %cst_130 = arith.constant dense<0.000000e+00> : vector<8x32xf32>
    %320 = tpu.matmul %318, %319, %cst_130 {dimension_numbers = #tpu.dot_dimension_numbers<[1], [0], [0], [1], [0, 0, 1, 1], [], []>} : vector<8x50xf32>, vector<50x32xf32>, vector<8x32xf32> -> vector<8x32xf32>
    %cst_131 = arith.constant 5.65685415 : f32
    %321 = vector.broadcast %cst_131 : f32 to vector<8x32xf32>
    %322 = arith.mulf %320, %321 : vector<8x32xf32>
    %323 = vector.broadcast %1 : vector<1x32xf32> to vector<8x32xf32>
    %324 = arith.addf %322, %323 : vector<8x32xf32>
    %c0_132 = arith.constant 0 : index
    %c0_133 = arith.constant 0 : index
    %325 = vector.load %arg16[%c0_132, %c0_133] : memref<2x32xf32, #tpu.memory_space<vmem>>, vector<1x32xf32>
    %c1_134 = arith.constant 1 : index
    %c0_135 = arith.constant 0 : index
    %326 = vector.load %arg16[%c1_134, %c0_135] : memref<2x32xf32, #tpu.memory_space<vmem>>, vector<1x32xf32>
    %cst_136 = arith.constant dense<0.000000e+00> : vector<8xf32>
    %327 = vector.multi_reduction <add>, %324, %cst_136 [1] : vector<8x32xf32> to vector<8xf32>
    %328 = vector.shape_cast %327 : vector<8xf32> to vector<8x1xf32>
    %cst_137 = arith.constant 3.200000e+01 : f32
    %329 = vector.broadcast %cst_137 : f32 to vector<8x1xf32>
    %330 = arith.divf %328, %329 : vector<8x1xf32>
    %331 = vector.broadcast %330 : vector<8x1xf32> to vector<8x32xf32>
    %332 = arith.subf %324, %331 : vector<8x32xf32>
    %333 = arith.mulf %332, %332 : vector<8x32xf32>
    %cst_138 = arith.constant dense<0.000000e+00> : vector<8xf32>
    %334 = vector.multi_reduction <add>, %333, %cst_138 [1] : vector<8x32xf32> to vector<8xf32>
    %335 = vector.shape_cast %334 : vector<8xf32> to vector<8x1xf32>
    %cst_139 = arith.constant 3.200000e+01 : f32
    %336 = vector.broadcast %cst_139 : f32 to vector<8x1xf32>
    %337 = arith.divf %335, %336 : vector<8x1xf32>
    %338 = vector.broadcast %330 : vector<8x1xf32> to vector<8x32xf32>
    %339 = arith.subf %324, %338 : vector<8x32xf32>
    %cst_140 = arith.constant 9.99999997E-7 : f32
    %340 = vector.broadcast %cst_140 : f32 to vector<8x1xf32>
    %341 = arith.addf %337, %340 : vector<8x1xf32>
    %342 = math.rsqrt %341 : vector<8x1xf32>
    %343 = vector.broadcast %342 : vector<8x1xf32> to vector<8x32xf32>
    %344 = arith.mulf %339, %343 : vector<8x32xf32>
    %345 = vector.broadcast %325 : vector<1x32xf32> to vector<8x32xf32>
    %346 = arith.mulf %344, %345 : vector<8x32xf32>
    %347 = vector.broadcast %326 : vector<1x32xf32> to vector<8x32xf32>
    %348 = arith.addf %346, %347 : vector<8x32xf32>
    %c0_141 = arith.constant 0 : index
    %c0_142 = arith.constant 0 : index
    %c0_143 = arith.constant 0 : index
    %349 = vector.load %arg2[%c0_141, %c0_142, %c0_143] : memref<1x1x8xi32, #tpu.memory_space<vmem>>, vector<1x1x8xi32>
    %350 = vector.shape_cast %349 : vector<1x1x8xi32> to vector<1x8xi32>
    %351 = tpu.iota {dimensions = array<i32: 0>} : vector<8x8xi32>
    %352 = tpu.iota {dimensions = array<i32: 1>} : vector<8x8xi32>
    %c0_i32 = arith.constant 0 : i32
    %353 = vector.broadcast %c0_i32 : i32 to vector<1x8xi32>
    %354 = arith.cmpi ne, %350, %353 : vector<1x8xi32>
    %355 = arith.cmpi sle, %352, %351 : vector<8x8xi32>
    %356 = vector.broadcast %354 : vector<1x8xi1> to vector<8x8xi1>
    %357 = arith.andi %356, %355 : vector<8x8xi1>
    %c0_144 = arith.constant 0 : index
    %c0_145 = arith.constant 0 : index
    %c0_146 = arith.constant 0 : index
    %358 = vector.load %arg17[%c0_144, %c0_145, %c0_146] : memref<2x32x96xf32, #tpu.memory_space<vmem>>, vector<1x32x96xf32>
    %359 = vector.shape_cast %358 : vector<1x32x96xf32> to vector<32x96xf32>
    %c0_147 = arith.constant 0 : index
    %c0_148 = arith.constant 0 : index
    %c0_149 = arith.constant 0 : index
    %360 = vector.load %arg18[%c0_147, %c0_148, %c0_149] : memref<2x32x32xf32, #tpu.memory_space<vmem>>, vector<1x32x32xf32>
    %361 = vector.shape_cast %360 : vector<1x32x32xf32> to vector<32x32xf32>
    %c0_150 = arith.constant 0 : index
    %c0_151 = arith.constant 0 : index
    %c0_152 = arith.constant 0 : index
    %362 = vector.load %arg19[%c0_150, %c0_151, %c0_152] : memref<2x2x32xf32, #tpu.memory_space<vmem>>, vector<1x2x32xf32>
    %363 = vector.shape_cast %362 : vector<1x2x32xf32> to vector<2x32xf32>
    %cst_153 = arith.constant dense<0.000000e+00> : vector<8x96xf32>
    %364 = tpu.matmul %348, %359, %cst_153 {dimension_numbers = #tpu.dot_dimension_numbers<[1], [0], [0], [1], [0, 0, 1, 1], [], []>} : vector<8x32xf32>, vector<32x96xf32>, vector<8x96xf32> -> vector<8x96xf32>
    %365 = vector.extract_strided_slice %364 {offsets = [0, 0], sizes = [8, 32], strides = [1, 1]} : vector<8x96xf32> to vector<8x32xf32>
    %366 = vector.extract_strided_slice %364 {offsets = [0, 32], sizes = [8, 32], strides = [1, 1]} : vector<8x96xf32> to vector<8x32xf32>
    %367 = vector.extract_strided_slice %364 {offsets = [0, 64], sizes = [8, 32], strides = [1, 1]} : vector<8x96xf32> to vector<8x32xf32>
    %368 = vector.extract_strided_slice %365 {offsets = [0, 0], sizes = [8, 8], strides = [1, 1]} : vector<8x32xf32> to vector<8x8xf32>
    %369 = vector.extract_strided_slice %366 {offsets = [0, 0], sizes = [8, 8], strides = [1, 1]} : vector<8x32xf32> to vector<8x8xf32>
    %370 = vector.extract_strided_slice %367 {offsets = [0, 0], sizes = [8, 8], strides = [1, 1]} : vector<8x32xf32> to vector<8x8xf32>
    %cst_154 = arith.constant dense<0.000000e+00> : vector<8x8xf32>
    %371 = tpu.matmul %368, %369, %cst_154 {dimension_numbers = #tpu.dot_dimension_numbers<[1], [1], [0], [0], [0, 0, 1, 0], [], []>} : vector<8x8xf32>, vector<8x8xf32>, vector<8x8xf32> -> vector<8x8xf32>
    %cst_155 = arith.constant -1.000000e+09 : f32
    %372 = vector.broadcast %cst_155 : f32 to vector<8x8xf32>
    %373 = arith.select %357, %371, %372 : vector<8x8xi1>, vector<8x8xf32>
    %cst_156 = arith.constant dense<0xFF800000> : vector<8xf32>
    %374 = vector.multi_reduction <maximumf>, %373, %cst_156 [1] : vector<8x8xf32> to vector<8xf32>
    %375 = vector.shape_cast %374 : vector<8xf32> to vector<8x1xf32>
    %376 = vector.broadcast %375 : vector<8x1xf32> to vector<8x8xf32>
    %377 = arith.subf %373, %376 : vector<8x8xf32>
    %378 = math.exp %377 : vector<8x8xf32>
    %cst_157 = arith.constant dense<0.000000e+00> : vector<8xf32>
    %379 = vector.multi_reduction <add>, %378, %cst_157 [1] : vector<8x8xf32> to vector<8xf32>
    %380 = vector.shape_cast %379 : vector<8xf32> to vector<8x1xf32>
    %381 = tpu.reciprocal %380 {approx = true} : vector<8x1xf32> -> vector<8x1xf32>
    %382 = vector.broadcast %381 : vector<8x1xf32> to vector<8x8xf32>
    %383 = arith.mulf %378, %382 : vector<8x8xf32>
    %cst_158 = arith.constant dense<0.000000e+00> : vector<8x8xf32>
    %384 = tpu.matmul %383, %370, %cst_158 {dimension_numbers = #tpu.dot_dimension_numbers<[1], [0], [0], [1], [0, 0, 1, 1], [], []>} : vector<8x8xf32>, vector<8x8xf32>, vector<8x8xf32> -> vector<8x8xf32>
    %385 = vector.extract_strided_slice %365 {offsets = [0, 8], sizes = [8, 8], strides = [1, 1]} : vector<8x32xf32> to vector<8x8xf32>
    %386 = vector.extract_strided_slice %366 {offsets = [0, 8], sizes = [8, 8], strides = [1, 1]} : vector<8x32xf32> to vector<8x8xf32>
    %387 = vector.extract_strided_slice %367 {offsets = [0, 8], sizes = [8, 8], strides = [1, 1]} : vector<8x32xf32> to vector<8x8xf32>
    %cst_159 = arith.constant dense<0.000000e+00> : vector<8x8xf32>
    %388 = tpu.matmul %385, %386, %cst_159 {dimension_numbers = #tpu.dot_dimension_numbers<[1], [1], [0], [0], [0, 0, 1, 0], [], []>} : vector<8x8xf32>, vector<8x8xf32>, vector<8x8xf32> -> vector<8x8xf32>
    %cst_160 = arith.constant -1.000000e+09 : f32
    %389 = vector.broadcast %cst_160 : f32 to vector<8x8xf32>
    %390 = arith.select %357, %388, %389 : vector<8x8xi1>, vector<8x8xf32>
    %cst_161 = arith.constant dense<0xFF800000> : vector<8xf32>
    %391 = vector.multi_reduction <maximumf>, %390, %cst_161 [1] : vector<8x8xf32> to vector<8xf32>
    %392 = vector.shape_cast %391 : vector<8xf32> to vector<8x1xf32>
    %393 = vector.broadcast %392 : vector<8x1xf32> to vector<8x8xf32>
    %394 = arith.subf %390, %393 : vector<8x8xf32>
    %395 = math.exp %394 : vector<8x8xf32>
    %cst_162 = arith.constant dense<0.000000e+00> : vector<8xf32>
    %396 = vector.multi_reduction <add>, %395, %cst_162 [1] : vector<8x8xf32> to vector<8xf32>
    %397 = vector.shape_cast %396 : vector<8xf32> to vector<8x1xf32>
    %398 = tpu.reciprocal %397 {approx = true} : vector<8x1xf32> -> vector<8x1xf32>
    %399 = vector.broadcast %398 : vector<8x1xf32> to vector<8x8xf32>
    %400 = arith.mulf %395, %399 : vector<8x8xf32>
    %cst_163 = arith.constant dense<0.000000e+00> : vector<8x8xf32>
    %401 = tpu.matmul %400, %387, %cst_163 {dimension_numbers = #tpu.dot_dimension_numbers<[1], [0], [0], [1], [0, 0, 1, 1], [], []>} : vector<8x8xf32>, vector<8x8xf32>, vector<8x8xf32> -> vector<8x8xf32>
    %402 = vector.extract_strided_slice %365 {offsets = [0, 16], sizes = [8, 8], strides = [1, 1]} : vector<8x32xf32> to vector<8x8xf32>
    %403 = vector.extract_strided_slice %366 {offsets = [0, 16], sizes = [8, 8], strides = [1, 1]} : vector<8x32xf32> to vector<8x8xf32>
    %404 = vector.extract_strided_slice %367 {offsets = [0, 16], sizes = [8, 8], strides = [1, 1]} : vector<8x32xf32> to vector<8x8xf32>
    %cst_164 = arith.constant dense<0.000000e+00> : vector<8x8xf32>
    %405 = tpu.matmul %402, %403, %cst_164 {dimension_numbers = #tpu.dot_dimension_numbers<[1], [1], [0], [0], [0, 0, 1, 0], [], []>} : vector<8x8xf32>, vector<8x8xf32>, vector<8x8xf32> -> vector<8x8xf32>
    %cst_165 = arith.constant -1.000000e+09 : f32
    %406 = vector.broadcast %cst_165 : f32 to vector<8x8xf32>
    %407 = arith.select %357, %405, %406 : vector<8x8xi1>, vector<8x8xf32>
    %cst_166 = arith.constant dense<0xFF800000> : vector<8xf32>
    %408 = vector.multi_reduction <maximumf>, %407, %cst_166 [1] : vector<8x8xf32> to vector<8xf32>
    %409 = vector.shape_cast %408 : vector<8xf32> to vector<8x1xf32>
    %410 = vector.broadcast %409 : vector<8x1xf32> to vector<8x8xf32>
    %411 = arith.subf %407, %410 : vector<8x8xf32>
    %412 = math.exp %411 : vector<8x8xf32>
    %cst_167 = arith.constant dense<0.000000e+00> : vector<8xf32>
    %413 = vector.multi_reduction <add>, %412, %cst_167 [1] : vector<8x8xf32> to vector<8xf32>
    %414 = vector.shape_cast %413 : vector<8xf32> to vector<8x1xf32>
    %415 = tpu.reciprocal %414 {approx = true} : vector<8x1xf32> -> vector<8x1xf32>
    %416 = vector.broadcast %415 : vector<8x1xf32> to vector<8x8xf32>
    %417 = arith.mulf %412, %416 : vector<8x8xf32>
    %cst_168 = arith.constant dense<0.000000e+00> : vector<8x8xf32>
    %418 = tpu.matmul %417, %404, %cst_168 {dimension_numbers = #tpu.dot_dimension_numbers<[1], [0], [0], [1], [0, 0, 1, 1], [], []>} : vector<8x8xf32>, vector<8x8xf32>, vector<8x8xf32> -> vector<8x8xf32>
    %419 = vector.extract_strided_slice %365 {offsets = [0, 24], sizes = [8, 8], strides = [1, 1]} : vector<8x32xf32> to vector<8x8xf32>
    %420 = vector.extract_strided_slice %366 {offsets = [0, 24], sizes = [8, 8], strides = [1, 1]} : vector<8x32xf32> to vector<8x8xf32>
    %421 = vector.extract_strided_slice %367 {offsets = [0, 24], sizes = [8, 8], strides = [1, 1]} : vector<8x32xf32> to vector<8x8xf32>
    %cst_169 = arith.constant dense<0.000000e+00> : vector<8x8xf32>
    %422 = tpu.matmul %419, %420, %cst_169 {dimension_numbers = #tpu.dot_dimension_numbers<[1], [1], [0], [0], [0, 0, 1, 0], [], []>} : vector<8x8xf32>, vector<8x8xf32>, vector<8x8xf32> -> vector<8x8xf32>
    %cst_170 = arith.constant -1.000000e+09 : f32
    %423 = vector.broadcast %cst_170 : f32 to vector<8x8xf32>
    %424 = arith.select %357, %422, %423 : vector<8x8xi1>, vector<8x8xf32>
    %cst_171 = arith.constant dense<0xFF800000> : vector<8xf32>
    %425 = vector.multi_reduction <maximumf>, %424, %cst_171 [1] : vector<8x8xf32> to vector<8xf32>
    %426 = vector.shape_cast %425 : vector<8xf32> to vector<8x1xf32>
    %427 = vector.broadcast %426 : vector<8x1xf32> to vector<8x8xf32>
    %428 = arith.subf %424, %427 : vector<8x8xf32>
    %429 = math.exp %428 : vector<8x8xf32>
    %cst_172 = arith.constant dense<0.000000e+00> : vector<8xf32>
    %430 = vector.multi_reduction <add>, %429, %cst_172 [1] : vector<8x8xf32> to vector<8xf32>
    %431 = vector.shape_cast %430 : vector<8xf32> to vector<8x1xf32>
    %432 = tpu.reciprocal %431 {approx = true} : vector<8x1xf32> -> vector<8x1xf32>
    %433 = vector.broadcast %432 : vector<8x1xf32> to vector<8x8xf32>
    %434 = arith.mulf %429, %433 : vector<8x8xf32>
    %cst_173 = arith.constant dense<0.000000e+00> : vector<8x8xf32>
    %435 = tpu.matmul %434, %421, %cst_173 {dimension_numbers = #tpu.dot_dimension_numbers<[1], [0], [0], [1], [0, 0, 1, 1], [], []>} : vector<8x8xf32>, vector<8x8xf32>, vector<8x8xf32> -> vector<8x8xf32>
    %436 = tpu.concatenate %384, %401, %418, %435 in 1 : vector<8x8xf32>, vector<8x8xf32>, vector<8x8xf32>, vector<8x8xf32> -> vector<8x32xf32>
    %cst_174 = arith.constant dense<0.000000e+00> : vector<8x32xf32>
    %437 = tpu.matmul %436, %361, %cst_174 {dimension_numbers = #tpu.dot_dimension_numbers<[1], [0], [0], [1], [0, 0, 1, 1], [], []>} : vector<8x32xf32>, vector<32x32xf32>, vector<8x32xf32> -> vector<8x32xf32>
    %438 = arith.addf %437, %348 : vector<8x32xf32>
    %439 = vector.extract_strided_slice %363 {offsets = [0, 0], sizes = [1, 32], strides = [1, 1]} : vector<2x32xf32> to vector<1x32xf32>
    %440 = vector.extract_strided_slice %363 {offsets = [1, 0], sizes = [1, 32], strides = [1, 1]} : vector<2x32xf32> to vector<1x32xf32>
    %cst_175 = arith.constant dense<0.000000e+00> : vector<8xf32>
    %441 = vector.multi_reduction <add>, %438, %cst_175 [1] : vector<8x32xf32> to vector<8xf32>
    %442 = vector.shape_cast %441 : vector<8xf32> to vector<8x1xf32>
    %cst_176 = arith.constant 3.200000e+01 : f32
    %443 = vector.broadcast %cst_176 : f32 to vector<8x1xf32>
    %444 = arith.divf %442, %443 : vector<8x1xf32>
    %445 = vector.broadcast %444 : vector<8x1xf32> to vector<8x32xf32>
    %446 = arith.subf %438, %445 : vector<8x32xf32>
    %447 = arith.mulf %446, %446 : vector<8x32xf32>
    %cst_177 = arith.constant dense<0.000000e+00> : vector<8xf32>
    %448 = vector.multi_reduction <add>, %447, %cst_177 [1] : vector<8x32xf32> to vector<8xf32>
    %449 = vector.shape_cast %448 : vector<8xf32> to vector<8x1xf32>
    %cst_178 = arith.constant 3.200000e+01 : f32
    %450 = vector.broadcast %cst_178 : f32 to vector<8x1xf32>
    %451 = arith.divf %449, %450 : vector<8x1xf32>
    %452 = vector.broadcast %444 : vector<8x1xf32> to vector<8x32xf32>
    %453 = arith.subf %438, %452 : vector<8x32xf32>
    %cst_179 = arith.constant 9.99999997E-7 : f32
    %454 = vector.broadcast %cst_179 : f32 to vector<8x1xf32>
    %455 = arith.addf %451, %454 : vector<8x1xf32>
    %456 = math.rsqrt %455 : vector<8x1xf32>
    %457 = vector.broadcast %456 : vector<8x1xf32> to vector<8x32xf32>
    %458 = arith.mulf %453, %457 : vector<8x32xf32>
    %459 = vector.broadcast %439 : vector<1x32xf32> to vector<8x32xf32>
    %460 = arith.mulf %458, %459 : vector<8x32xf32>
    %461 = vector.broadcast %440 : vector<1x32xf32> to vector<8x32xf32>
    %462 = arith.addf %460, %461 : vector<8x32xf32>
    %c0_180 = arith.constant 0 : index
    %c0_181 = arith.constant 0 : index
    %c0_182 = arith.constant 0 : index
    %463 = vector.load %arg20[%c0_180, %c0_181, %c0_182] : memref<2x32x32xf32, #tpu.memory_space<vmem>>, vector<1x32x32xf32>
    %464 = vector.shape_cast %463 : vector<1x32x32xf32> to vector<32x32xf32>
    %c0_183 = arith.constant 0 : index
    %c0_184 = arith.constant 0 : index
    %c0_185 = arith.constant 0 : index
    %465 = vector.load %arg21[%c0_183, %c0_184, %c0_185] : memref<2x32x64xf32, #tpu.memory_space<vmem>>, vector<1x32x64xf32>
    %466 = vector.shape_cast %465 : vector<1x32x64xf32> to vector<32x64xf32>
    %c0_186 = arith.constant 0 : index
    %c0_187 = arith.constant 0 : index
    %c0_188 = arith.constant 0 : index
    %467 = vector.load %arg22[%c0_186, %c0_187, %c0_188] : memref<2x32x32xf32, #tpu.memory_space<vmem>>, vector<1x32x32xf32>
    %468 = vector.shape_cast %467 : vector<1x32x32xf32> to vector<32x32xf32>
    %c0_189 = arith.constant 0 : index
    %c0_190 = arith.constant 0 : index
    %c0_191 = arith.constant 0 : index
    %469 = vector.load %arg23[%c0_189, %c0_190, %c0_191] : memref<2x2x32xf32, #tpu.memory_space<vmem>>, vector<1x2x32xf32>
    %470 = vector.shape_cast %469 : vector<1x2x32xf32> to vector<2x32xf32>
    %cst_192 = arith.constant dense<0.000000e+00> : vector<8x32xf32>
    %471 = tpu.matmul %462, %464, %cst_192 {dimension_numbers = #tpu.dot_dimension_numbers<[1], [0], [0], [1], [0, 0, 1, 1], [], []>} : vector<8x32xf32>, vector<32x32xf32>, vector<8x32xf32> -> vector<8x32xf32>
    %cst_193 = arith.constant dense<0.000000e+00> : vector<8x64xf32>
    %472 = tpu.matmul %311, %466, %cst_193 {dimension_numbers = #tpu.dot_dimension_numbers<[1], [0], [0], [1], [0, 0, 1, 1], [], []>} : vector<8x32xf32>, vector<32x64xf32>, vector<8x64xf32> -> vector<8x64xf32>
    %473 = vector.extract_strided_slice %472 {offsets = [0, 0], sizes = [8, 32], strides = [1, 1]} : vector<8x64xf32> to vector<8x32xf32>
    %474 = vector.extract_strided_slice %472 {offsets = [0, 32], sizes = [8, 32], strides = [1, 1]} : vector<8x64xf32> to vector<8x32xf32>
    %475 = vector.extract_strided_slice %471 {offsets = [0, 0], sizes = [8, 8], strides = [1, 1]} : vector<8x32xf32> to vector<8x8xf32>
    %476 = vector.extract_strided_slice %473 {offsets = [0, 0], sizes = [8, 8], strides = [1, 1]} : vector<8x32xf32> to vector<8x8xf32>
    %477 = vector.extract_strided_slice %474 {offsets = [0, 0], sizes = [8, 8], strides = [1, 1]} : vector<8x32xf32> to vector<8x8xf32>
    %cst_194 = arith.constant dense<0.000000e+00> : vector<8x8xf32>
    %478 = tpu.matmul %475, %476, %cst_194 {dimension_numbers = #tpu.dot_dimension_numbers<[1], [1], [0], [0], [0, 0, 1, 0], [], []>} : vector<8x8xf32>, vector<8x8xf32>, vector<8x8xf32> -> vector<8x8xf32>
    %cst_195 = arith.constant dense<0xFF800000> : vector<8xf32>
    %479 = vector.multi_reduction <maximumf>, %478, %cst_195 [1] : vector<8x8xf32> to vector<8xf32>
    %480 = vector.shape_cast %479 : vector<8xf32> to vector<8x1xf32>
    %481 = vector.broadcast %480 : vector<8x1xf32> to vector<8x8xf32>
    %482 = arith.subf %478, %481 : vector<8x8xf32>
    %483 = math.exp %482 : vector<8x8xf32>
    %cst_196 = arith.constant dense<0.000000e+00> : vector<8xf32>
    %484 = vector.multi_reduction <add>, %483, %cst_196 [1] : vector<8x8xf32> to vector<8xf32>
    %485 = vector.shape_cast %484 : vector<8xf32> to vector<8x1xf32>
    %486 = tpu.reciprocal %485 {approx = true} : vector<8x1xf32> -> vector<8x1xf32>
    %487 = vector.broadcast %486 : vector<8x1xf32> to vector<8x8xf32>
    %488 = arith.mulf %483, %487 : vector<8x8xf32>
    %cst_197 = arith.constant dense<0.000000e+00> : vector<8x8xf32>
    %489 = tpu.matmul %488, %477, %cst_197 {dimension_numbers = #tpu.dot_dimension_numbers<[1], [0], [0], [1], [0, 0, 1, 1], [], []>} : vector<8x8xf32>, vector<8x8xf32>, vector<8x8xf32> -> vector<8x8xf32>
    %490 = vector.extract_strided_slice %471 {offsets = [0, 8], sizes = [8, 8], strides = [1, 1]} : vector<8x32xf32> to vector<8x8xf32>
    %491 = vector.extract_strided_slice %473 {offsets = [0, 8], sizes = [8, 8], strides = [1, 1]} : vector<8x32xf32> to vector<8x8xf32>
    %492 = vector.extract_strided_slice %474 {offsets = [0, 8], sizes = [8, 8], strides = [1, 1]} : vector<8x32xf32> to vector<8x8xf32>
    %cst_198 = arith.constant dense<0.000000e+00> : vector<8x8xf32>
    %493 = tpu.matmul %490, %491, %cst_198 {dimension_numbers = #tpu.dot_dimension_numbers<[1], [1], [0], [0], [0, 0, 1, 0], [], []>} : vector<8x8xf32>, vector<8x8xf32>, vector<8x8xf32> -> vector<8x8xf32>
    %cst_199 = arith.constant dense<0xFF800000> : vector<8xf32>
    %494 = vector.multi_reduction <maximumf>, %493, %cst_199 [1] : vector<8x8xf32> to vector<8xf32>
    %495 = vector.shape_cast %494 : vector<8xf32> to vector<8x1xf32>
    %496 = vector.broadcast %495 : vector<8x1xf32> to vector<8x8xf32>
    %497 = arith.subf %493, %496 : vector<8x8xf32>
    %498 = math.exp %497 : vector<8x8xf32>
    %cst_200 = arith.constant dense<0.000000e+00> : vector<8xf32>
    %499 = vector.multi_reduction <add>, %498, %cst_200 [1] : vector<8x8xf32> to vector<8xf32>
    %500 = vector.shape_cast %499 : vector<8xf32> to vector<8x1xf32>
    %501 = tpu.reciprocal %500 {approx = true} : vector<8x1xf32> -> vector<8x1xf32>
    %502 = vector.broadcast %501 : vector<8x1xf32> to vector<8x8xf32>
    %503 = arith.mulf %498, %502 : vector<8x8xf32>
    %cst_201 = arith.constant dense<0.000000e+00> : vector<8x8xf32>
    %504 = tpu.matmul %503, %492, %cst_201 {dimension_numbers = #tpu.dot_dimension_numbers<[1], [0], [0], [1], [0, 0, 1, 1], [], []>} : vector<8x8xf32>, vector<8x8xf32>, vector<8x8xf32> -> vector<8x8xf32>
    %505 = vector.extract_strided_slice %471 {offsets = [0, 16], sizes = [8, 8], strides = [1, 1]} : vector<8x32xf32> to vector<8x8xf32>
    %506 = vector.extract_strided_slice %473 {offsets = [0, 16], sizes = [8, 8], strides = [1, 1]} : vector<8x32xf32> to vector<8x8xf32>
    %507 = vector.extract_strided_slice %474 {offsets = [0, 16], sizes = [8, 8], strides = [1, 1]} : vector<8x32xf32> to vector<8x8xf32>
    %cst_202 = arith.constant dense<0.000000e+00> : vector<8x8xf32>
    %508 = tpu.matmul %505, %506, %cst_202 {dimension_numbers = #tpu.dot_dimension_numbers<[1], [1], [0], [0], [0, 0, 1, 0], [], []>} : vector<8x8xf32>, vector<8x8xf32>, vector<8x8xf32> -> vector<8x8xf32>
    %cst_203 = arith.constant dense<0xFF800000> : vector<8xf32>
    %509 = vector.multi_reduction <maximumf>, %508, %cst_203 [1] : vector<8x8xf32> to vector<8xf32>
    %510 = vector.shape_cast %509 : vector<8xf32> to vector<8x1xf32>
    %511 = vector.broadcast %510 : vector<8x1xf32> to vector<8x8xf32>
    %512 = arith.subf %508, %511 : vector<8x8xf32>
    %513 = math.exp %512 : vector<8x8xf32>
    %cst_204 = arith.constant dense<0.000000e+00> : vector<8xf32>
    %514 = vector.multi_reduction <add>, %513, %cst_204 [1] : vector<8x8xf32> to vector<8xf32>
    %515 = vector.shape_cast %514 : vector<8xf32> to vector<8x1xf32>
    %516 = tpu.reciprocal %515 {approx = true} : vector<8x1xf32> -> vector<8x1xf32>
    %517 = vector.broadcast %516 : vector<8x1xf32> to vector<8x8xf32>
    %518 = arith.mulf %513, %517 : vector<8x8xf32>
    %cst_205 = arith.constant dense<0.000000e+00> : vector<8x8xf32>
    %519 = tpu.matmul %518, %507, %cst_205 {dimension_numbers = #tpu.dot_dimension_numbers<[1], [0], [0], [1], [0, 0, 1, 1], [], []>} : vector<8x8xf32>, vector<8x8xf32>, vector<8x8xf32> -> vector<8x8xf32>
    %520 = vector.extract_strided_slice %471 {offsets = [0, 24], sizes = [8, 8], strides = [1, 1]} : vector<8x32xf32> to vector<8x8xf32>
    %521 = vector.extract_strided_slice %473 {offsets = [0, 24], sizes = [8, 8], strides = [1, 1]} : vector<8x32xf32> to vector<8x8xf32>
    %522 = vector.extract_strided_slice %474 {offsets = [0, 24], sizes = [8, 8], strides = [1, 1]} : vector<8x32xf32> to vector<8x8xf32>
    %cst_206 = arith.constant dense<0.000000e+00> : vector<8x8xf32>
    %523 = tpu.matmul %520, %521, %cst_206 {dimension_numbers = #tpu.dot_dimension_numbers<[1], [1], [0], [0], [0, 0, 1, 0], [], []>} : vector<8x8xf32>, vector<8x8xf32>, vector<8x8xf32> -> vector<8x8xf32>
    %cst_207 = arith.constant dense<0xFF800000> : vector<8xf32>
    %524 = vector.multi_reduction <maximumf>, %523, %cst_207 [1] : vector<8x8xf32> to vector<8xf32>
    %525 = vector.shape_cast %524 : vector<8xf32> to vector<8x1xf32>
    %526 = vector.broadcast %525 : vector<8x1xf32> to vector<8x8xf32>
    %527 = arith.subf %523, %526 : vector<8x8xf32>
    %528 = math.exp %527 : vector<8x8xf32>
    %cst_208 = arith.constant dense<0.000000e+00> : vector<8xf32>
    %529 = vector.multi_reduction <add>, %528, %cst_208 [1] : vector<8x8xf32> to vector<8xf32>
    %530 = vector.shape_cast %529 : vector<8xf32> to vector<8x1xf32>
    %531 = tpu.reciprocal %530 {approx = true} : vector<8x1xf32> -> vector<8x1xf32>
    %532 = vector.broadcast %531 : vector<8x1xf32> to vector<8x8xf32>
    %533 = arith.mulf %528, %532 : vector<8x8xf32>
    %cst_209 = arith.constant dense<0.000000e+00> : vector<8x8xf32>
    %534 = tpu.matmul %533, %522, %cst_209 {dimension_numbers = #tpu.dot_dimension_numbers<[1], [0], [0], [1], [0, 0, 1, 1], [], []>} : vector<8x8xf32>, vector<8x8xf32>, vector<8x8xf32> -> vector<8x8xf32>
    %535 = tpu.concatenate %489, %504, %519, %534 in 1 : vector<8x8xf32>, vector<8x8xf32>, vector<8x8xf32>, vector<8x8xf32> -> vector<8x32xf32>
    %cst_210 = arith.constant dense<0.000000e+00> : vector<8x32xf32>
    %536 = tpu.matmul %535, %468, %cst_210 {dimension_numbers = #tpu.dot_dimension_numbers<[1], [0], [0], [1], [0, 0, 1, 1], [], []>} : vector<8x32xf32>, vector<32x32xf32>, vector<8x32xf32> -> vector<8x32xf32>
    %537 = arith.addf %536, %462 : vector<8x32xf32>
    %538 = vector.extract_strided_slice %470 {offsets = [0, 0], sizes = [1, 32], strides = [1, 1]} : vector<2x32xf32> to vector<1x32xf32>
    %539 = vector.extract_strided_slice %470 {offsets = [1, 0], sizes = [1, 32], strides = [1, 1]} : vector<2x32xf32> to vector<1x32xf32>
    %cst_211 = arith.constant dense<0.000000e+00> : vector<8xf32>
    %540 = vector.multi_reduction <add>, %537, %cst_211 [1] : vector<8x32xf32> to vector<8xf32>
    %541 = vector.shape_cast %540 : vector<8xf32> to vector<8x1xf32>
    %cst_212 = arith.constant 3.200000e+01 : f32
    %542 = vector.broadcast %cst_212 : f32 to vector<8x1xf32>
    %543 = arith.divf %541, %542 : vector<8x1xf32>
    %544 = vector.broadcast %543 : vector<8x1xf32> to vector<8x32xf32>
    %545 = arith.subf %537, %544 : vector<8x32xf32>
    %546 = arith.mulf %545, %545 : vector<8x32xf32>
    %cst_213 = arith.constant dense<0.000000e+00> : vector<8xf32>
    %547 = vector.multi_reduction <add>, %546, %cst_213 [1] : vector<8x32xf32> to vector<8xf32>
    %548 = vector.shape_cast %547 : vector<8xf32> to vector<8x1xf32>
    %cst_214 = arith.constant 3.200000e+01 : f32
    %549 = vector.broadcast %cst_214 : f32 to vector<8x1xf32>
    %550 = arith.divf %548, %549 : vector<8x1xf32>
    %551 = vector.broadcast %543 : vector<8x1xf32> to vector<8x32xf32>
    %552 = arith.subf %537, %551 : vector<8x32xf32>
    %cst_215 = arith.constant 9.99999997E-7 : f32
    %553 = vector.broadcast %cst_215 : f32 to vector<8x1xf32>
    %554 = arith.addf %550, %553 : vector<8x1xf32>
    %555 = math.rsqrt %554 : vector<8x1xf32>
    %556 = vector.broadcast %555 : vector<8x1xf32> to vector<8x32xf32>
    %557 = arith.mulf %552, %556 : vector<8x32xf32>
    %558 = vector.broadcast %538 : vector<1x32xf32> to vector<8x32xf32>
    %559 = arith.mulf %557, %558 : vector<8x32xf32>
    %560 = vector.broadcast %539 : vector<1x32xf32> to vector<8x32xf32>
    %561 = arith.addf %559, %560 : vector<8x32xf32>
    %c0_216 = arith.constant 0 : index
    %c0_217 = arith.constant 0 : index
    %c0_218 = arith.constant 0 : index
    %562 = vector.load %arg24[%c0_216, %c0_217, %c0_218] : memref<2x32x64xf32, #tpu.memory_space<vmem>>, vector<1x32x64xf32>
    %563 = vector.shape_cast %562 : vector<1x32x64xf32> to vector<32x64xf32>
    %c0_219 = arith.constant 0 : index
    %c0_220 = arith.constant 0 : index
    %c0_221 = arith.constant 0 : index
    %564 = vector.load %arg25[%c0_219, %c0_220, %c0_221] : memref<2x1x64xf32, #tpu.memory_space<vmem>>, vector<1x1x64xf32>
    %565 = vector.shape_cast %564 : vector<1x1x64xf32> to vector<1x64xf32>
    %c0_222 = arith.constant 0 : index
    %c0_223 = arith.constant 0 : index
    %c0_224 = arith.constant 0 : index
    %566 = vector.load %arg26[%c0_222, %c0_223, %c0_224] : memref<2x64x32xf32, #tpu.memory_space<vmem>>, vector<1x64x32xf32>
    %567 = vector.shape_cast %566 : vector<1x64x32xf32> to vector<64x32xf32>
    %c0_225 = arith.constant 0 : index
    %c0_226 = arith.constant 0 : index
    %c0_227 = arith.constant 0 : index
    %568 = vector.load %arg27[%c0_225, %c0_226, %c0_227] : memref<2x1x32xf32, #tpu.memory_space<vmem>>, vector<1x1x32xf32>
    %569 = vector.shape_cast %568 : vector<1x1x32xf32> to vector<1x32xf32>
    %c0_228 = arith.constant 0 : index
    %c0_229 = arith.constant 0 : index
    %c0_230 = arith.constant 0 : index
    %570 = vector.load %arg28[%c0_228, %c0_229, %c0_230] : memref<2x2x32xf32, #tpu.memory_space<vmem>>, vector<1x2x32xf32>
    %571 = vector.shape_cast %570 : vector<1x2x32xf32> to vector<2x32xf32>
    %cst_231 = arith.constant dense<0.000000e+00> : vector<8x64xf32>
    %572 = tpu.matmul %561, %563, %cst_231 {dimension_numbers = #tpu.dot_dimension_numbers<[1], [0], [0], [1], [0, 0, 1, 1], [], []>} : vector<8x32xf32>, vector<32x64xf32>, vector<8x64xf32> -> vector<8x64xf32>
    %573 = vector.broadcast %565 : vector<1x64xf32> to vector<8x64xf32>
    %574 = arith.addf %572, %573 : vector<8x64xf32>
    %cst_232 = arith.constant 0.000000e+00 : f32
    %575 = vector.broadcast %cst_232 : f32 to vector<8x64xf32>
    %576 = arith.maximumf %574, %575 : vector<8x64xf32>
    %cst_233 = arith.constant dense<0.000000e+00> : vector<8x32xf32>
    %577 = tpu.matmul %576, %567, %cst_233 {dimension_numbers = #tpu.dot_dimension_numbers<[1], [0], [0], [1], [0, 0, 1, 1], [], []>} : vector<8x64xf32>, vector<64x32xf32>, vector<8x32xf32> -> vector<8x32xf32>
    %578 = vector.broadcast %569 : vector<1x32xf32> to vector<8x32xf32>
    %579 = arith.addf %577, %578 : vector<8x32xf32>
    %580 = arith.addf %579, %561 : vector<8x32xf32>
    %581 = vector.extract_strided_slice %571 {offsets = [0, 0], sizes = [1, 32], strides = [1, 1]} : vector<2x32xf32> to vector<1x32xf32>
    %582 = vector.extract_strided_slice %571 {offsets = [1, 0], sizes = [1, 32], strides = [1, 1]} : vector<2x32xf32> to vector<1x32xf32>
    %cst_234 = arith.constant dense<0.000000e+00> : vector<8xf32>
    %583 = vector.multi_reduction <add>, %580, %cst_234 [1] : vector<8x32xf32> to vector<8xf32>
    %584 = vector.shape_cast %583 : vector<8xf32> to vector<8x1xf32>
    %cst_235 = arith.constant 3.200000e+01 : f32
    %585 = vector.broadcast %cst_235 : f32 to vector<8x1xf32>
    %586 = arith.divf %584, %585 : vector<8x1xf32>
    %587 = vector.broadcast %586 : vector<8x1xf32> to vector<8x32xf32>
    %588 = arith.subf %580, %587 : vector<8x32xf32>
    %589 = arith.mulf %588, %588 : vector<8x32xf32>
    %cst_236 = arith.constant dense<0.000000e+00> : vector<8xf32>
    %590 = vector.multi_reduction <add>, %589, %cst_236 [1] : vector<8x32xf32> to vector<8xf32>
    %591 = vector.shape_cast %590 : vector<8xf32> to vector<8x1xf32>
    %cst_237 = arith.constant 3.200000e+01 : f32
    %592 = vector.broadcast %cst_237 : f32 to vector<8x1xf32>
    %593 = arith.divf %591, %592 : vector<8x1xf32>
    %594 = vector.broadcast %586 : vector<8x1xf32> to vector<8x32xf32>
    %595 = arith.subf %580, %594 : vector<8x32xf32>
    %cst_238 = arith.constant 9.99999997E-7 : f32
    %596 = vector.broadcast %cst_238 : f32 to vector<8x1xf32>
    %597 = arith.addf %593, %596 : vector<8x1xf32>
    %598 = math.rsqrt %597 : vector<8x1xf32>
    %599 = vector.broadcast %598 : vector<8x1xf32> to vector<8x32xf32>
    %600 = arith.mulf %595, %599 : vector<8x32xf32>
    %601 = vector.broadcast %581 : vector<1x32xf32> to vector<8x32xf32>
    %602 = arith.mulf %600, %601 : vector<8x32xf32>
    %603 = vector.broadcast %582 : vector<1x32xf32> to vector<8x32xf32>
    %604 = arith.addf %602, %603 : vector<8x32xf32>
    %c1_239 = arith.constant 1 : index
    %c0_240 = arith.constant 0 : index
    %c0_241 = arith.constant 0 : index
    %605 = vector.load %arg17[%c1_239, %c0_240, %c0_241] : memref<2x32x96xf32, #tpu.memory_space<vmem>>, vector<1x32x96xf32>
    %606 = vector.shape_cast %605 : vector<1x32x96xf32> to vector<32x96xf32>
    %c1_242 = arith.constant 1 : index
    %c0_243 = arith.constant 0 : index
    %c0_244 = arith.constant 0 : index
    %607 = vector.load %arg18[%c1_242, %c0_243, %c0_244] : memref<2x32x32xf32, #tpu.memory_space<vmem>>, vector<1x32x32xf32>
    %608 = vector.shape_cast %607 : vector<1x32x32xf32> to vector<32x32xf32>
    %c1_245 = arith.constant 1 : index
    %c0_246 = arith.constant 0 : index
    %c0_247 = arith.constant 0 : index
    %609 = vector.load %arg19[%c1_245, %c0_246, %c0_247] : memref<2x2x32xf32, #tpu.memory_space<vmem>>, vector<1x2x32xf32>
    %610 = vector.shape_cast %609 : vector<1x2x32xf32> to vector<2x32xf32>
    %cst_248 = arith.constant dense<0.000000e+00> : vector<8x96xf32>
    %611 = tpu.matmul %604, %606, %cst_248 {dimension_numbers = #tpu.dot_dimension_numbers<[1], [0], [0], [1], [0, 0, 1, 1], [], []>} : vector<8x32xf32>, vector<32x96xf32>, vector<8x96xf32> -> vector<8x96xf32>
    %612 = vector.extract_strided_slice %611 {offsets = [0, 0], sizes = [8, 32], strides = [1, 1]} : vector<8x96xf32> to vector<8x32xf32>
    %613 = vector.extract_strided_slice %611 {offsets = [0, 32], sizes = [8, 32], strides = [1, 1]} : vector<8x96xf32> to vector<8x32xf32>
    %614 = vector.extract_strided_slice %611 {offsets = [0, 64], sizes = [8, 32], strides = [1, 1]} : vector<8x96xf32> to vector<8x32xf32>
    %615 = vector.extract_strided_slice %612 {offsets = [0, 0], sizes = [8, 8], strides = [1, 1]} : vector<8x32xf32> to vector<8x8xf32>
    %616 = vector.extract_strided_slice %613 {offsets = [0, 0], sizes = [8, 8], strides = [1, 1]} : vector<8x32xf32> to vector<8x8xf32>
    %617 = vector.extract_strided_slice %614 {offsets = [0, 0], sizes = [8, 8], strides = [1, 1]} : vector<8x32xf32> to vector<8x8xf32>
    %cst_249 = arith.constant dense<0.000000e+00> : vector<8x8xf32>
    %618 = tpu.matmul %615, %616, %cst_249 {dimension_numbers = #tpu.dot_dimension_numbers<[1], [1], [0], [0], [0, 0, 1, 0], [], []>} : vector<8x8xf32>, vector<8x8xf32>, vector<8x8xf32> -> vector<8x8xf32>
    %cst_250 = arith.constant -1.000000e+09 : f32
    %619 = vector.broadcast %cst_250 : f32 to vector<8x8xf32>
    %620 = arith.select %357, %618, %619 : vector<8x8xi1>, vector<8x8xf32>
    %cst_251 = arith.constant dense<0xFF800000> : vector<8xf32>
    %621 = vector.multi_reduction <maximumf>, %620, %cst_251 [1] : vector<8x8xf32> to vector<8xf32>
    %622 = vector.shape_cast %621 : vector<8xf32> to vector<8x1xf32>
    %623 = vector.broadcast %622 : vector<8x1xf32> to vector<8x8xf32>
    %624 = arith.subf %620, %623 : vector<8x8xf32>
    %625 = math.exp %624 : vector<8x8xf32>
    %cst_252 = arith.constant dense<0.000000e+00> : vector<8xf32>
    %626 = vector.multi_reduction <add>, %625, %cst_252 [1] : vector<8x8xf32> to vector<8xf32>
    %627 = vector.shape_cast %626 : vector<8xf32> to vector<8x1xf32>
    %628 = tpu.reciprocal %627 {approx = true} : vector<8x1xf32> -> vector<8x1xf32>
    %629 = vector.broadcast %628 : vector<8x1xf32> to vector<8x8xf32>
    %630 = arith.mulf %625, %629 : vector<8x8xf32>
    %cst_253 = arith.constant dense<0.000000e+00> : vector<8x8xf32>
    %631 = tpu.matmul %630, %617, %cst_253 {dimension_numbers = #tpu.dot_dimension_numbers<[1], [0], [0], [1], [0, 0, 1, 1], [], []>} : vector<8x8xf32>, vector<8x8xf32>, vector<8x8xf32> -> vector<8x8xf32>
    %632 = vector.extract_strided_slice %612 {offsets = [0, 8], sizes = [8, 8], strides = [1, 1]} : vector<8x32xf32> to vector<8x8xf32>
    %633 = vector.extract_strided_slice %613 {offsets = [0, 8], sizes = [8, 8], strides = [1, 1]} : vector<8x32xf32> to vector<8x8xf32>
    %634 = vector.extract_strided_slice %614 {offsets = [0, 8], sizes = [8, 8], strides = [1, 1]} : vector<8x32xf32> to vector<8x8xf32>
    %cst_254 = arith.constant dense<0.000000e+00> : vector<8x8xf32>
    %635 = tpu.matmul %632, %633, %cst_254 {dimension_numbers = #tpu.dot_dimension_numbers<[1], [1], [0], [0], [0, 0, 1, 0], [], []>} : vector<8x8xf32>, vector<8x8xf32>, vector<8x8xf32> -> vector<8x8xf32>
    %cst_255 = arith.constant -1.000000e+09 : f32
    %636 = vector.broadcast %cst_255 : f32 to vector<8x8xf32>
    %637 = arith.select %357, %635, %636 : vector<8x8xi1>, vector<8x8xf32>
    %cst_256 = arith.constant dense<0xFF800000> : vector<8xf32>
    %638 = vector.multi_reduction <maximumf>, %637, %cst_256 [1] : vector<8x8xf32> to vector<8xf32>
    %639 = vector.shape_cast %638 : vector<8xf32> to vector<8x1xf32>
    %640 = vector.broadcast %639 : vector<8x1xf32> to vector<8x8xf32>
    %641 = arith.subf %637, %640 : vector<8x8xf32>
    %642 = math.exp %641 : vector<8x8xf32>
    %cst_257 = arith.constant dense<0.000000e+00> : vector<8xf32>
    %643 = vector.multi_reduction <add>, %642, %cst_257 [1] : vector<8x8xf32> to vector<8xf32>
    %644 = vector.shape_cast %643 : vector<8xf32> to vector<8x1xf32>
    %645 = tpu.reciprocal %644 {approx = true} : vector<8x1xf32> -> vector<8x1xf32>
    %646 = vector.broadcast %645 : vector<8x1xf32> to vector<8x8xf32>
    %647 = arith.mulf %642, %646 : vector<8x8xf32>
    %cst_258 = arith.constant dense<0.000000e+00> : vector<8x8xf32>
    %648 = tpu.matmul %647, %634, %cst_258 {dimension_numbers = #tpu.dot_dimension_numbers<[1], [0], [0], [1], [0, 0, 1, 1], [], []>} : vector<8x8xf32>, vector<8x8xf32>, vector<8x8xf32> -> vector<8x8xf32>
    %649 = vector.extract_strided_slice %612 {offsets = [0, 16], sizes = [8, 8], strides = [1, 1]} : vector<8x32xf32> to vector<8x8xf32>
    %650 = vector.extract_strided_slice %613 {offsets = [0, 16], sizes = [8, 8], strides = [1, 1]} : vector<8x32xf32> to vector<8x8xf32>
    %651 = vector.extract_strided_slice %614 {offsets = [0, 16], sizes = [8, 8], strides = [1, 1]} : vector<8x32xf32> to vector<8x8xf32>
    %cst_259 = arith.constant dense<0.000000e+00> : vector<8x8xf32>
    %652 = tpu.matmul %649, %650, %cst_259 {dimension_numbers = #tpu.dot_dimension_numbers<[1], [1], [0], [0], [0, 0, 1, 0], [], []>} : vector<8x8xf32>, vector<8x8xf32>, vector<8x8xf32> -> vector<8x8xf32>
    %cst_260 = arith.constant -1.000000e+09 : f32
    %653 = vector.broadcast %cst_260 : f32 to vector<8x8xf32>
    %654 = arith.select %357, %652, %653 : vector<8x8xi1>, vector<8x8xf32>
    %cst_261 = arith.constant dense<0xFF800000> : vector<8xf32>
    %655 = vector.multi_reduction <maximumf>, %654, %cst_261 [1] : vector<8x8xf32> to vector<8xf32>
    %656 = vector.shape_cast %655 : vector<8xf32> to vector<8x1xf32>
    %657 = vector.broadcast %656 : vector<8x1xf32> to vector<8x8xf32>
    %658 = arith.subf %654, %657 : vector<8x8xf32>
    %659 = math.exp %658 : vector<8x8xf32>
    %cst_262 = arith.constant dense<0.000000e+00> : vector<8xf32>
    %660 = vector.multi_reduction <add>, %659, %cst_262 [1] : vector<8x8xf32> to vector<8xf32>
    %661 = vector.shape_cast %660 : vector<8xf32> to vector<8x1xf32>
    %662 = tpu.reciprocal %661 {approx = true} : vector<8x1xf32> -> vector<8x1xf32>
    %663 = vector.broadcast %662 : vector<8x1xf32> to vector<8x8xf32>
    %664 = arith.mulf %659, %663 : vector<8x8xf32>
    %cst_263 = arith.constant dense<0.000000e+00> : vector<8x8xf32>
    %665 = tpu.matmul %664, %651, %cst_263 {dimension_numbers = #tpu.dot_dimension_numbers<[1], [0], [0], [1], [0, 0, 1, 1], [], []>} : vector<8x8xf32>, vector<8x8xf32>, vector<8x8xf32> -> vector<8x8xf32>
    %666 = vector.extract_strided_slice %612 {offsets = [0, 24], sizes = [8, 8], strides = [1, 1]} : vector<8x32xf32> to vector<8x8xf32>
    %667 = vector.extract_strided_slice %613 {offsets = [0, 24], sizes = [8, 8], strides = [1, 1]} : vector<8x32xf32> to vector<8x8xf32>
    %668 = vector.extract_strided_slice %614 {offsets = [0, 24], sizes = [8, 8], strides = [1, 1]} : vector<8x32xf32> to vector<8x8xf32>
    %cst_264 = arith.constant dense<0.000000e+00> : vector<8x8xf32>
    %669 = tpu.matmul %666, %667, %cst_264 {dimension_numbers = #tpu.dot_dimension_numbers<[1], [1], [0], [0], [0, 0, 1, 0], [], []>} : vector<8x8xf32>, vector<8x8xf32>, vector<8x8xf32> -> vector<8x8xf32>
    %cst_265 = arith.constant -1.000000e+09 : f32
    %670 = vector.broadcast %cst_265 : f32 to vector<8x8xf32>
    %671 = arith.select %357, %669, %670 : vector<8x8xi1>, vector<8x8xf32>
    %cst_266 = arith.constant dense<0xFF800000> : vector<8xf32>
    %672 = vector.multi_reduction <maximumf>, %671, %cst_266 [1] : vector<8x8xf32> to vector<8xf32>
    %673 = vector.shape_cast %672 : vector<8xf32> to vector<8x1xf32>
    %674 = vector.broadcast %673 : vector<8x1xf32> to vector<8x8xf32>
    %675 = arith.subf %671, %674 : vector<8x8xf32>
    %676 = math.exp %675 : vector<8x8xf32>
    %cst_267 = arith.constant dense<0.000000e+00> : vector<8xf32>
    %677 = vector.multi_reduction <add>, %676, %cst_267 [1] : vector<8x8xf32> to vector<8xf32>
    %678 = vector.shape_cast %677 : vector<8xf32> to vector<8x1xf32>
    %679 = tpu.reciprocal %678 {approx = true} : vector<8x1xf32> -> vector<8x1xf32>
    %680 = vector.broadcast %679 : vector<8x1xf32> to vector<8x8xf32>
    %681 = arith.mulf %676, %680 : vector<8x8xf32>
    %cst_268 = arith.constant dense<0.000000e+00> : vector<8x8xf32>
    %682 = tpu.matmul %681, %668, %cst_268 {dimension_numbers = #tpu.dot_dimension_numbers<[1], [0], [0], [1], [0, 0, 1, 1], [], []>} : vector<8x8xf32>, vector<8x8xf32>, vector<8x8xf32> -> vector<8x8xf32>
    %683 = tpu.concatenate %631, %648, %665, %682 in 1 : vector<8x8xf32>, vector<8x8xf32>, vector<8x8xf32>, vector<8x8xf32> -> vector<8x32xf32>
    %cst_269 = arith.constant dense<0.000000e+00> : vector<8x32xf32>
    %684 = tpu.matmul %683, %608, %cst_269 {dimension_numbers = #tpu.dot_dimension_numbers<[1], [0], [0], [1], [0, 0, 1, 1], [], []>} : vector<8x32xf32>, vector<32x32xf32>, vector<8x32xf32> -> vector<8x32xf32>
    %685 = arith.addf %684, %604 : vector<8x32xf32>
    %686 = vector.extract_strided_slice %610 {offsets = [0, 0], sizes = [1, 32], strides = [1, 1]} : vector<2x32xf32> to vector<1x32xf32>
    %687 = vector.extract_strided_slice %610 {offsets = [1, 0], sizes = [1, 32], strides = [1, 1]} : vector<2x32xf32> to vector<1x32xf32>
    %cst_270 = arith.constant dense<0.000000e+00> : vector<8xf32>
    %688 = vector.multi_reduction <add>, %685, %cst_270 [1] : vector<8x32xf32> to vector<8xf32>
    %689 = vector.shape_cast %688 : vector<8xf32> to vector<8x1xf32>
    %cst_271 = arith.constant 3.200000e+01 : f32
    %690 = vector.broadcast %cst_271 : f32 to vector<8x1xf32>
    %691 = arith.divf %689, %690 : vector<8x1xf32>
    %692 = vector.broadcast %691 : vector<8x1xf32> to vector<8x32xf32>
    %693 = arith.subf %685, %692 : vector<8x32xf32>
    %694 = arith.mulf %693, %693 : vector<8x32xf32>
    %cst_272 = arith.constant dense<0.000000e+00> : vector<8xf32>
    %695 = vector.multi_reduction <add>, %694, %cst_272 [1] : vector<8x32xf32> to vector<8xf32>
    %696 = vector.shape_cast %695 : vector<8xf32> to vector<8x1xf32>
    %cst_273 = arith.constant 3.200000e+01 : f32
    %697 = vector.broadcast %cst_273 : f32 to vector<8x1xf32>
    %698 = arith.divf %696, %697 : vector<8x1xf32>
    %699 = vector.broadcast %691 : vector<8x1xf32> to vector<8x32xf32>
    %700 = arith.subf %685, %699 : vector<8x32xf32>
    %cst_274 = arith.constant 9.99999997E-7 : f32
    %701 = vector.broadcast %cst_274 : f32 to vector<8x1xf32>
    %702 = arith.addf %698, %701 : vector<8x1xf32>
    %703 = math.rsqrt %702 : vector<8x1xf32>
    %704 = vector.broadcast %703 : vector<8x1xf32> to vector<8x32xf32>
    %705 = arith.mulf %700, %704 : vector<8x32xf32>
    %706 = vector.broadcast %686 : vector<1x32xf32> to vector<8x32xf32>
    %707 = arith.mulf %705, %706 : vector<8x32xf32>
    %708 = vector.broadcast %687 : vector<1x32xf32> to vector<8x32xf32>
    %709 = arith.addf %707, %708 : vector<8x32xf32>
    %c1_275 = arith.constant 1 : index
    %c0_276 = arith.constant 0 : index
    %c0_277 = arith.constant 0 : index
    %710 = vector.load %arg20[%c1_275, %c0_276, %c0_277] : memref<2x32x32xf32, #tpu.memory_space<vmem>>, vector<1x32x32xf32>
    %711 = vector.shape_cast %710 : vector<1x32x32xf32> to vector<32x32xf32>
    %c1_278 = arith.constant 1 : index
    %c0_279 = arith.constant 0 : index
    %c0_280 = arith.constant 0 : index
    %712 = vector.load %arg21[%c1_278, %c0_279, %c0_280] : memref<2x32x64xf32, #tpu.memory_space<vmem>>, vector<1x32x64xf32>
    %713 = vector.shape_cast %712 : vector<1x32x64xf32> to vector<32x64xf32>
    %c1_281 = arith.constant 1 : index
    %c0_282 = arith.constant 0 : index
    %c0_283 = arith.constant 0 : index
    %714 = vector.load %arg22[%c1_281, %c0_282, %c0_283] : memref<2x32x32xf32, #tpu.memory_space<vmem>>, vector<1x32x32xf32>
    %715 = vector.shape_cast %714 : vector<1x32x32xf32> to vector<32x32xf32>
    %c1_284 = arith.constant 1 : index
    %c0_285 = arith.constant 0 : index
    %c0_286 = arith.constant 0 : index
    %716 = vector.load %arg23[%c1_284, %c0_285, %c0_286] : memref<2x2x32xf32, #tpu.memory_space<vmem>>, vector<1x2x32xf32>
    %717 = vector.shape_cast %716 : vector<1x2x32xf32> to vector<2x32xf32>
    %cst_287 = arith.constant dense<0.000000e+00> : vector<8x32xf32>
    %718 = tpu.matmul %709, %711, %cst_287 {dimension_numbers = #tpu.dot_dimension_numbers<[1], [0], [0], [1], [0, 0, 1, 1], [], []>} : vector<8x32xf32>, vector<32x32xf32>, vector<8x32xf32> -> vector<8x32xf32>
    %cst_288 = arith.constant dense<0.000000e+00> : vector<8x64xf32>
    %719 = tpu.matmul %311, %713, %cst_288 {dimension_numbers = #tpu.dot_dimension_numbers<[1], [0], [0], [1], [0, 0, 1, 1], [], []>} : vector<8x32xf32>, vector<32x64xf32>, vector<8x64xf32> -> vector<8x64xf32>
    %720 = vector.extract_strided_slice %719 {offsets = [0, 0], sizes = [8, 32], strides = [1, 1]} : vector<8x64xf32> to vector<8x32xf32>
    %721 = vector.extract_strided_slice %719 {offsets = [0, 32], sizes = [8, 32], strides = [1, 1]} : vector<8x64xf32> to vector<8x32xf32>
    %722 = vector.extract_strided_slice %718 {offsets = [0, 0], sizes = [8, 8], strides = [1, 1]} : vector<8x32xf32> to vector<8x8xf32>
    %723 = vector.extract_strided_slice %720 {offsets = [0, 0], sizes = [8, 8], strides = [1, 1]} : vector<8x32xf32> to vector<8x8xf32>
    %724 = vector.extract_strided_slice %721 {offsets = [0, 0], sizes = [8, 8], strides = [1, 1]} : vector<8x32xf32> to vector<8x8xf32>
    %cst_289 = arith.constant dense<0.000000e+00> : vector<8x8xf32>
    %725 = tpu.matmul %722, %723, %cst_289 {dimension_numbers = #tpu.dot_dimension_numbers<[1], [1], [0], [0], [0, 0, 1, 0], [], []>} : vector<8x8xf32>, vector<8x8xf32>, vector<8x8xf32> -> vector<8x8xf32>
    %cst_290 = arith.constant dense<0xFF800000> : vector<8xf32>
    %726 = vector.multi_reduction <maximumf>, %725, %cst_290 [1] : vector<8x8xf32> to vector<8xf32>
    %727 = vector.shape_cast %726 : vector<8xf32> to vector<8x1xf32>
    %728 = vector.broadcast %727 : vector<8x1xf32> to vector<8x8xf32>
    %729 = arith.subf %725, %728 : vector<8x8xf32>
    %730 = math.exp %729 : vector<8x8xf32>
    %cst_291 = arith.constant dense<0.000000e+00> : vector<8xf32>
    %731 = vector.multi_reduction <add>, %730, %cst_291 [1] : vector<8x8xf32> to vector<8xf32>
    %732 = vector.shape_cast %731 : vector<8xf32> to vector<8x1xf32>
    %733 = tpu.reciprocal %732 {approx = true} : vector<8x1xf32> -> vector<8x1xf32>
    %734 = vector.broadcast %733 : vector<8x1xf32> to vector<8x8xf32>
    %735 = arith.mulf %730, %734 : vector<8x8xf32>
    %cst_292 = arith.constant dense<0.000000e+00> : vector<8x8xf32>
    %736 = tpu.matmul %735, %724, %cst_292 {dimension_numbers = #tpu.dot_dimension_numbers<[1], [0], [0], [1], [0, 0, 1, 1], [], []>} : vector<8x8xf32>, vector<8x8xf32>, vector<8x8xf32> -> vector<8x8xf32>
    %737 = vector.extract_strided_slice %718 {offsets = [0, 8], sizes = [8, 8], strides = [1, 1]} : vector<8x32xf32> to vector<8x8xf32>
    %738 = vector.extract_strided_slice %720 {offsets = [0, 8], sizes = [8, 8], strides = [1, 1]} : vector<8x32xf32> to vector<8x8xf32>
    %739 = vector.extract_strided_slice %721 {offsets = [0, 8], sizes = [8, 8], strides = [1, 1]} : vector<8x32xf32> to vector<8x8xf32>
    %cst_293 = arith.constant dense<0.000000e+00> : vector<8x8xf32>
    %740 = tpu.matmul %737, %738, %cst_293 {dimension_numbers = #tpu.dot_dimension_numbers<[1], [1], [0], [0], [0, 0, 1, 0], [], []>} : vector<8x8xf32>, vector<8x8xf32>, vector<8x8xf32> -> vector<8x8xf32>
    %cst_294 = arith.constant dense<0xFF800000> : vector<8xf32>
    %741 = vector.multi_reduction <maximumf>, %740, %cst_294 [1] : vector<8x8xf32> to vector<8xf32>
    %742 = vector.shape_cast %741 : vector<8xf32> to vector<8x1xf32>
    %743 = vector.broadcast %742 : vector<8x1xf32> to vector<8x8xf32>
    %744 = arith.subf %740, %743 : vector<8x8xf32>
    %745 = math.exp %744 : vector<8x8xf32>
    %cst_295 = arith.constant dense<0.000000e+00> : vector<8xf32>
    %746 = vector.multi_reduction <add>, %745, %cst_295 [1] : vector<8x8xf32> to vector<8xf32>
    %747 = vector.shape_cast %746 : vector<8xf32> to vector<8x1xf32>
    %748 = tpu.reciprocal %747 {approx = true} : vector<8x1xf32> -> vector<8x1xf32>
    %749 = vector.broadcast %748 : vector<8x1xf32> to vector<8x8xf32>
    %750 = arith.mulf %745, %749 : vector<8x8xf32>
    %cst_296 = arith.constant dense<0.000000e+00> : vector<8x8xf32>
    %751 = tpu.matmul %750, %739, %cst_296 {dimension_numbers = #tpu.dot_dimension_numbers<[1], [0], [0], [1], [0, 0, 1, 1], [], []>} : vector<8x8xf32>, vector<8x8xf32>, vector<8x8xf32> -> vector<8x8xf32>
    %752 = vector.extract_strided_slice %718 {offsets = [0, 16], sizes = [8, 8], strides = [1, 1]} : vector<8x32xf32> to vector<8x8xf32>
    %753 = vector.extract_strided_slice %720 {offsets = [0, 16], sizes = [8, 8], strides = [1, 1]} : vector<8x32xf32> to vector<8x8xf32>
    %754 = vector.extract_strided_slice %721 {offsets = [0, 16], sizes = [8, 8], strides = [1, 1]} : vector<8x32xf32> to vector<8x8xf32>
    %cst_297 = arith.constant dense<0.000000e+00> : vector<8x8xf32>
    %755 = tpu.matmul %752, %753, %cst_297 {dimension_numbers = #tpu.dot_dimension_numbers<[1], [1], [0], [0], [0, 0, 1, 0], [], []>} : vector<8x8xf32>, vector<8x8xf32>, vector<8x8xf32> -> vector<8x8xf32>
    %cst_298 = arith.constant dense<0xFF800000> : vector<8xf32>
    %756 = vector.multi_reduction <maximumf>, %755, %cst_298 [1] : vector<8x8xf32> to vector<8xf32>
    %757 = vector.shape_cast %756 : vector<8xf32> to vector<8x1xf32>
    %758 = vector.broadcast %757 : vector<8x1xf32> to vector<8x8xf32>
    %759 = arith.subf %755, %758 : vector<8x8xf32>
    %760 = math.exp %759 : vector<8x8xf32>
    %cst_299 = arith.constant dense<0.000000e+00> : vector<8xf32>
    %761 = vector.multi_reduction <add>, %760, %cst_299 [1] : vector<8x8xf32> to vector<8xf32>
    %762 = vector.shape_cast %761 : vector<8xf32> to vector<8x1xf32>
    %763 = tpu.reciprocal %762 {approx = true} : vector<8x1xf32> -> vector<8x1xf32>
    %764 = vector.broadcast %763 : vector<8x1xf32> to vector<8x8xf32>
    %765 = arith.mulf %760, %764 : vector<8x8xf32>
    %cst_300 = arith.constant dense<0.000000e+00> : vector<8x8xf32>
    %766 = tpu.matmul %765, %754, %cst_300 {dimension_numbers = #tpu.dot_dimension_numbers<[1], [0], [0], [1], [0, 0, 1, 1], [], []>} : vector<8x8xf32>, vector<8x8xf32>, vector<8x8xf32> -> vector<8x8xf32>
    %767 = vector.extract_strided_slice %718 {offsets = [0, 24], sizes = [8, 8], strides = [1, 1]} : vector<8x32xf32> to vector<8x8xf32>
    %768 = vector.extract_strided_slice %720 {offsets = [0, 24], sizes = [8, 8], strides = [1, 1]} : vector<8x32xf32> to vector<8x8xf32>
    %769 = vector.extract_strided_slice %721 {offsets = [0, 24], sizes = [8, 8], strides = [1, 1]} : vector<8x32xf32> to vector<8x8xf32>
    %cst_301 = arith.constant dense<0.000000e+00> : vector<8x8xf32>
    %770 = tpu.matmul %767, %768, %cst_301 {dimension_numbers = #tpu.dot_dimension_numbers<[1], [1], [0], [0], [0, 0, 1, 0], [], []>} : vector<8x8xf32>, vector<8x8xf32>, vector<8x8xf32> -> vector<8x8xf32>
    %cst_302 = arith.constant dense<0xFF800000> : vector<8xf32>
    %771 = vector.multi_reduction <maximumf>, %770, %cst_302 [1] : vector<8x8xf32> to vector<8xf32>
    %772 = vector.shape_cast %771 : vector<8xf32> to vector<8x1xf32>
    %773 = vector.broadcast %772 : vector<8x1xf32> to vector<8x8xf32>
    %774 = arith.subf %770, %773 : vector<8x8xf32>
    %775 = math.exp %774 : vector<8x8xf32>
    %cst_303 = arith.constant dense<0.000000e+00> : vector<8xf32>
    %776 = vector.multi_reduction <add>, %775, %cst_303 [1] : vector<8x8xf32> to vector<8xf32>
    %777 = vector.shape_cast %776 : vector<8xf32> to vector<8x1xf32>
    %778 = tpu.reciprocal %777 {approx = true} : vector<8x1xf32> -> vector<8x1xf32>
    %779 = vector.broadcast %778 : vector<8x1xf32> to vector<8x8xf32>
    %780 = arith.mulf %775, %779 : vector<8x8xf32>
    %cst_304 = arith.constant dense<0.000000e+00> : vector<8x8xf32>
    %781 = tpu.matmul %780, %769, %cst_304 {dimension_numbers = #tpu.dot_dimension_numbers<[1], [0], [0], [1], [0, 0, 1, 1], [], []>} : vector<8x8xf32>, vector<8x8xf32>, vector<8x8xf32> -> vector<8x8xf32>
    %782 = tpu.concatenate %736, %751, %766, %781 in 1 : vector<8x8xf32>, vector<8x8xf32>, vector<8x8xf32>, vector<8x8xf32> -> vector<8x32xf32>
    %cst_305 = arith.constant dense<0.000000e+00> : vector<8x32xf32>
    %783 = tpu.matmul %782, %715, %cst_305 {dimension_numbers = #tpu.dot_dimension_numbers<[1], [0], [0], [1], [0, 0, 1, 1], [], []>} : vector<8x32xf32>, vector<32x32xf32>, vector<8x32xf32> -> vector<8x32xf32>
    %784 = arith.addf %783, %709 : vector<8x32xf32>
    %785 = vector.extract_strided_slice %717 {offsets = [0, 0], sizes = [1, 32], strides = [1, 1]} : vector<2x32xf32> to vector<1x32xf32>
    %786 = vector.extract_strided_slice %717 {offsets = [1, 0], sizes = [1, 32], strides = [1, 1]} : vector<2x32xf32> to vector<1x32xf32>
    %cst_306 = arith.constant dense<0.000000e+00> : vector<8xf32>
    %787 = vector.multi_reduction <add>, %784, %cst_306 [1] : vector<8x32xf32> to vector<8xf32>
    %788 = vector.shape_cast %787 : vector<8xf32> to vector<8x1xf32>
    %cst_307 = arith.constant 3.200000e+01 : f32
    %789 = vector.broadcast %cst_307 : f32 to vector<8x1xf32>
    %790 = arith.divf %788, %789 : vector<8x1xf32>
    %791 = vector.broadcast %790 : vector<8x1xf32> to vector<8x32xf32>
    %792 = arith.subf %784, %791 : vector<8x32xf32>
    %793 = arith.mulf %792, %792 : vector<8x32xf32>
    %cst_308 = arith.constant dense<0.000000e+00> : vector<8xf32>
    %794 = vector.multi_reduction <add>, %793, %cst_308 [1] : vector<8x32xf32> to vector<8xf32>
    %795 = vector.shape_cast %794 : vector<8xf32> to vector<8x1xf32>
    %cst_309 = arith.constant 3.200000e+01 : f32
    %796 = vector.broadcast %cst_309 : f32 to vector<8x1xf32>
    %797 = arith.divf %795, %796 : vector<8x1xf32>
    %798 = vector.broadcast %790 : vector<8x1xf32> to vector<8x32xf32>
    %799 = arith.subf %784, %798 : vector<8x32xf32>
    %cst_310 = arith.constant 9.99999997E-7 : f32
    %800 = vector.broadcast %cst_310 : f32 to vector<8x1xf32>
    %801 = arith.addf %797, %800 : vector<8x1xf32>
    %802 = math.rsqrt %801 : vector<8x1xf32>
    %803 = vector.broadcast %802 : vector<8x1xf32> to vector<8x32xf32>
    %804 = arith.mulf %799, %803 : vector<8x32xf32>
    %805 = vector.broadcast %785 : vector<1x32xf32> to vector<8x32xf32>
    %806 = arith.mulf %804, %805 : vector<8x32xf32>
    %807 = vector.broadcast %786 : vector<1x32xf32> to vector<8x32xf32>
    %808 = arith.addf %806, %807 : vector<8x32xf32>
    %c1_311 = arith.constant 1 : index
    %c0_312 = arith.constant 0 : index
    %c0_313 = arith.constant 0 : index
    %809 = vector.load %arg24[%c1_311, %c0_312, %c0_313] : memref<2x32x64xf32, #tpu.memory_space<vmem>>, vector<1x32x64xf32>
    %810 = vector.shape_cast %809 : vector<1x32x64xf32> to vector<32x64xf32>
    %c1_314 = arith.constant 1 : index
    %c0_315 = arith.constant 0 : index
    %c0_316 = arith.constant 0 : index
    %811 = vector.load %arg25[%c1_314, %c0_315, %c0_316] : memref<2x1x64xf32, #tpu.memory_space<vmem>>, vector<1x1x64xf32>
    %812 = vector.shape_cast %811 : vector<1x1x64xf32> to vector<1x64xf32>
    %c1_317 = arith.constant 1 : index
    %c0_318 = arith.constant 0 : index
    %c0_319 = arith.constant 0 : index
    %813 = vector.load %arg26[%c1_317, %c0_318, %c0_319] : memref<2x64x32xf32, #tpu.memory_space<vmem>>, vector<1x64x32xf32>
    %814 = vector.shape_cast %813 : vector<1x64x32xf32> to vector<64x32xf32>
    %c1_320 = arith.constant 1 : index
    %c0_321 = arith.constant 0 : index
    %c0_322 = arith.constant 0 : index
    %815 = vector.load %arg27[%c1_320, %c0_321, %c0_322] : memref<2x1x32xf32, #tpu.memory_space<vmem>>, vector<1x1x32xf32>
    %816 = vector.shape_cast %815 : vector<1x1x32xf32> to vector<1x32xf32>
    %c1_323 = arith.constant 1 : index
    %c0_324 = arith.constant 0 : index
    %c0_325 = arith.constant 0 : index
    %817 = vector.load %arg28[%c1_323, %c0_324, %c0_325] : memref<2x2x32xf32, #tpu.memory_space<vmem>>, vector<1x2x32xf32>
    %818 = vector.shape_cast %817 : vector<1x2x32xf32> to vector<2x32xf32>
    %cst_326 = arith.constant dense<0.000000e+00> : vector<8x64xf32>
    %819 = tpu.matmul %808, %810, %cst_326 {dimension_numbers = #tpu.dot_dimension_numbers<[1], [0], [0], [1], [0, 0, 1, 1], [], []>} : vector<8x32xf32>, vector<32x64xf32>, vector<8x64xf32> -> vector<8x64xf32>
    %820 = vector.broadcast %812 : vector<1x64xf32> to vector<8x64xf32>
    %821 = arith.addf %819, %820 : vector<8x64xf32>
    %cst_327 = arith.constant 0.000000e+00 : f32
    %822 = vector.broadcast %cst_327 : f32 to vector<8x64xf32>
    %823 = arith.maximumf %821, %822 : vector<8x64xf32>
    %cst_328 = arith.constant dense<0.000000e+00> : vector<8x32xf32>
    %824 = tpu.matmul %823, %814, %cst_328 {dimension_numbers = #tpu.dot_dimension_numbers<[1], [0], [0], [1], [0, 0, 1, 1], [], []>} : vector<8x64xf32>, vector<64x32xf32>, vector<8x32xf32> -> vector<8x32xf32>
    %825 = vector.broadcast %816 : vector<1x32xf32> to vector<8x32xf32>
    %826 = arith.addf %824, %825 : vector<8x32xf32>
    %827 = arith.addf %826, %808 : vector<8x32xf32>
    %828 = vector.extract_strided_slice %818 {offsets = [0, 0], sizes = [1, 32], strides = [1, 1]} : vector<2x32xf32> to vector<1x32xf32>
    %829 = vector.extract_strided_slice %818 {offsets = [1, 0], sizes = [1, 32], strides = [1, 1]} : vector<2x32xf32> to vector<1x32xf32>
    %cst_329 = arith.constant dense<0.000000e+00> : vector<8xf32>
    %830 = vector.multi_reduction <add>, %827, %cst_329 [1] : vector<8x32xf32> to vector<8xf32>
    %831 = vector.shape_cast %830 : vector<8xf32> to vector<8x1xf32>
    %cst_330 = arith.constant 3.200000e+01 : f32
    %832 = vector.broadcast %cst_330 : f32 to vector<8x1xf32>
    %833 = arith.divf %831, %832 : vector<8x1xf32>
    %834 = vector.broadcast %833 : vector<8x1xf32> to vector<8x32xf32>
    %835 = arith.subf %827, %834 : vector<8x32xf32>
    %836 = arith.mulf %835, %835 : vector<8x32xf32>
    %cst_331 = arith.constant dense<0.000000e+00> : vector<8xf32>
    %837 = vector.multi_reduction <add>, %836, %cst_331 [1] : vector<8x32xf32> to vector<8xf32>
    %838 = vector.shape_cast %837 : vector<8xf32> to vector<8x1xf32>
    %cst_332 = arith.constant 3.200000e+01 : f32
    %839 = vector.broadcast %cst_332 : f32 to vector<8x1xf32>
    %840 = arith.divf %838, %839 : vector<8x1xf32>
    %841 = vector.broadcast %833 : vector<8x1xf32> to vector<8x32xf32>
    %842 = arith.subf %827, %841 : vector<8x32xf32>
    %cst_333 = arith.constant 9.99999997E-7 : f32
    %843 = vector.broadcast %cst_333 : f32 to vector<8x1xf32>
    %844 = arith.addf %840, %843 : vector<8x1xf32>
    %845 = math.rsqrt %844 : vector<8x1xf32>
    %846 = vector.broadcast %845 : vector<8x1xf32> to vector<8x32xf32>
    %847 = arith.mulf %842, %846 : vector<8x32xf32>
    %848 = vector.broadcast %828 : vector<1x32xf32> to vector<8x32xf32>
    %849 = arith.mulf %847, %848 : vector<8x32xf32>
    %850 = vector.broadcast %829 : vector<1x32xf32> to vector<8x32xf32>
    %851 = arith.addf %849, %850 : vector<8x32xf32>
    %c0_334 = arith.constant 0 : index
    %c0_335 = arith.constant 0 : index
    %852 = vector.load %arg29[%c0_334, %c0_335] : memref<32x128xf32, #tpu.memory_space<vmem>>, vector<32x128xf32>
    %cst_336 = arith.constant dense<0.000000e+00> : vector<8x128xf32>
    %853 = tpu.matmul %851, %852, %cst_336 {dimension_numbers = #tpu.dot_dimension_numbers<[1], [0], [0], [1], [0, 0, 1, 1], [], []>} : vector<8x32xf32>, vector<32x128xf32>, vector<8x128xf32> -> vector<8x128xf32>
    %854 = vector.shape_cast %853 : vector<8x128xf32> to vector<1x8x128xf32>
    %c0_337 = arith.constant 0 : index
    %c0_338 = arith.constant 0 : index
    %c0_339 = arith.constant 0 : index
    %855 = vector.load %arg30[%c0_337, %c0_338, %c0_339] : memref<1x8x128xf32, #tpu.memory_space<vmem>>, vector<1x8x128xf32>
    tpu.vector_store %arg30[%c0_337, %c0_338, %c0_339], %854 {strides = array<i32>} : memref<1x8x128xf32, #tpu.memory_space<vmem>>, vector<1x8x128xf32>,
    return
  }
  func.func @transform_0(%arg0: i32) -> (i32, i32, i32) {
    %c0_i32 = arith.constant 0 : i32
    %c0_i32_0 = arith.constant 0 : i32
    %c0_i32_1 = arith.constant 0 : i32
    return %arg0, %c0_i32, %c0_i32_0 : i32, i32, i32
  }
  func.func @transform_1(%arg0: i32) -> (i32, i32, i32) {
    %c0_i32 = arith.constant 0 : i32
    %c0_i32_0 = arith.constant 0 : i32
    %c0_i32_1 = arith.constant 0 : i32
    return %arg0, %c0_i32, %c0_i32_0 : i32, i32, i32
  }
  func.func @transform_2(%arg0: i32) -> (i32, i32, i32) {
    %c0_i32 = arith.constant 0 : i32
    %c0_i32_0 = arith.constant 0 : i32
    %c0_i32_1 = arith.constant 0 : i32
    return %arg0, %c0_i32, %c0_i32_0 : i32, i32, i32
  }
  func.func @transform_3(%arg0: i32) -> (i32, i32, i32) {
    %c0_i32 = arith.constant 0 : i32
    %c0_i32_0 = arith.constant 0 : i32
    %c0_i32_1 = arith.constant 0 : i32
    return %arg0, %c0_i32, %c0_i32_0 : i32, i32, i32
  }
  func.func @transform_4(%arg0: i32) -> (i32, i32) {
    %c0_i32 = arith.constant 0 : i32
    %c0_i32_0 = arith.constant 0 : i32
    %c0_i32_1 = arith.constant 0 : i32
    return %c0_i32, %c0_i32_0 : i32, i32
  }
  func.func @transform_5(%arg0: i32) -> (i32, i32) {
    %c0_i32 = arith.constant 0 : i32
    %c0_i32_0 = arith.constant 0 : i32
    %c0_i32_1 = arith.constant 0 : i32
    return %c0_i32, %c0_i32_0 : i32, i32
  }
  func.func @transform_6(%arg0: i32) -> (i32, i32, i32) {
    %c0_i32 = arith.constant 0 : i32
    %c0_i32_0 = arith.constant 0 : i32
    %c0_i32_1 = arith.constant 0 : i32
    %c0_i32_2 = arith.constant 0 : i32
    return %c0_i32, %c0_i32_0, %c0_i32_1 : i32, i32, i32
  }
  func.func @transform_7(%arg0: i32) -> (i32, i32, i32) {
    %c0_i32 = arith.constant 0 : i32
    %c0_i32_0 = arith.constant 0 : i32
    %c0_i32_1 = arith.constant 0 : i32
    %c0_i32_2 = arith.constant 0 : i32
    return %c0_i32, %c0_i32_0, %c0_i32_1 : i32, i32, i32
  }
  func.func @transform_8(%arg0: i32) -> (i32, i32, i32) {
    %c0_i32 = arith.constant 0 : i32
    %c0_i32_0 = arith.constant 0 : i32
    %c0_i32_1 = arith.constant 0 : i32
    %c0_i32_2 = arith.constant 0 : i32
    return %c0_i32, %c0_i32_0, %c0_i32_1 : i32, i32, i32
  }
  func.func @transform_9(%arg0: i32) -> (i32, i32, i32) {
    %c0_i32 = arith.constant 0 : i32
    %c0_i32_0 = arith.constant 0 : i32
    %c0_i32_1 = arith.constant 0 : i32
    %c0_i32_2 = arith.constant 0 : i32
    return %c0_i32, %c0_i32_0, %c0_i32_1 : i32, i32, i32
  }
  func.func @transform_10(%arg0: i32) -> (i32, i32, i32) {
    %c0_i32 = arith.constant 0 : i32
    %c0_i32_0 = arith.constant 0 : i32
    %c0_i32_1 = arith.constant 0 : i32
    %c0_i32_2 = arith.constant 0 : i32
    return %c0_i32, %c0_i32_0, %c0_i32_1 : i32, i32, i32
  }
  func.func @transform_11(%arg0: i32) -> (i32, i32, i32) {
    %c0_i32 = arith.constant 0 : i32
    %c0_i32_0 = arith.constant 0 : i32
    %c0_i32_1 = arith.constant 0 : i32
    %c0_i32_2 = arith.constant 0 : i32
    return %c0_i32, %c0_i32_0, %c0_i32_1 : i32, i32, i32
  }
  func.func @transform_12(%arg0: i32) -> (i32, i32, i32) {
    %c0_i32 = arith.constant 0 : i32
    %c0_i32_0 = arith.constant 0 : i32
    %c0_i32_1 = arith.constant 0 : i32
    %c0_i32_2 = arith.constant 0 : i32
    return %c0_i32, %c0_i32_0, %c0_i32_1 : i32, i32, i32
  }
  func.func @transform_13(%arg0: i32) -> (i32, i32, i32) {
    %c0_i32 = arith.constant 0 : i32
    %c0_i32_0 = arith.constant 0 : i32
    %c0_i32_1 = arith.constant 0 : i32
    %c0_i32_2 = arith.constant 0 : i32
    return %c0_i32, %c0_i32_0, %c0_i32_1 : i32, i32, i32
  }
  func.func @transform_14(%arg0: i32) -> (i32, i32) {
    %c0_i32 = arith.constant 0 : i32
    %c0_i32_0 = arith.constant 0 : i32
    %c0_i32_1 = arith.constant 0 : i32
    return %c0_i32, %c0_i32_0 : i32, i32
  }
  func.func @transform_15(%arg0: i32) -> (i32, i32) {
    %c0_i32 = arith.constant 0 : i32
    %c0_i32_0 = arith.constant 0 : i32
    %c0_i32_1 = arith.constant 0 : i32
    return %c0_i32, %c0_i32_0 : i32, i32
  }
  func.func @transform_16(%arg0: i32) -> (i32, i32, i32) {
    %c0_i32 = arith.constant 0 : i32
    %c0_i32_0 = arith.constant 0 : i32
    %c0_i32_1 = arith.constant 0 : i32
    %c0_i32_2 = arith.constant 0 : i32
    return %c0_i32, %c0_i32_0, %c0_i32_1 : i32, i32, i32
  }
  func.func @transform_17(%arg0: i32) -> (i32, i32, i32) {
    %c0_i32 = arith.constant 0 : i32
    %c0_i32_0 = arith.constant 0 : i32
    %c0_i32_1 = arith.constant 0 : i32
    %c0_i32_2 = arith.constant 0 : i32
    return %c0_i32, %c0_i32_0, %c0_i32_1 : i32, i32, i32
  }
  func.func @transform_18(%arg0: i32) -> (i32, i32, i32) {
    %c0_i32 = arith.constant 0 : i32
    %c0_i32_0 = arith.constant 0 : i32
    %c0_i32_1 = arith.constant 0 : i32
    %c0_i32_2 = arith.constant 0 : i32
    return %c0_i32, %c0_i32_0, %c0_i32_1 : i32, i32, i32
  }
  func.func @transform_19(%arg0: i32) -> (i32, i32, i32) {
    %c0_i32 = arith.constant 0 : i32
    %c0_i32_0 = arith.constant 0 : i32
    %c0_i32_1 = arith.constant 0 : i32
    %c0_i32_2 = arith.constant 0 : i32
    return %c0_i32, %c0_i32_0, %c0_i32_1 : i32, i32, i32
  }
  func.func @transform_20(%arg0: i32) -> (i32, i32, i32) {
    %c0_i32 = arith.constant 0 : i32
    %c0_i32_0 = arith.constant 0 : i32
    %c0_i32_1 = arith.constant 0 : i32
    %c0_i32_2 = arith.constant 0 : i32
    return %c0_i32, %c0_i32_0, %c0_i32_1 : i32, i32, i32
  }
  func.func @transform_21(%arg0: i32) -> (i32, i32, i32) {
    %c0_i32 = arith.constant 0 : i32
    %c0_i32_0 = arith.constant 0 : i32
    %c0_i32_1 = arith.constant 0 : i32
    %c0_i32_2 = arith.constant 0 : i32
    return %c0_i32, %c0_i32_0, %c0_i32_1 : i32, i32, i32
  }
  func.func @transform_22(%arg0: i32) -> (i32, i32, i32) {
    %c0_i32 = arith.constant 0 : i32
    %c0_i32_0 = arith.constant 0 : i32
    %c0_i32_1 = arith.constant 0 : i32
    %c0_i32_2 = arith.constant 0 : i32
    return %c0_i32, %c0_i32_0, %c0_i32_1 : i32, i32, i32
  }
  func.func @transform_23(%arg0: i32) -> (i32, i32, i32) {
    %c0_i32 = arith.constant 0 : i32
    %c0_i32_0 = arith.constant 0 : i32
    %c0_i32_1 = arith.constant 0 : i32
    %c0_i32_2 = arith.constant 0 : i32
    return %c0_i32, %c0_i32_0, %c0_i32_1 : i32, i32, i32
  }
  func.func @transform_24(%arg0: i32) -> (i32, i32, i32) {
    %c0_i32 = arith.constant 0 : i32
    %c0_i32_0 = arith.constant 0 : i32
    %c0_i32_1 = arith.constant 0 : i32
    %c0_i32_2 = arith.constant 0 : i32
    return %c0_i32, %c0_i32_0, %c0_i32_1 : i32, i32, i32
  }
  func.func @transform_25(%arg0: i32) -> (i32, i32, i32) {
    %c0_i32 = arith.constant 0 : i32
    %c0_i32_0 = arith.constant 0 : i32
    %c0_i32_1 = arith.constant 0 : i32
    %c0_i32_2 = arith.constant 0 : i32
    return %c0_i32, %c0_i32_0, %c0_i32_1 : i32, i32, i32
  }
  func.func @transform_26(%arg0: i32) -> (i32, i32, i32) {
    %c0_i32 = arith.constant 0 : i32
    %c0_i32_0 = arith.constant 0 : i32
    %c0_i32_1 = arith.constant 0 : i32
    %c0_i32_2 = arith.constant 0 : i32
    return %c0_i32, %c0_i32_0, %c0_i32_1 : i32, i32, i32
  }
  func.func @transform_27(%arg0: i32) -> (i32, i32, i32) {
    %c0_i32 = arith.constant 0 : i32
    %c0_i32_0 = arith.constant 0 : i32
    %c0_i32_1 = arith.constant 0 : i32
    %c0_i32_2 = arith.constant 0 : i32
    return %c0_i32, %c0_i32_0, %c0_i32_1 : i32, i32, i32
  }
  func.func @transform_28(%arg0: i32) -> (i32, i32) {
    %c0_i32 = arith.constant 0 : i32
    %c0_i32_0 = arith.constant 0 : i32
    %c0_i32_1 = arith.constant 0 : i32
    return %c0_i32, %c0_i32_0 : i32, i32
  }
  func.func @transform_29(%arg0: i32) -> (i32, i32, i32) {
    %c0_i32 = arith.constant 0 : i32
    %c0_i32_0 = arith.constant 0 : i32
    %c0_i32_1 = arith.constant 0 : i32
    return %arg0, %c0_i32, %c0_i32_0 : i32, i32, i32
  }
}

</mosaic_0001>

<bundles_post_ra>
// kernel: transformer_forward.1
= control target key start
LH: loop header
LB: loop body
LE: loop exit
PB: predicated region body
PF: predicated region fallthrough
CT: control target
= control target key end

     0   :  { %s9658_s6 = smov 1   ;;  %s9659_s10 = smov 2   ;;  %s11061_s0 = inlined_call_operand.smem [shape: u32[30], index: -1, kind: input, shape index: {}] }
   0x1   :  { %s9731_s5 = sld [smem:[%s11061_s0]]   ;;  %s9660_s14 = smov 3  }
   0x2   :  { %s9736_s9 = sld [smem:[%s11061_s0 + %s9658_s6]]   ;;  %s9661_s18 = smov 4  }
   0x3   :  { %s9741_s13 = sld [smem:[%s11061_s0 + %s9659_s10]]   ;;  %s9662_s22 = smov 5  }
   0x4   :  { %s9746_s17 = sld [smem:[%s11061_s0 + %s9660_s14]]   ;;  %s9663_s26 = smov 6  }
   0x5   :  { %s9751_s21 = sld [smem:[%s11061_s0 + %s9661_s18]]   ;;  %s9664_s30 = smov 7  }
   0x6   :  { %s9756_s25 = sld [smem:[%s11061_s0 + %s9662_s22]]   ;;  %s9665_s4 = smov 8  }
   0x7   :  { %11133 = sst [smem:[#allocation28_spill]] %s9731_s5  ;;  %s9666_s10 = smov 9  }
   0x8   :  { %11134 = sst [smem:[#allocation29_spill]] %s9736_s9  ;;  %s9667_s15 = smov 10  }
   0x9   :  { %11135 = sst [smem:[#allocation30_spill]] %s9741_s13  ;;  %s9668_s20 = smov 11  }
   0xa   :  { %11136 = sst [smem:[#allocation31_spill]] %s9746_s17  ;;  %s9670_s1 = smov 13  }
   0xb   :  { %11137 = sst [smem:[#allocation32_spill]] %s9751_s21  ;;  %s9671_s7 = smov 14  }
   0xc   :  { %11138 = sst [smem:[#allocation33_spill]] %s9756_s25  ;;  %s9673_s22 = smov 16  }
   0xd   :  { %s9761_s29 = sld [smem:[%s11061_s0 + %s9663_s26]]   ;;  %s9669_s26 = smov 12  }
   0xe   :  { %s9766_s3 = sld [smem:[%s11061_s0 + %s9664_s30]]   ;;  %s9674_s28 = smov 17  }
   0xf   :  { %s9771_s8 = sld [smem:[%s11061_s0 + %s9665_s4]]  }
  0x10   :  { %s9776_s14 = sld [smem:[%s11061_s0 + %s9666_s10]]  }
  0x11   :  { %s9781_s19 = sld [smem:[%s11061_s0 + %s9667_s15]]   ;;  %s9672_s15 = smov 15  }
  0x12   :  { %s9786_s24 = sld [smem:[%s11061_s0 + %s9668_s20]]  }
  0x13   :  { %11139 = sst [smem:[#allocation34_spill]] %s9761_s29 }
  0x14   :  { %11140 = sst [smem:[#allocation35_spill]] %s9766_s3 }
  0x15   :  { %11141 = sst [smem:[#allocation36_spill]] %s9771_s8 }
  0x16   :  { %11142 = sst [smem:[#allocation37_spill]] %s9776_s14 }
  0x17   :  { %11143 = sst [smem:[#allocation38_spill]] %s9781_s19 }
  0x18   :  { %11144 = sst [smem:[#allocation39_spill]] %s9786_s24 }
  0x19   :  { %s9791_s30 = sld [smem:[%s11061_s0 + %s9669_s26]]  }
  0x1a   :  { %s9796_s6 = sld [smem:[%s11061_s0 + %s9670_s1]]  }
  0x1b   :  { %s9801_s12 = sld [smem:[%s11061_s0 + %s9671_s7]]   ;;  %s9675_s7 = smov 18  }
  0x1c   :  { %s9806_s20 = sld [smem:[%s11061_s0 + %s9672_s15]]   ;;  %s9676_s15 = smov 19  }
  0x1d   :  { %s9811_s27 = sld [smem:[%s11061_s0 + %s9673_s22]]   ;;  %s9677_s22 = smov 20  }
  0x1e   :  { %s9816_s4 = sld [smem:[%s11061_s0 + %s9674_s28]]   ;;  %s9678_s28 = smov 21  }
  0x1f   :  { %s9821_s9 = sld [smem:[%s11061_s0 + %s9675_s7]]   ;;  %s9679_s7 = smov 22  }
  0x20   :  { %11145 = sst [smem:[#allocation40_spill]] %s9796_s6 }
  0x21   :  { %11146 = sst [smem:[#allocation41_spill]] %s9801_s12 }
  0x22   :  { %11147 = sst [smem:[#allocation42_spill]] %s9806_s20 }
  0x23   :  { %11148 = sst [smem:[#allocation43_spill]] %s9811_s27 }
  0x24   :  { %11149 = sst [smem:[#allocation44_spill]] %s9816_s4 }
  0x25   :  { %11150 = sst [smem:[#allocation45_spill]] %s9821_s9 }
  0x26   :  { %s9826_s12 = sld [smem:[%s11061_s0 + %s9676_s15]]   ;;  %s9680_s15 = smov 23  }
  0x27   :  { %s9831_s27 = sld [smem:[%s11061_s0 + %s9677_s22]]   ;;  %s9681_s22 = smov 24  }
  0x28   :  { %s9836_s4 = sld [smem:[%s11061_s0 + %s9678_s28]]   ;;  %s9682_s28 = smov 25  }
  0x29   :  { %s9841_s13 = sld [smem:[%s11061_s0 + %s9679_s7]]   ;;  %s9683_s7 = smov 26  }
  0x2a   :  { %s9861_s8 = sld [smem:[%s11061_s0 + %s9683_s7]]  }
  0x2c   :  { %11151 = sst [smem:[#allocation46_spill]] %s9826_s12 }
  0x2d   :  { %11152 = sst [smem:[#allocation47_spill]] %s9831_s27 }
  0x2e   :  { %11153 = sst [smem:[#allocation48_spill]] %s9836_s4 }
  0x2f   :  { %11154 = sst [smem:[#allocation49_spill]] %s9841_s13 }
  0x30   :  { %s9846_s12 = sld [smem:[%s11061_s0 + %s9680_s15]]   ;;  %s9684_s15 = smov 27  }
  0x31   :  { %s9851_s27 = sld [smem:[%s11061_s0 + %s9681_s22]]   ;;  %s9685_s22 = smov 28  }
  0x32   :  { %s9856_s4 = sld [smem:[%s11061_s0 + %s9682_s28]]   ;;  %s9686_s28 = smov 29  }
  0x33   :  { %11158 = sst [smem:[#allocation53_spill]] %s9861_s8 }
  0x34   :  { %s9866_s24 = sld [smem:[%s11061_s0 + %s9684_s15]]  }
  0x35   :  { %s9871_s14 = sld [smem:[%s11061_s0 + %s9685_s22]]  }
  0x36   :  { %11155 = sst [smem:[#allocation50_spill]] %s9846_s12 }
  0x37   :  { %11156 = sst [smem:[#allocation51_spill]] %s9851_s27 }
  0x38   :  { %11157 = sst [smem:[#allocation52_spill]] %s9856_s4 }
  0x39   :  { %s9876_s4 = sld [smem:[%s11061_s0 + %s9686_s28]]  }
  0x3a   :  { %11159 = sst [smem:[#allocation54_spill]] %s9866_s24 }
  0x3b   :  { %11160 = sst [smem:[#allocation55_spill]] %s9871_s14 }
  0x3f   :  { %11161 = sst [smem:[#allocation56_spill]] %s9876_s4 }
  0x40   :  { %64 = vsyncpa [#allocation3], 0 }
  0x41   :  { %66 = vsyncpa [#allocation3 + $0x1], 0 }
  0x42   :  { %67 = vsyncpa [#allocation6], 0 }
  0x43   :  { %68 = vsyncpa [#allocation9], 0 }
  0x44   :  { %69 = vsyncpa [#allocation12], 0 }
  0x45   :  { %70 = vsyncpa [#allocation15], 0 }
  0x46   :  { %71 = vsyncpa [#allocation18], 0 }
  0x47   :  { %72 = vsyncpa [#allocation4], 0 }
  0x48   :  { %74 = vsyncpa [#allocation4 + $0x1], 0  ;;  %s9878_s7 = smov 0   ;;  %s9880_s10 = smov 0  }
  0x49   :  { %s9882_s11 = smov 0   ;;  %s9884_s15 = smov 0  }
  0x4a LB: > { %s11162_s29 = sld [smem:[#allocation34_spill]]  ;;  %s11163_s27 = sld [smem:[#allocation51_spill]]  ;;  %s9648_s10 = sphi %s9880_s10, %s11237_s10   ;;  %s9644_s7 = sphi %s9878_s7, %s11236_s7   ;;  %s9656_s15 = sphi %s9884_s15, %s11239_s15   ;;  %s9652_s11 = sphi %s9882_s11, %s11238_s11  }
  0x4b   : > { %s11164_s25 = sld [smem:[#allocation33_spill]]  ;;  %s11165_s24 = sld [smem:[#allocation54_spill]] }
  0x4c   : > { %s11166_s21 = sld [smem:[#allocation32_spill]]  ;;  %s11167_s20 = sld [smem:[#allocation42_spill]] }
  0x4d   : > { %s11168_s3 = sld [smem:[#allocation35_spill]]  ;;  %s11169_s5 = sld [smem:[#allocation28_spill]] }
  0x4e   : > { %s11170_s19 = sld [smem:[#allocation38_spill]]  ;;  %s11171_s13 = sld [smem:[#allocation49_spill]] }
  0x4f   : > { %s11172_s12 = sld [smem:[#allocation50_spill]]  ;;  %s11173_s8 = sld [smem:[#allocation53_spill]] }
  0x50   : > { %s11174_s9 = sld [smem:[#allocation45_spill]]  ;;  %s11175_s6 = sld [smem:[#allocation40_spill]] }
  0x51   : > { %s9687_s0 = smov [#allocation5]   ;;  %s9899_s18 = sadd.s32 4294967295, %s9656_s15  }
  0x52   : > { %s770_s16 = sshll.u32 %s9687_s0, 4  ;;  %p7757_p0 = scmp.ge.s32.totalorder %s9656_s15, 1  ;;  %s9904_s16 = int_to_ptr.vmem [resolvable:$true] %s770_s16 }
  0x53   : > { %p11073_p1 = scmp.eq.s32.totalorder %s9899_s18, 0  ;;  %p740_p2 = scmp.lt.s32.totalorder %s9656_s15, 3 }
  0x54   : > { %s9688_s23 = smov [#allocation8]   ;;  %s9689_s1 = smov [#allocation11]  }
  0x55   : > { %p9906_p3 = pnand %p7757_p0, %p740_p2  ;;  %s799_s26 = sshll.u32 %s9688_s23, 4  ;;  %s9919_s26 = int_to_ptr.vmem [resolvable:$true] %s799_s26 }
  0x56   : > { %s9921_s2 = sshll.u32 %s9689_s1, 4  ;;  %s9260_s0 = scalar_lea.hbm %s11170_s19, 32  ;;  %s833_s2 = int_to_ptr.vmem [resolvable:$true] %s9921_s2 }
  0x57   : > { %s11176_s22 = scalar_select %p9906_p3, 1, 0 }
  0x58   : > { %p8982_p5 = pneg %p9906_p3  ;;  %p9261_p7 = scmp.ne.s32.totalorder %s11170_s19, %s9260_s0 }
  0x59   : > { %p9267_p11 = scmp.lt.u32.totalorder %s9260_s0, %s11170_s19 }
  0x5a   : > { %p9915_p6 = pnand %p8982_p5, %p11073_p1 }
  0x5c   : > { %p9927_p8 = pneg %p9915_p6 }
  0x5e   : > { %p9263_p9 = pnand %p9927_p8, %p9261_p7 }
  0x60   : > { %p9264_p10 = pneg %p9263_p9 }
  0x62   : > { %p9269_p12 = pnand %p9267_p11, %p9264_p10 }
  0x64   : > { %9272 = shalt.err (!%p9269_p12)
}
  0x65   : > { %s9273_s23 = scalar_lea.vmem %s9904_s16, 32  ;;  %p9281_p5 = scmp.lt.s32.totalorder %s9904_s16, %s9904_s16 }
  0x66   : > { %p9274_p13 = scmp.ne.s32.totalorder %s9904_s16, %s9273_s23  ;;  %p9282_p4 = scmp.lt.s32.totalorder %s9273_s23, %s9273_s23 }
  0x68   : > { %p9276_p0 = pnand %p9274_p13, %p9927_p8  ;;  %p9283_p1 = por %p9282_p4, %p9281_p5 }
  0x6a   : > { %p9277_p2 = pneg %p9276_p0 }
  0x6c   : > { %p9284_p3 = pnand %p9283_p1, %p9277_p2 }
  0x6e   : > { %9287 = shalt.err (!%p9284_p3)
}
  0x6f   : > { %s11076_s1 = smov 16   ;;  %s11078_s0 = smov 1  }
  0x70   : > { %8985 = dma.hbm_to_vmem [thread:$0]  (!%p9915_p6), %s11170_s19, 32, %s9904_s16, [#allocation6], %s11076_s1, %s11076_s1, %s11078_s0  }
  0x71   : > { %s9288_s14 = scalar_lea.hbm %s11175_s6, 64 }
  0x72   : > { %p9289_p7 = scmp.ne.s32.totalorder %s11175_s6, %s9288_s14  ;;  %p9295_p3 = scmp.lt.u32.totalorder %s9288_s14, %s11175_s6 }
  0x74   : > { %p9291_p4 = pnand %p9289_p7, %p9927_p8 }
  0x76   : > { %p9292_p1 = pneg %p9291_p4 }
  0x78   : > { %p9297_p9 = pnand %p9295_p3, %p9292_p1 }
  0x7a   : > { %9300 = shalt.err (!%p9297_p9)
}
  0x7b   : > { %s9301_s23 = scalar_lea.vmem %s9919_s26, 64  ;;  %p9309_p13 = scmp.lt.s32.totalorder %s9919_s26, %s9919_s26 }
  0x7c   : > { %p9302_p10 = scmp.ne.s32.totalorder %s9919_s26, %s9301_s23  ;;  %p9310_p0 = scmp.lt.s32.totalorder %s9301_s23, %s9301_s23 }
  0x7e   : > { %p9304_p11 = pnand %p9302_p10, %p9927_p8  ;;  %p9311_p2 = por %p9310_p0, %p9309_p13 }
  0x80   : > { %p9305_p12 = pneg %p9304_p11 }
  0x82   : > { %p9312_p5 = pnand %p9311_p2, %p9305_p12 }
  0x84   : > { %9315 = shalt.err (!%p9312_p5)
}
  0x85   : > { %s11080_s16 = smov 32   ;;  %s11082_s14 = smov 2  }
  0x86   : > { %8991 = dma.hbm_to_vmem [thread:$0]  (!%p9915_p6), %s11175_s6, 64, %s9919_s26, [#allocation9], %s11080_s16, %s11080_s16, %s11082_s14  }
  0x87   : > { %s9316_s23 = scalar_lea.hbm %s11174_s9, 64 }
  0x88   : > { %p9317_p7 = scmp.ne.s32.totalorder %s11174_s9, %s9316_s23  ;;  %p9323_p3 = scmp.lt.u32.totalorder %s9316_s23, %s11174_s9 }
  0x8a   : > { %p9319_p4 = pnand %p9317_p7, %p9927_p8 }
  0x8c   : > { %p9320_p1 = pneg %p9319_p4 }
  0x8e   : > { %p9325_p9 = pnand %p9323_p3, %p9320_p1 }
  0x90   : > { %9328 = shalt.err (!%p9325_p9)
}
  0x91   : > { %s9329_s1 = scalar_lea.vmem %s833_s2, 64  ;;  %p9337_p13 = scmp.lt.s32.totalorder %s833_s2, %s833_s2 }
  0x92   : > { %p9330_p10 = scmp.ne.s32.totalorder %s833_s2, %s9329_s1  ;;  %p9338_p0 = scmp.lt.s32.totalorder %s9329_s1, %s9329_s1 }
  0x94   : > { %p9332_p11 = pnand %p9330_p10, %p9927_p8  ;;  %p9339_p2 = por %p9338_p0, %p9337_p13 }
  0x96   : > { %p9333_p12 = pneg %p9332_p11 }
  0x98   : > { %p9340_p5 = pnand %p9339_p2, %p9333_p12 }
  0x9a   : > { %9343 = shalt.err (!%p9340_p5)
}
  0x9b   : > { %8997 = dma.hbm_to_vmem [thread:$0]  (!%p9915_p6), %s11174_s9, 64, %s833_s2, [#allocation12], %s11080_s16, %s11080_s16, %s11082_s14  }
  0x9c   : > { %s9694_s26 = smov [#allocation14]   ;;  %s9344_s0 = scalar_lea.hbm %s11172_s12, 1024 }
  0x9d   : > { %s867_s23 = sshll.u32 %s9694_s26, 4  ;;  %p9345_p7 = scmp.ne.s32.totalorder %s11172_s12, %s9344_s0  ;;  %s868_s23 = int_to_ptr.vmem [resolvable:$true] %s867_s23 }
  0x9e   : > { %p9351_p3 = scmp.lt.u32.totalorder %s9344_s0, %s11172_s12 }
  0x9f   : > { %p9347_p4 = pnand %p9345_p7, %p9927_p8 }
  0xa1   : > { %p9348_p1 = pneg %p9347_p4 }
  0xa3   : > { %p9353_p9 = pnand %p9351_p3, %p9348_p1 }
  0xa5   : > { %9356 = shalt.err (!%p9353_p9)
}
  0xa6   : > { %s9357_s1 = scalar_lea.vmem %s868_s23, 1024  ;;  %p9365_p13 = scmp.lt.s32.totalorder %s868_s23, %s868_s23 }
  0xa7   : > { %p9358_p10 = scmp.ne.s32.totalorder %s868_s23, %s9357_s1  ;;  %p9366_p0 = scmp.lt.s32.totalorder %s9357_s1, %s9357_s1 }
  0xa9   : > { %p9360_p11 = pnand %p9358_p10, %p9927_p8  ;;  %p9367_p2 = por %p9366_p0, %p9365_p13 }
  0xab   : > { %p9361_p12 = pneg %p9360_p11 }
  0xad   : > { %p9368_p5 = pnand %p9367_p2, %p9361_p12 }
  0xaf   : > { %9371 = shalt.err (!%p9368_p5)
}
  0xb0   : > { %s9695_s2 = smov 128   ;;  %s9696_s0 = smov 8  }
  0xb1   : > { %9003 = dma.hbm_to_vmem [thread:$0]  (!%p9915_p6), %s11172_s12, 1024, %s868_s23, [#allocation15], %s9695_s2, %s9695_s2, %s9696_s0  }
  0xb2   : > { %s9697_s26 = smov [#allocation17]   ;;  %s9698_s14 = smov [#allocation7]  }
  0xb3   : > { %s896_s16 = sshll.u32 %s9697_s26, 4  ;;  %s786_s6 = sshll.u32 %s9698_s14, 4  ;;  %s897_s16 = int_to_ptr.vmem [resolvable:$true] %s896_s16  ;;  %s9989_s6 = int_to_ptr.vmem [resolvable:$true] %s786_s6 }
  0xb4   : > { %s9372_s1 = scalar_lea.hbm %s11173_s8, 32 }
  0xb5   : > { %p9373_p7 = scmp.ne.s32.totalorder %s11173_s8, %s9372_s1  ;;  %p9379_p3 = scmp.lt.u32.totalorder %s9372_s1, %s11173_s8 }
  0xb7   : > { %p9375_p4 = pnand %p9373_p7, %p9927_p8 }
  0xb9   : > { %p9376_p1 = pneg %p9375_p4 }
  0xbb   : > { %p9381_p9 = pnand %p9379_p3, %p9376_p1 }
  0xbd   : > { %9384 = shalt.err (!%p9381_p9)
}
  0xbe   : > { %s9385_s9 = scalar_lea.vmem %s897_s16, 32  ;;  %p9393_p13 = scmp.lt.s32.totalorder %s897_s16, %s897_s16 }
  0xbf   : > { %p9386_p10 = scmp.ne.s32.totalorder %s897_s16, %s9385_s9  ;;  %p9394_p0 = scmp.lt.s32.totalorder %s9385_s9, %s9385_s9 }
  0xc1   : > { %p9388_p11 = pnand %p9386_p10, %p9927_p8  ;;  %p9395_p2 = por %p9394_p0, %p9393_p13 }
  0xc3   : > { %p9389_p12 = pneg %p9388_p11 }
  0xc5   : > { %p9396_p5 = pnand %p9395_p2, %p9389_p12 }
  0xc7   : > { %9399 = shalt.err (!%p9396_p5)
}
  0xc8   : > { %s11179_s14 = smov 1   ;;  %s11180_s23 = smov 16  }
  0xc9   : > { %9009 = dma.hbm_to_vmem [thread:$0]  (!%p9915_p6), %s11173_s8, 32, %s897_s16, [#allocation18], %s11180_s23, %s11180_s23, %s11179_s14  }
  0xca   : > { %s9400_s2 = scalar_lea.hbm %s9791_s30, 32 }
  0xcb   : > { %p9401_p7 = scmp.ne.s32.totalorder %s9791_s30, %s9400_s2  ;;  %p9407_p3 = scmp.lt.u32.totalorder %s9400_s2, %s9791_s30 }
  0xcd   : > { %p9403_p4 = pnand %p9401_p7, %p9927_p8 }
  0xcf   : > { %p9404_p1 = pneg %p9403_p4 }
  0xd1   : > { %p9409_p9 = pnand %p9407_p3, %p9404_p1 }
  0xd3   : > { %9412 = shalt.err (!%p9409_p9)
}
  0xd4   : > { %s9413_s9 = scalar_lea.vmem %s9989_s6, 32  ;;  %p9421_p13 = scmp.lt.s32.totalorder %s9989_s6, %s9989_s6 }
  0xd5   : > { %p9414_p10 = scmp.ne.s32.totalorder %s9989_s6, %s9413_s9  ;;  %p9422_p0 = scmp.lt.s32.totalorder %s9413_s9, %s9413_s9 }
  0xd7   : > { %p9416_p11 = pnand %p9414_p10, %p9927_p8  ;;  %p9423_p2 = por %p9422_p0, %p9421_p13 }
  0xd9   : > { %p9417_p12 = pneg %p9416_p11 }
  0xdb   : > { %p9424_p5 = pnand %p9423_p2, %p9417_p12 }
  0xdd   : > { %9427 = shalt.err (!%p9424_p5)
}
  0xde   : > { %8988 = dma.hbm_to_vmem [thread:$0]  (!%p9915_p6), %s9791_s30, 32, %s9989_s6, [#allocation6], %s11180_s23, %s11180_s23, %s11179_s14  }
  0xdf   : > { %s9699_s16 = smov [#allocation10]   ;;  %s9700_s26 = smov [#allocation13]  }
  0xe0   : > { %s816_s0 = sshll.u32 %s9699_s16, 4  ;;  %s854_s1 = sshll.u32 %s9700_s26, 4  ;;  %s817_s0 = int_to_ptr.vmem [resolvable:$true] %s816_s0  ;;  %s10022_s1 = int_to_ptr.vmem [resolvable:$true] %s854_s1 }
  0xe1   : > { %s9428_s2 = scalar_lea.hbm %s11167_s20, 32 }
  0xe2   : > { %p9429_p7 = scmp.ne.s32.totalorder %s11167_s20, %s9428_s2  ;;  %p9435_p3 = scmp.lt.u32.totalorder %s9428_s2, %s11167_s20 }
  0xe4   : > { %p9431_p4 = pnand %p9429_p7, %p9927_p8 }
  0xe6   : > { %p9432_p1 = pneg %p9431_p4 }
  0xe8   : > { %p9437_p9 = pnand %p9435_p3, %p9432_p1 }
  0xea   : > { %9440 = shalt.err (!%p9437_p9)
}
  0xeb   : > { %s9441_s9 = scalar_lea.vmem %s817_s0, 32  ;;  %p9449_p13 = scmp.lt.s32.totalorder %s817_s0, %s817_s0 }
  0xec   : > { %p9442_p10 = scmp.ne.s32.totalorder %s817_s0, %s9441_s9  ;;  %p9450_p0 = scmp.lt.s32.totalorder %s9441_s9, %s9441_s9 }
  0xee   : > { %p9444_p11 = pnand %p9442_p10, %p9927_p8  ;;  %p9451_p2 = por %p9450_p0, %p9449_p13 }
  0xf0   : > { %p9445_p12 = pneg %p9444_p11 }
  0xf2   : > { %p9452_p5 = pnand %p9451_p2, %p9445_p12 }
  0xf4   : > { %9455 = shalt.err (!%p9452_p5)
}
  0xf5   : > { %8994 = dma.hbm_to_vmem [thread:$0]  (!%p9915_p6), %s11167_s20, 32, %s817_s0, [#allocation9]  }
  0xf6   : > { %s9456_s6 = scalar_lea.hbm %s11171_s13, 64 }
  0xf7   : > { %p9457_p7 = scmp.ne.s32.totalorder %s11171_s13, %s9456_s6  ;;  %p9463_p3 = scmp.lt.u32.totalorder %s9456_s6, %s11171_s13 }
  0xf9   : > { %p9459_p4 = pnand %p9457_p7, %p9927_p8 }
  0xfb   : > { %p9460_p1 = pneg %p9459_p4 }
  0xfd   : > { %p9465_p9 = pnand %p9463_p3, %p9460_p1 }
  0xff   : > { %9468 = shalt.err (!%p9465_p9)
}
 0x100   : > { %s9469_s16 = scalar_lea.vmem %s10022_s1, 64  ;;  %p9477_p13 = scmp.lt.s32.totalorder %s10022_s1, %s10022_s1 }
 0x101   : > { %p9470_p10 = scmp.ne.s32.totalorder %s10022_s1, %s9469_s16  ;;  %p9478_p0 = scmp.lt.s32.totalorder %s9469_s16, %s9469_s16 }
 0x103   : > { %p9472_p11 = pnand %p9470_p10, %p9927_p8  ;;  %p9479_p2 = por %p9478_p0, %p9477_p13 }
 0x105   : > { %p9473_p12 = pneg %p9472_p11 }
 0x107   : > { %p9480_p5 = pnand %p9479_p2, %p9473_p12 }
 0x109   : > { %9483 = shalt.err (!%p9480_p5)
}
 0x10a   : > { %s11181_s0 = smov 2   ;;  %s11182_s26 = smov 32  }
 0x10b   : > { %9000 = dma.hbm_to_vmem [thread:$0]  (!%p9915_p6), %s11171_s13, 64, %s10022_s1, [#allocation12], %s11182_s26, %s11182_s26, %s11181_s0  }
 0x10c   : > { %s9701_s2 = smov [#allocation16]   ;;  %s9702_s6 = smov [#allocation19]  }
 0x10d   : > { %s880_s9 = sshll.u32 %s9701_s2, 4  ;;  %s909_s8 = sshll.u32 %s9702_s6, 4  ;;  %s881_s9 = int_to_ptr.vmem [resolvable:$true] %s880_s9  ;;  %s10052_s8 = int_to_ptr.vmem [resolvable:$true] %s909_s8 }
 0x10e   : > { %s9484_s16 = scalar_lea.hbm %s11163_s27, 32 }
 0x10f   : > { %p9485_p7 = scmp.ne.s32.totalorder %s11163_s27, %s9484_s16  ;;  %p9491_p3 = scmp.lt.u32.totalorder %s9484_s16, %s11163_s27 }
 0x111   : > { %p9487_p4 = pnand %p9485_p7, %p9927_p8 }
 0x113   : > { %p9488_p1 = pneg %p9487_p4 }
 0x115   : > { %p9493_p9 = pnand %p9491_p3, %p9488_p1 }
 0x117   : > { %9496 = shalt.err (!%p9493_p9)
}
 0x118   : > { %s9497_s12 = scalar_lea.vmem %s881_s9, 32  ;;  %p9505_p13 = scmp.lt.s32.totalorder %s881_s9, %s881_s9 }
 0x119   : > { %p9498_p10 = scmp.ne.s32.totalorder %s881_s9, %s9497_s12  ;;  %p9506_p0 = scmp.lt.s32.totalorder %s9497_s12, %s9497_s12 }
 0x11b   : > { %p9500_p11 = pnand %p9498_p10, %p9927_p8  ;;  %p9507_p2 = por %p9506_p0, %p9505_p13 }
 0x11d   : > { %p9501_p12 = pneg %p9500_p11 }
 0x11f   : > { %p9508_p5 = pnand %p9507_p2, %p9501_p12 }
 0x121   : > { %9511 = shalt.err (!%p9508_p5)
}
 0x122   : > { %9006 = dma.hbm_to_vmem [thread:$0]  (!%p9915_p6), %s11163_s27, 32, %s881_s9, [#allocation15], %s11180_s23, %s11180_s23, %s11179_s14  }
 0x123   : > { %s9512_s1 = scalar_lea.hbm %s11165_s24, 64 }
 0x124   : > { %p9513_p7 = scmp.ne.s32.totalorder %s11165_s24, %s9512_s1  ;;  %p9519_p3 = scmp.lt.u32.totalorder %s9512_s1, %s11165_s24 }
 0x126   : > { %p9515_p4 = pnand %p9513_p7, %p9927_p8 }
 0x128   : > { %p9516_p1 = pneg %p9515_p4 }
 0x12a   : > { %p9521_p9 = pnand %p9519_p3, %p9516_p1 }
 0x12c   : > { %9524 = shalt.err (!%p9521_p9)
}
 0x12d   : > { %s9525_s12 = scalar_lea.vmem %s10052_s8, 64  ;;  %p9533_p13 = scmp.lt.s32.totalorder %s10052_s8, %s10052_s8 }
 0x12e   : > { %p9526_p10 = scmp.ne.s32.totalorder %s10052_s8, %s9525_s12  ;;  %p9534_p0 = scmp.lt.s32.totalorder %s9525_s12, %s9525_s12 }
 0x130   : > { %p9528_p11 = pnand %p9526_p10, %p9927_p8  ;;  %p9535_p2 = por %p9534_p0, %p9533_p13 }
 0x132   : > { %p9529_p12 = pneg %p9528_p11 }
 0x134   : > { %p9536_p5 = pnand %p9535_p2, %p9529_p12 }
 0x136   : > { %9539 = shalt.err (!%p9536_p5)
}
 0x137   : > { %9012 = dma.hbm_to_vmem [thread:$0]  (!%p9915_p6), %s11165_s24, 64, %s10052_s8, [#allocation18], %s11182_s26, %s11182_s26, %s11181_s0  }
 0x138   : > { %s7756_s4 = sadd.s32 4294967294, %s9656_s15   ;;  %s10087_s28 = sadd.s32 1, %s9656_s15  }
 0x139   : > { %s84_s14 = ssub.s32 %s9656_s15, %s10087_s28  ;;  %s87_s23 = sadd.s32 1, %s9652_s11 }
 0x13a   : > { %p85_p8 = scmp.eq.s32.totalorder %s84_s14, 0  ;;  %p94_p7 = scmp.ne.s32.totalorder %s9652_s11, %s9648_s10 }
 0x13b   : > { %p95_p4 = scmp.eq.s32.totalorder %s9656_s15, 0  ;;  %p100_p1 = scmp.ne.s32.totalorder %s9648_s10, %s9644_s7 }
 0x13c   : > { %s10098_s2 = scalar_select %p85_p8, %s9652_s11, %s87_s23  }
 0x13d   : > { %p10100_p3 = por %p95_p4, %p94_p7  ;;  %p11184_p9 = scmp.eq.s32.totalorder %s9899_s18, 0 }
 0x13e   : > { %p727_p10 = scmp.eq.s32.totalorder %s9899_s18, 1  ;;  %p733_p11 = scmp.eq.s32.totalorder %s7756_s4, 1 }
 0x13f   : > { %p10106_p6 = por %p11184_p9, %p100_p1  ;;  %p9031_p12 = scmp.lt.s32.totalorder %s9656_s15, 2 }
 0x140   : > { %s926_s0 = sand.u32 1, %s9652_s11   ;;  %p10113_p13 = por %p727_p10, %p94_p7 }
 0x141   : > { %s11185_s8 = scalar_select %p10106_p6, 1, 0 }
 0x142   : > { %s11186_s26 = scalar_select %p10113_p13, 1, 0 }
 0x143   : > { %p10117_p0 = por %p733_p11, %p100_p1  ;;  %s7769_s16 = sshll.u32 %s926_s0, 3 }
 0x144   : > { %s7770_s1 = sshll.u32 %s9656_s15, 7  ;;  %s930_s4 = scalar_lea.vmem [#allocation2], %s7769_s16 }
 0x145   : > { %s11187_s6 = scalar_select %p10117_p0, 1, 0 }
 0x146   : > { %s10123_s12 = scalar_lea.hbm %s11169_s5, %s7770_s1  ;;  %s937_s14 = sshll.u32 %s930_s4, 4  ;;  %s10125_s14 = int_to_ptr.vmem [resolvable:$true] %s937_s14 }
 0x147   : > { %p10129_p2 = pnand %p9031_p12, %p10100_p3  ;;  %s927_s13 = scalar_lea.sflag [#allocation3], %s926_s0 }
 0x148   : > { %s9540_s19 = scalar_lea.hbm %s10123_s12, 128  ;;  %s9545_s16 = scalar_lea.hbm %s11169_s5, 256 }
 0x149   : > { %p9541_p5 = scmp.ne.s32.totalorder %s10123_s12, %s9540_s19  ;;  %p9542_p8 = pneg %p10129_p2 }
 0x14a   : > { %p9546_p1 = scmp.lt.u32.totalorder %s10123_s12, %s11169_s5  ;;  %p9547_p9 = scmp.lt.u32.totalorder %s9545_s16, %s9540_s19 }
 0x14b   : > { %p9543_p7 = pnand %p9542_p8, %p9541_p5  ;;  %p9549_p11 = scmp.lt.u32.totalorder %s9540_s19, %s10123_s12 }
 0x14c   : > { %p9548_p10 = por %p9547_p9, %p9546_p1 }
 0x14d   : > { %p9544_p4 = pneg %p9543_p7 }
 0x14e   : > { %p9550_p3 = por %p9549_p11, %p9548_p10 }
 0x150   : > { %p9551_p12 = pnand %p9550_p3, %p9544_p4 }
 0x152   : > { %9554 = shalt.err (!%p9551_p12)
}
 0x153   : > { %s9555_s9 = scalar_lea.vmem %s10125_s14, 128  ;;  %s9703_s0 = smov [#allocation2]  }
 0x154   : > { %p9556_p0 = scmp.ne.s32.totalorder %s10125_s14, %s9555_s9  ;;  %s9560_s1 = sshll.u32 %s9703_s0, 4  ;;  %s9561_s1 = int_to_ptr.vmem [resolvable:$false] %s9560_s1 }
 0x155   : > { %s9562_s4 = scalar_lea.vmem %s9561_s1, 256  ;;  %p9563_p5 = scmp.lt.s32.totalorder %s10125_s14, %s9561_s1 }
 0x156   : > { %p9558_p13 = pnand %p9556_p0, %p9542_p8  ;;  %p9564_p7 = scmp.lt.s32.totalorder %s9562_s4, %s9555_s9 }
 0x158   : > { %p9559_p6 = pneg %p9558_p13  ;;  %p9565_p1 = por %p9564_p7, %p9563_p5 }
 0x15a   : > { %p9566_p9 = pnand %p9565_p1, %p9559_p6 }
 0x15c   : > { %9569 = shalt.err (!%p9566_p9)
}
 0x15d   : > { %9016 = dma.hbm_to_vmem [thread:$0]  (!%p10129_p2), %s10123_s12, 128, %s10125_s14, %s927_s13  }
 0x15e   : > { %p11189_p4 = scmp.ne.s32.totalorder %s11176_s22, 0 }
 0x15f   : > { %s10157_s19 = sand.u32 (!%p11189_p4), 1, %s9648_s10   ;;  %p11190_p6 = scmp.ne.s32.totalorder (!%p11189_p4), %s11185_s8, 0 }
 0x160   : > { %965 = sbr.rel (%p11189_p4) target bundleno = 14310 (0x37e6), region = 136  ;;  %s11092_s16 = sshll.u32 (!%p11189_p4), %s10157_s19, 3 }
 0x161   : > { %s968_s9 = scalar_lea.sflag (!%p11189_p4), [#allocation3], %s10157_s19  ;;  %s10163_s0 = scalar_lea.vmem (!%p11189_p4), [#allocation2], %s11092_s16 }
 0x167   : > { %9615 = dma.done.wait (%p11190_p6), %s968_s9, 128  }
 0x168   : > { %9617 = vsyncadd (%p11190_p6), %s968_s9, 4294967168  ;;  %p11191_p13 = scmp.eq.s32.totalorder %s9899_s18, 0 }
 0x16a   : > { %9619 = dma.done.wait (%p11191_p13), [#allocation6], 64   ;;  %p11192_p0 = pmov %p11191_p13 }
 0x16c   : > { %9621 = vsyncadd (%p11192_p0), [#allocation6], 4294967232  ;;  %p11193_p2 = pmov %p11192_p0 }
 0x16d   : > { %p11194_p8 = pmov %p11192_p0 }
 0x16e   : > { %9623 = dma.done.wait (%p11193_p2), [#allocation9], 96  }
 0x16f   : > { %9625 = vsyncadd (%p11194_p8), [#allocation9], 4294967200  ;;  %p11195_p10 = pmov %p11192_p0 }
 0x170   : > { %p11196_p11 = pmov %p11192_p0 }
 0x171   : > { %9627 = dma.done.wait (%p11195_p10), [#allocation12], 128  }
 0x172   : > { %9629 = vsyncadd (%p11196_p11), [#allocation12], 4294967168  ;;  %p11197_p3 = pmov %p11192_p0 }
 0x173   : > { %p11198_p12 = pmov %p11192_p0 }
 0x174   : > { %9631 = dma.done.wait (%p11197_p3), [#allocation15], 1056  }
 0x175   : > { %9633 = vsyncadd (%p11198_p12), [#allocation15], 4294966240  ;;  %p11199_p5 = pmov %p11192_p0 }
 0x176   : > { %p11200_p7 = pmov %p11192_p0 }
 0x177   : > { %9635 = dma.done.wait (%p11199_p5), [#allocation18], 96  }
 0x178   : > { %9637 = vsyncadd (%p11200_p7), [#allocation18], 4294967200  ;;  %v9704_v0 = vmov 0.0|0.0   ;;  %vm9705_vm0 = vmmov 0   ;;  %v9706_v1 = vmov 0.0   ;;  %v1108_v2 = vld [vmem:[%s11166_s21] sm:$0xff] }
 0x179   : > { %8755 = vmatprep.subr.bf16.mxu0 %v9704_v0  ;;  %8210 = vmatprep.mubr.msk.f32.mxu0 %vm9705_vm0, %v9706_v1  ;;  %v1109_v3 = vld [vmem:[%s11166_s21 + $0x8] sm:$0xff]  ;;  %v1110_v4 = vld [vmem:[%s11166_s21 + $0x10] sm:$0xff]  ;;  %v1111_v6 = vld [vmem:[%s11166_s21 + $0x18] sm:$0xff]  ;;  %s11201_s17 = sld [smem:[#allocation31_spill]]  ;;  %vm1122_vm1 = vcmask 523264   ;;  %p1096_p1 = scmp.lt.s32.totalorder %s9899_s18, 1 }
 0x17a   : > { %8767 = vmatprep.subr.bf16.mxu1 %v9704_v0  ;;  %8221 = vmatprep.mubr.msk.f32.mxu1 %vm9705_vm0, %v9706_v1  ;;  %v8756_v5 = vpack.c.bf16 %v1109_v3, %v1108_v2  ;;  %v8759_v7 = vpack.c.bf16 %v1111_v6, %v1110_v4  ;;  %v1112_v8 = vld [vmem:[%s11166_s21 + $0x20] sm:$0xff]  ;;  %v1113_v9 = vld [vmem:[%s11166_s21 + $0x28] sm:$0xff]  ;;  %v1114_v11 = vld [vmem:[%s11166_s21 + $0x30] sm:$0xff]  ;;  %vm1198_vm2 = vcmask 261120   ;;  %s11114_s8 = smov 120   ;;  %s11118_s12 = smov 96  }
 0x17b   : > { %v8762_v10 = vpack.c.bf16 %v1113_v9, %v1112_v8  ;;  %v1115_v12 = vld [vmem:[%s11166_s21 + $0x38] sm:$0xff]  ;;  %v1107_v14 = vld [vmem:[%s10163_s0] sm:$0xff]  ;;  %s10213_s13 = scalar_select %p1096_p1, %s9899_s18, 1  ;;  %v1225_v27 = vld [vmem:[%s11162_s29 + $0x10] sm:$0xff]  ;;  %vm1308_vm3 = vcmask 64512   ;;  %vm1978_vm4 = vcmask 130048  }
 0x17c   : > { %8757 = vmatpush3.bf16.msra.mxu0 %v8756_v5  ;;  %v8765_v13 = vpack.c.bf16 %v1115_v12, %v1114_v11  ;;  %v1223_v25 = vld [vmem:[%s11162_s29] sm:$0xff]  ;;  %v1224_v26 = vld [vmem:[%s11162_s29 + $0x8] sm:$0xff]  ;;  %v1226_v29 = vld [vmem:[%s11162_s29 + $0x18] sm:$0xff]  ;;  %s11116_s14 = smov 88   ;;  %s11112_s23 = smov 80   ;;  %vm1980_vm5 = vcmask 195584  }
 0x17d   : > { %8758 = vmatprep.subr.bf16.mxu0 %v9704_v0  ;;  %v8768_v28 = vpack.c.bf16 %v1224_v26, %v1223_v25  ;;  %v8771_v30 = vpack.c.bf16 %v1226_v29, %v1225_v27  ;;  %v7787_v35 = vld [vmem:[%s11164_s25] ss:$0 sm:$0xff]  ;;  %v7788_v37 = vld [vmem:[%s11164_s25 + $0x1] ss:$0 sm:$0xff]  ;;  %s11110_s1 = smov 112   ;;  %s11120_s4 = smov 72  }
 0x17e   : > { %s11095_s9 = smov 104   ;;  %s11093_s0 = smov 64   ;;  %vm3354_vm7 = vcmask 1041408   ;;  %vm3350_vm8 = vcmask 408576  }
 0x17f   : > { %s10217_s22 = scalar_lea.vmem %s11201_s17, %s10213_s13  ;;  %8769 = vmatpush3.bf16.msra.mxu1 %v8768_v28  ;;  %s11101_s16 = smov 48  }
 0x180   : > { %8760 = vmatpush3.bf16.msra.mxu0 %v8759_v7  ;;  %v7785_v15 = vld [vmem:[%s10217_s22] ss:$0 sm:$0xff]  ;;  %8770 = vmatprep.subr.bf16.mxu1 %v9704_v0  ;;  %s11205_s5 = smov 104   ;;  %s11212_s17 = smov 24  }
 0x181   : > { %8761 = vmatprep.subr.bf16.mxu0 %v9704_v0  ;;  %s7784_s20 = sshll.u32 %s10213_s13, 3  ;;  %s11222_s24 = sld [smem:[#allocation29_spill]] }
 0x182   : > { %s11228_s27 = sld [smem:[#allocation48_spill]]  ;;  %p11233_p4 = scmp.ne.s32.totalorder %s11186_s26, 0 }
 0x183   : > { %8772 = vmatpush3.bf16.msra.mxu1 %v8771_v30 }
 0x184   : > { %8763 = vmatpush3.bf16.msra.mxu0 %v8762_v10  ;;  %8229 = vmatprep.subr.mxu1 %v9706_v1 }
 0x185   : > { %8764 = vmatprep.subr.bf16.mxu0 %v9704_v0 }
 0x187   : > { %s1098_s25 = scalar_lea.vmem %s11222_s24, %s10213_s13  ;;  %s11226_s24 = sld [smem:[#allocation47_spill]] }
 0x188   : > { %8766 = vmatpush3.bf16.msra.mxu0 %v8765_v13  ;;  %s11227_s13 = sld [smem:[#allocation46_spill]] }
 0x189   : > { %8224 = vmatprep.subr.mxu0 %v9706_v1 }
 0x18b   : > { %8211 = vmatmul.mubr.msk.f32.vlgmr.msra.gmra.mrb[0].mxu0 %vm1122_vm1, %v1107_v14 }
 0x18c   : > { %8226 = vmatprep.mubr.msk.f32.mxu0 %vm9705_vm0, %v9706_v1 }
 0x25e   : > { %v1192_v16 = vpop.f32.mrb[0].mxu0 }
 0x25f   : > { %v1193_v17 = vadd.f32 %v7785_v15, %v1192_v16  ;;  %v8212_v18 = vpop.f32.mrb[1].mxu0 }
 0x261   : > { %v1199_v19 = vsel %vm1198_vm2, %v1193_v17, 0.0 }
 0x262   : > { %1200 = vadd.xlane.f32.xlu0 %v1199_v19 }
 0x2ef   : > { %v1201_v20 = vpop.xlane.xlu0 %1200 }
 0x2f0   : > { %v1203_v21 = vmul.f32 0.03125, %v1201_v20 }
 0x2f2   : > { %v1204_v22 = vsub.f32 %v1193_v17, %v1203_v21 }
 0x2f4   : > { %v1205_v23 = vmul.f32 %v1204_v22, %v1204_v22 }
 0x2f6   : > { %v1206_v24 = vsel %vm1198_vm2, %v1205_v23, 0.0 }
 0x2f7   : > { %1207 = vadd.xlane.f32.xlu0 %v1206_v24 }
 0x384   : > { %v1208_v31 = vpop.xlane.xlu0 %1207 }
 0x385   : > { %v1209_v32 = vmul.f32 0.03125, %v1208_v31 }
 0x387   : > { %v1210_v33 = vadd.f32 1e-06, %v1209_v32 }
 0x389   : > { %9139 = vrsqrt.f32 %v1210_v33 }
 0x393   : > { %v9140_v34 = vpop.eup %9139 }
 0x394   : > { %v1212_v36 = vmul.f32 %v9140_v34, %v1204_v22 }
 0x396   : > { %v1217_v38 = vmul.f32 %v7787_v35, %v1212_v36  ;;  %v1227_v35 = vld [vmem:[%s11168_s3] sm:$0xff]  ;;  %v1228_v36 = vld [vmem:[%s11168_s3 + $0x8] sm:$0xff] }
 0x398   : > { %v10230_v39 = vadd.f32 %v7788_v37, %v1217_v38  ;;  %v8774_v37 = vpack.c.bf16 %v1228_v36, %v1227_v35 }
 0x39a   : > { %8222 = vmatmul.mubr.msk.f32.vlgmr.msra.gmra.mrb[0].mxu1 %vm1198_vm2, %v10230_v39 }
 0x39b   : > { %8231 = vmatprep.mubr.msk.f32.mxu1 %vm9705_vm0, %v9706_v1 }
 0x46d   : > { %v10236_v40 = vpop.f32.mrb[0].mxu1 }
 0x46e   : > { %1470 = vrot.lane.b32.xlu0 %v10236_v40, %s11114_s8  ;;  %1306 = vrot.lane.b32.xlu1 %v10236_v40, %s11118_s12  ;;  %v8223_v41 = vpop.f32.mrb[1].mxu1 }
 0x46f   : > { %v1229_v41 = vld [vmem:[%s11168_s3 + $0x10] sm:$0xff] }
 0x472   : > { %1472 = vrot.lane.b32.xlu1 %v10236_v40, %s11116_s14 }
 0x476   : > { %1637 = vrot.lane.b32.xlu1 %v10236_v40, %s11112_s23 }
 0x47a   : > { %1635 = vrot.lane.b32.xlu1 %v10236_v40, %s11110_s1 }
 0x47e   : > { %1802 = vrot.lane.b32.xlu1 %v10236_v40, %s11120_s4 }
 0x482   : > { %1800 = vrot.lane.b32.xlu1 %v10236_v40, %s11095_s9  ;;  %s11097_s9 = smov 56  }
 0x4e0   : > { %v1307_v42 = vpop.permute.xlu1 %1306  ;;  %v1471_v44 = vpop.permute.xlu0 %1470 }
 0x4e1   : > { %8225 = vmatpush3.xpose.msk.msra.mxu0 %vm1308_vm3, %v1307_v42  ;;  %v1230_v42 = vld [vmem:[%s11168_s3 + $0x18] sm:$0xff] }
 0x4e2   : > { %8234 = vmatprep.subr.mxu0 %v9706_v1 }
 0x4e4   : > { %8227 = vmatmul.mubr.msk.f32.vlgmr.msra.gmra.mrb[2].mxu0 %vm1308_vm3, %v10236_v40  ;;  %v1473_v43 = vpop.permute.xlu1 %1472 }
 0x4e5   : > { %8235 = vmatpush3.xpose.msk.msra.mxu0 %vm1308_vm3, %v1473_v43  ;;  %8236 = vmatprep.mubr.msk.f32.mxu0 %vm9705_vm0, %v9706_v1  ;;  %v8777_v43 = vpack.c.bf16 %v1230_v42, %v1229_v41 }
 0x4e6   : > { %8244 = vmatprep.subr.mxu0 %v9706_v1 }
 0x4e8   : > { %8237 = vmatmul.mubr.msk.f32.vlgmr.msra.gmra.mrb[4].mxu0 %vm1308_vm3, %v1471_v44  ;;  %v1638_v45 = vpop.permute.xlu1 %1637 }
 0x4e9   : > { %8245 = vmatpush3.xpose.msk.msra.mxu0 %vm1308_vm3, %v1638_v45  ;;  %8246 = vmatprep.mubr.msk.f32.mxu0 %vm9705_vm0, %v9706_v1 }
 0x4ea   : > { %8254 = vmatprep.subr.mxu0 %v9706_v1 }
 0x4ec   : > { %v1636_v46 = vpop.permute.xlu1 %1635 }
 0x4ed   : > { %8247 = vmatmul.mubr.msk.f32.vlgmr.msra.gmra.mrb[6].mxu0 %vm1308_vm3, %v1636_v46 }
 0x4ee   : > { %8256 = vmatprep.mubr.msk.f32.mxu0 %vm9705_vm0, %v9706_v1 }
 0x4f0   : > { %v1803_v47 = vpop.permute.xlu1 %1802 }
 0x4f1   : > { %8255 = vmatpush3.xpose.msk.msra.mxu0 %vm1308_vm3, %v1803_v47 }
 0x4f2   : > { %8773 = vmatprep.subr.bf16.mxu0 %v9704_v0 }
 0x4f4   : > { %v1801_v48 = vpop.permute.xlu1 %1800 }
 0x4f5   : > { %8257 = vmatmul.mubr.msk.f32.vlgmr.msra.gmra.mrb[8].mxu0 %vm1308_vm3, %v1801_v48 }
 0x4f6   : > { %8272 = vmatprep.mubr.msk.f32.mxu0 %vm9705_vm0, %v9706_v1  ;;  %8775 = vmatpush3.bf16.msra.mxu0 %v8774_v37 }
 0x4f7   : > { %8776 = vmatprep.subr.bf16.mxu0 %v9704_v0 }
 0x4fa   : > { %8778 = vmatpush3.bf16.msra.mxu0 %v8777_v43 }
 0x4fb   : > { %8785 = vmatprep.subr.bf16.mxu0 %v9704_v0 }
 0x5b7   : > { %v1379_v49 = vpop.f32.mrb[2].mxu0 }
 0x5b8   : > { %v8228_v50 = vpop.f32.mrb[3].mxu0  ;;  %v1383_v51 = vsel %vm1308_vm3, %v1379_v49, -inf }
 0x5b9   : > { %1384 = vmax.xlane.f32.xlu1 %v1383_v51 }
 0x5bb   : > { %v1544_v52 = vpop.f32.mrb[4].mxu0 }
 0x5bc   : > { %v8238_v53 = vpop.f32.mrb[5].mxu0  ;;  %v1548_v54 = vsel %vm1308_vm3, %v1544_v52, -inf }
 0x5bd   : > { %1549 = vmax.xlane.f32.xlu0 %v1548_v54 }
 0x5c0   : > { %v1709_v55 = vpop.f32.mrb[6].mxu0 }
 0x5c1   : > { %v8248_v56 = vpop.f32.mrb[7].mxu0  ;;  %v1713_v57 = vsel %vm1308_vm3, %v1709_v55, -inf }
 0x5c2   : > { %1714 = vmax.xlane.f32.xlu1 %v1713_v57 }
 0x5c8   : > { %v1874_v58 = vpop.f32.mrb[8].mxu0 }
 0x5c9   : > { %v8258_v59 = vpop.f32.mrb[9].mxu0  ;;  %v1878_v60 = vsel %vm1308_vm3, %v1874_v58, -inf }
 0x5ca   : > { %1879 = vmax.xlane.f32.xlu0 %v1878_v60 }
 0x5d3   : > { %1394 = vrot.lane.b32.xlu1 %v10236_v40, %s11093_s0  ;;  %s11099_s0 = smov 40  }
 0x646   : > { %v1385_v61 = vpop.xlane.xlu1 %1384 }
 0x647   : > { %v1386_v62 = vsub.f32 %v1379_v49, %v1385_v61 }
 0x649   : > { %v1387_v63 = vmul.f32 1.442695, %v1386_v62 }
 0x64a   : > { %v1550_v2 = vpop.xlane.xlu0 %1549 }
 0x64b   : > { %9141 = vpow2.f32 %v1387_v63  ;;  %v1551_v3 = vsub.f32 %v1544_v52, %v1550_v2 }
 0x64d   : > { %v1552_v4 = vmul.f32 1.442695, %v1551_v3 }
 0x64f   : > { %9143 = vpow2.f32 %v1552_v4  ;;  %v1715_v5 = vpop.xlane.xlu1 %1714 }
 0x650   : > { %v1716_v6 = vsub.f32 %v1709_v55, %v1715_v5 }
 0x652   : > { %v1717_v7 = vmul.f32 1.442695, %v1716_v6 }
 0x653   : > { %v1395_v8 = vpop.permute.xlu1 %1394 }
 0x654   : > { %9145 = vpow2.f32 %v1717_v7  ;;  %8230 = vmatpush3.msra.mxu1 %v1395_v8 }
 0x655   : > { %v9142_v9 = vpop.eup %9141  ;;  %8239 = vmatprep.subr.mxu1 %v9706_v1 }
 0x656   : > { %v1389_v10 = vsel %vm1308_vm3, %v9142_v9, 0.0 }
 0x657   : > { %v1880_v11 = vpop.xlane.xlu0 %1879  ;;  %1390 = vadd.xlane.f32.xlu1 %v1389_v10 }
 0x658   : > { %v1881_v12 = vsub.f32 %v1874_v58, %v1880_v11 }
 0x659   : > { %v9144_v13 = vpop.eup %9143 }
 0x65a   : > { %v1882_v14 = vmul.f32 1.442695, %v1881_v12  ;;  %v1554_v15 = vsel %vm1308_vm3, %v9144_v13, 0.0 }
 0x65b   : > { %1555 = vadd.xlane.f32.xlu0 %v1554_v15 }
 0x65c   : > { %9147 = vpow2.f32 %v1882_v14 }
 0x65e   : > { %v9146_v16 = vpop.eup %9145 }
 0x65f   : > { %v1719_v17 = vsel %vm1308_vm3, %v9146_v16, 0.0 }
 0x660   : > { %1720 = vadd.xlane.f32.xlu1 %v1719_v17 }
 0x666   : > { %v9148_v18 = vpop.eup %9147 }
 0x667   : > { %v1884_v19 = vsel %vm1308_vm3, %v9148_v18, 0.0 }
 0x668   : > { %1885 = vadd.xlane.f32.xlu0 %v1884_v19  ;;  %v2068_v19 = vlaneseq }
 0x671   : > { %1724 = vrot.lane.b32.xlu1 %v10236_v40, %s11101_s16  ;;  %s11105_s16 = smov 24  }
 0x675   : > { %1889 = vrot.lane.b32.xlu1 %v10236_v40, %s11099_s0  ;;  %s11107_s0 = smov 16  }
 0x67e   : > { %1559 = vrot.lane.b32.xlu0 %v10236_v40, %s11097_s9  ;;  %s11103_s9 = smov 8  }
 0x6e4   : > { %v1391_v20 = vpop.xlane.xlu1 %1390 }
 0x6e5   : > { %9149 = vrcp.f32 %v1391_v20 }
 0x6e8   : > { %v1556_v21 = vpop.xlane.xlu0 %1555 }
 0x6e9   : > { %9151 = vrcp.f32 %v1556_v21  ;;  %v10339_v21 = vshrl.u32 %v2068_v19, 7 }
 0x6ed   : > { %v1721_v22 = vpop.xlane.xlu1 %1720 }
 0x6ee   : > { %9153 = vrcp.f32 %v1721_v22  ;;  %v10342_v22 = vsub.s32 0, %v10339_v21 }
 0x6ef   : > { %v9150_v23 = vpop.eup %9149 }
 0x6f0   : > { %v1393_v24 = vmul.f32 %v9150_v23, %v9142_v9 }
 0x6f1   : > { %v1725_v27 = vpop.permute.xlu1 %1724 }
 0x6f2   : > { %8232 = vmatmul.mubr.msk.f32.vlgmr.msra.gmra.mrb[2].mxu1 %vm1308_vm3, %v1393_v24  ;;  %v10346_v24 = vsub.s32 1, %v10339_v21 }
 0x6f3   : > { %8241 = vmatprep.mubr.msk.f32.mxu1 %vm9705_vm0, %v9706_v1  ;;  %v9152_v26 = vpop.eup %9151 }
 0x6f4   : > { %v1558_v29 = vmul.f32 %v9152_v26, %v9144_v13 }
 0x6f5   : > { %v1886_v25 = vpop.xlane.xlu0 %1885  ;;  %v1890_v32 = vpop.permute.xlu1 %1889 }
 0x6f6   : > { %9155 = vrcp.f32 %v1886_v25 }
 0x6f8   : > { %v9154_v30 = vpop.eup %9153 }
 0x6f9   : > { %v1560_v28 = vpop.permute.xlu0 %1559  ;;  %v1723_v31 = vmul.f32 %v9154_v30, %v9146_v16 }
 0x6fa   : > { %8240 = vmatpush3.msra.mxu1 %v1560_v28 }
 0x6fb   : > { %8242 = vmatmul.mubr.msk.f32.vlgmr.msra.gmra.mrb[4].mxu1 %vm1308_vm3, %v1558_v29  ;;  %8249 = vmatprep.subr.mxu1 %v9706_v1 }
 0x6fc   : > { %8250 = vmatpush3.msra.mxu1 %v1725_v27  ;;  %8251 = vmatprep.mubr.msk.f32.mxu1 %vm9705_vm0, %v9706_v1 }
 0x6fd   : > { %8259 = vmatprep.subr.mxu1 %v9706_v1 }
 0x6ff   : > { %8252 = vmatmul.mubr.msk.f32.vlgmr.msra.gmra.mrb[6].mxu1 %vm1308_vm3, %v1723_v31 }
 0x700   : > { %v9156_v33 = vpop.eup %9155  ;;  %8260 = vmatpush3.msra.mxu1 %v1890_v32  ;;  %8261 = vmatprep.mubr.msk.f32.mxu1 %vm9705_vm0, %v9706_v1 }
 0x701   : > { %v1888_v34 = vmul.f32 %v9156_v33, %v9148_v18  ;;  %8779 = vmatprep.subr.bf16.mxu1 %v9704_v0 }
 0x703   : > { %8262 = vmatmul.mubr.msk.f32.vlgmr.msra.gmra.mrb[8].mxu1 %vm1308_vm3, %v1888_v34  ;;  %v7803_v34 = vld [vmem:[#allocation5] ss:$0 sm:$0xff] }
 0x704   : > { %8283 = vmatprep.mubr.msk.f32.mxu1 %vm9705_vm0, %v9706_v1 }
 0x7c5   : > { %v1466_v38 = vpop.f32.mrb[2].mxu1 }
 0x7c6   : > { %v8233_v40 = vpop.f32.mrb[3].mxu1 }
 0x7c7   : > { %v7805_v40 = vld [vmem:[#allocation7] ss:$0 sm:$0xff] }
 0x7ce   : > { %v1631_v44 = vpop.f32.mrb[4].mxu1 }
 0x7cf   : > { %1966 = vrot.lane.b32.xlu0 %v1631_v44, %s11103_s9  ;;  %v8243_v45 = vpop.f32.mrb[5].mxu1  ;;  %s11202_s9 = sld [smem:[#allocation37_spill]] }
 0x7d2   : > { %v1796_v46 = vpop.f32.mrb[6].mxu1 }
 0x7d3   : > { %1970 = vrot.lane.b32.xlu1 %v1796_v46, %s11107_s0  ;;  %v8253_v47 = vpop.f32.mrb[7].mxu1  ;;  %s11204_s0 = sld [smem:[#allocation36_spill]] }
 0x7d5   : > { %v2078_v3 = vld [vmem:[%s11202_s9] sm:$0xff]  ;;  %v2079_v4 = vld [vmem:[%s11202_s9 + $0x8] sm:$0xff]  ;;  %v2081_v6 = vld [vmem:[%s11202_s9 + $0x18] sm:$0xff] }
 0x7d6   : > { %v1961_v48 = vpop.f32.mrb[8].mxu1  ;;  %v8780_v5 = vpack.c.bf16 %v2079_v4, %v2078_v3 }
 0x7d7   : > { %1974 = vrot.lane.b32.xlu0 %v1961_v48, %s11105_s16  ;;  %v8263_v49 = vpop.f32.mrb[9].mxu1  ;;  %s11203_s16 = sld [smem:[#allocation39_spill]] }
 0x7d8   : > { %8781 = vmatpush3.bf16.msra.mxu1 %v8780_v5 }
 0x7d9   : > { %8782 = vmatprep.subr.bf16.mxu1 %v9704_v0  ;;  %v1231_v23 = vld [vmem:[%s11204_s0] sm:$0x3] }
 0x7da   : > { %v2071_v25 = vrot.slane %v1231_v23, %v10342_v22  ;;  %v2076_v28 = vrot.slane %v1231_v23, %v10346_v24 }
 0x7dd   : > { %v2083_v8 = vld [vmem:[%s11203_s16] sm:$0xff]  ;;  %v2084_v9 = vld [vmem:[%s11203_s16 + $0x8] sm:$0xff]  ;;  %v2085_v10 = vld [vmem:[%s11203_s16 + $0x10] sm:$0xff] }
 0x7de   : > { %v8786_v11 = vpack.c.bf16 %v2084_v9, %v2083_v8  ;;  %v2086_v12 = vld [vmem:[%s11203_s16 + $0x18] sm:$0xff]  ;;  %v2087_v14 = vld [vmem:[%s11203_s16 + $0x20] sm:$0xff]  ;;  %v2088_v15 = vld [vmem:[%s11203_s16 + $0x28] sm:$0xff] }
 0x7df   : > { %v8789_v13 = vpack.c.bf16 %v2086_v12, %v2085_v10  ;;  %v8792_v16 = vpack.c.bf16 %v2088_v15, %v2087_v14  ;;  %v2089_v31 = vld [vmem:[%s11203_s16 + $0x30] sm:$0xff]  ;;  %v2090_v32 = vld [vmem:[%s11203_s16 + $0x38] sm:$0xff] }
 0x7e0   : > { %v8795_v33 = vpack.c.bf16 %v2090_v32, %v2089_v31 }
 0x841   : > { %v1967_v50 = vpop.permute.xlu0 %1966 }
 0x842   : > { %v1977_v52 = vsel %vm1308_vm3, %v1466_v38, %v1967_v50 }
 0x845   : > { %v1971_v51 = vpop.permute.xlu1 %1970 }
 0x846   : > { %v1979_v53 = vsel %vm1978_vm4, %v1977_v52, %v1971_v51  ;;  %v7807_v51 = vld [vmem:[%s11162_s29 + $0x20] sm:$0xff]  ;;  %v7808_v52 = vld [vmem:[%s11162_s29 + $0x28] sm:$0xff] }
 0x849   : > { %v1975_v54 = vpop.permute.xlu0 %1974 }
 0x84a   : > { %v1981_v55 = vsel %vm1980_vm5, %v1979_v53, %v1975_v54  ;;  %v8798_v53 = vpack.c.bf16 %v7808_v52, %v7807_v51  ;;  %v7809_v54 = vld [vmem:[%s11162_s29 + $0x30] sm:$0xff] }
 0x84b   : > { %8273 = vmatmul.mubr.msk.f32.vlgmr.msra.gmra.mrb[10].mxu0 %vm1198_vm2, %v1981_v55  ;;  %v7810_v55 = vld [vmem:[%s11162_s29 + $0x38] sm:$0xff]  ;;  %s11229_s29 = sld [smem:[#allocation52_spill]] }
 0x84c   : > { %8302 = vmatprep.mubr.msk.f32.mxu0 %vm9705_vm0, %v9706_v1  ;;  %8787 = vmatpush3.bf16.msra.mxu0 %v8786_v11 }
 0x84d   : > { %8788 = vmatprep.subr.bf16.mxu0 %v9704_v0 }
 0x850   : > { %8790 = vmatpush3.bf16.msra.mxu0 %v8789_v13 }
 0x851   : > { %8791 = vmatprep.subr.bf16.mxu0 %v9704_v0 }
 0x854   : > { %8793 = vmatpush3.bf16.msra.mxu0 %v8792_v16 }
 0x855   : > { %8794 = vmatprep.subr.bf16.mxu0 %v9704_v0 }
 0x858   : > { %8796 = vmatpush3.bf16.msra.mxu0 %v8795_v33 }
 0x859   : > { %8326 = vmatprep.subr.mxu0 %v9706_v1 }
 0x91e   : > { %v2051_v56 = vpop.f32.mrb[10].mxu0 }
 0x91f   : > { %v2052_v57 = vadd.f32 %v2051_v56, %v10230_v39  ;;  %v8274_v58 = vpop.f32.mrb[11].mxu0  ;;  %v2080_v39 = vld [vmem:[%s11202_s9 + $0x10] sm:$0xff]  ;;  %v8801_v56 = vpack.c.bf16 %v7810_v55, %v7809_v54 }
 0x920   : > { %v8783_v7 = vpack.c.bf16 %v2081_v6, %v2080_v39 }
 0x921   : > { %v2055_v59 = vsel %vm1198_vm2, %v2052_v57, 0.0 }
 0x922   : > { %2056 = vadd.xlane.f32.xlu1 %v2055_v59  ;;  %8784 = vmatpush3.bf16.msra.mxu1 %v8783_v7 }
 0x923   : > { %8797 = vmatprep.subr.bf16.mxu1 %v9704_v0 }
 0x9af   : > { %v2057_v60 = vpop.xlane.xlu1 %2056 }
 0x9b0   : > { %v2058_v61 = vmul.f32 0.03125, %v2057_v60  ;;  %v2092_v60 = vld [vmem:[#allocation8] sm:$0x3] }
 0x9b2   : > { %v2059_v62 = vsub.f32 %v2052_v57, %v2058_v61  ;;  %v2269_v61 = vrot.slane %v2092_v60, %v10342_v22 }
 0x9b4   : > { %v2060_v63 = vmul.f32 %v2059_v62, %v2059_v62 }
 0x9b6   : > { %v2061_v2 = vsel %vm1198_vm2, %v2060_v63, 0.0 }
 0x9b7   : > { %2062 = vadd.xlane.f32.xlu0 %v2061_v2  ;;  %v2274_v2 = vrot.slane %v2092_v60, %v10346_v24 }
 0xa44   : > { %v2063_v17 = vpop.xlane.xlu0 %2062 }
 0xa45   : > { %v2064_v18 = vmul.f32 0.03125, %v2063_v17 }
 0xa47   : > { %v2065_v20 = vadd.f32 1e-06, %v2064_v18 }
 0xa49   : > { %9157 = vrsqrt.f32 %v2065_v20 }
 0xa53   : > { %v9158_v26 = vpop.eup %9157 }
 0xa54   : > { %v2067_v27 = vmul.f32 %v9158_v26, %v2059_v62 }
 0xa56   : > { %v2072_v29 = vmul.f32 %v2071_v25, %v2067_v27 }
 0xa58   : > { %v2077_v30 = vadd.f32 %v2076_v28, %v2072_v29 }
 0xa5a   : > { %8284 = vmatmul.mubr.msk.f32.vlgmr.msra.gmra.mrb[10].mxu1 %vm1198_vm2, %v2077_v30 }
 0xa5b   : > { %8313 = vmatprep.mubr.msk.f32.mxu1 %vm9705_vm0, %v9706_v1  ;;  %8799 = vmatpush3.bf16.msra.mxu1 %v8798_v53 }
 0xa5c   : > { %8800 = vmatprep.subr.bf16.mxu1 %v9704_v0 }
 0xa5f   : > { %8802 = vmatpush3.bf16.msra.mxu1 %v8801_v56 }
 0xa60   : > { %8316 = vmatprep.subr.mxu1 %v9706_v1 }
 0xb2d   : > { %v2168_v35 = vpop.f32.mrb[10].mxu1 }
 0xb2e   : > { %v2169_v36 = vadd.f32 %v7803_v34, %v2168_v35  ;;  %v8285_v37 = vpop.f32.mrb[11].mxu1 }
 0xb30   : > { %v2172_v38 = vmax.f32 %v2169_v36, 0.0 }
 0xb32   : > { %8303 = vmatmul.mubr.msk.f32.vlgmr.msra.gmra.mrb[12].mxu0 %vm1122_vm1, %v2172_v38 }
 0xb33   : > { %8328 = vmatprep.mubr.msk.f32.mxu0 %vm9705_vm0, %v9706_v1 }
 0xc05   : > { %v2248_v41 = vpop.f32.mrb[12].mxu0 }
 0xc06   : > { %v2249_v42 = vadd.f32 %v7805_v40, %v2248_v41  ;;  %v8304_v43 = vpop.f32.mrb[13].mxu0 }
 0xc08   : > { %v2252_v44 = vadd.f32 %v2249_v42, %v2077_v30 }
 0xc0a   : > { %v2253_v45 = vsel %vm1198_vm2, %v2252_v44, 0.0 }
 0xc0b   : > { %2254 = vadd.xlane.f32.xlu0 %v2253_v45 }
 0xc98   : > { %v2255_v46 = vpop.xlane.xlu0 %2254 }
 0xc99   : > { %v2256_v47 = vmul.f32 0.03125, %v2255_v46 }
 0xc9b   : > { %v2257_v48 = vsub.f32 %v2252_v44, %v2256_v47 }
 0xc9d   : > { %v2258_v49 = vmul.f32 %v2257_v48, %v2257_v48 }
 0xc9f   : > { %v2259_v50 = vsel %vm1198_vm2, %v2258_v49, 0.0 }
 0xca0   : > { %2260 = vadd.xlane.f32.xlu1 %v2259_v50 }
 0xd2d   : > { %v2261_v57 = vpop.xlane.xlu1 %2260 }
 0xd2e   : > { %v2262_v58 = vmul.f32 0.03125, %v2261_v57 }
 0xd30   : > { %v2263_v59 = vadd.f32 1e-06, %v2262_v58 }
 0xd32   : > { %9159 = vrsqrt.f32 %v2263_v59 }
 0xd3c   : > { %v9160_v62 = vpop.eup %9159 }
 0xd3d   : > { %v2265_v63 = vmul.f32 %v9160_v62, %v2257_v48 }
 0xd3f   : > { %v2270_v3 = vmul.f32 %v2269_v61, %v2265_v63 }
 0xd41   : > { %v10369_v4 = vadd.f32 %v2274_v2, %v2270_v3 }
 0xd43   : > { %8314 = vmatmul.mubr.msk.f32.vlgmr.msra.gmra.mrb[12].mxu1 %vm1198_vm2, %v10369_v4 }
 0xd44   : > { %8318 = vmatprep.mubr.msk.f32.mxu1 %vm9705_vm0, %v9706_v1 }
 0xe16   : > { %v10375_v5 = vpop.f32.mrb[12].mxu1 }
 0xe17   : > { %2527 = vrot.lane.b32.xlu1 %v10375_v5, %s11116_s14  ;;  %2362 = vrot.lane.b32.xlu0 %v10375_v5, %s11118_s12  ;;  %v8315_v39 = vpop.f32.mrb[13].mxu1  ;;  %s11209_s14 = smov 56   ;;  %s11210_s12 = smov 8  }
 0xe18   : > { %v7812_v39 = vld [vmem:[%s11168_s3 + $0x28] sm:$0xff] }
 0xe1b   : > { %2525 = vrot.lane.b32.xlu1 %v10375_v5, %s11114_s8  ;;  %2692 = vrot.lane.b32.xlu0 %v10375_v5, %s11112_s23  ;;  %s11207_s23 = smov 48   ;;  %s11208_s8 = smov 40  }
 0xe1f   : > { %2690 = vrot.lane.b32.xlu1 %v10375_v5, %s11110_s1  ;;  %2857 = vrot.lane.b32.xlu0 %v10375_v5, %s11120_s4  ;;  %s11206_s1 = smov 64   ;;  %s11211_s4 = smov 16  }
 0xe23   : > { %2855 = vrot.lane.b32.xlu1 %v10375_v5, %s11205_s5 }
 0xe89   : > { %v2528_v6 = vpop.permute.xlu1 %2527  ;;  %v2363_v7 = vpop.permute.xlu0 %2362 }
 0xe8a   : > { %8317 = vmatpush3.xpose.msk.msra.mxu1 %vm1308_vm3, %v2363_v7  ;;  %8327 = vmatpush3.xpose.msk.msra.mxu0 %vm1308_vm3, %v2528_v6  ;;  %v7813_v7 = vld [vmem:[%s11168_s3 + $0x30] sm:$0xff] }
 0xe8b   : > { %8336 = vmatprep.subr.mxu0 %v9706_v1  ;;  %8321 = vmatprep.subr.mxu1 %v9706_v1 }
 0xe8d   : > { %v2526_v8 = vpop.permute.xlu1 %2525  ;;  %8319 = vmatmul.mubr.msk.f32.vlgmr.msra.gmra.mrb[14].mxu1 %vm1308_vm3, %v10375_v5  ;;  %v2693_v9 = vpop.permute.xlu0 %2692 }
 0xe8e   : > { %8329 = vmatmul.mubr.msk.f32.vlgmr.msra.gmra.mrb[14].mxu0 %vm1308_vm3, %v2526_v8  ;;  %8323 = vmatprep.mubr.msk.f32.mxu1 %vm9705_vm0, %v9706_v1  ;;  %v7814_v8 = vld [vmem:[%s11168_s3 + $0x38] sm:$0xff] }
 0xe8f   : > { %8337 = vmatpush3.xpose.msk.msra.mxu0 %vm1308_vm3, %v2693_v9  ;;  %8338 = vmatprep.mubr.msk.f32.mxu0 %vm9705_vm0, %v9706_v1  ;;  %v8807_v9 = vpack.c.bf16 %v7814_v8, %v7813_v7 }
 0xe90   : > { %8346 = vmatprep.subr.mxu0 %v9706_v1 }
 0xe91   : > { %v2691_v10 = vpop.permute.xlu1 %2690  ;;  %v2858_v11 = vpop.permute.xlu0 %2857 }
 0xe92   : > { %8339 = vmatmul.mubr.msk.f32.vlgmr.msra.gmra.mrb[16].mxu0 %vm1308_vm3, %v2691_v10 }
 0xe93   : > { %8347 = vmatpush3.xpose.msk.msra.mxu0 %vm1308_vm3, %v2858_v11  ;;  %8348 = vmatprep.mubr.msk.f32.mxu0 %vm9705_vm0, %v9706_v1 }
 0xe94   : > { %8803 = vmatprep.subr.bf16.mxu0 %v9704_v0 }
 0xe95   : > { %v2856_v12 = vpop.permute.xlu1 %2855 }
 0xe96   : > { %8349 = vmatmul.mubr.msk.f32.vlgmr.msra.gmra.mrb[18].mxu0 %vm1308_vm3, %v2856_v12 }
 0xe97   : > { %8364 = vmatprep.mubr.msk.f32.mxu0 %vm9705_vm0, %v9706_v1 }
 0xf60   : > { %v2434_v13 = vpop.f32.mrb[14].mxu1 }
 0xf61   : > { %v8320_v14 = vpop.f32.mrb[15].mxu1  ;;  %v2599_v15 = vpop.f32.mrb[14].mxu0  ;;  %v2438_v16 = vsel %vm1308_vm3, %v2434_v13, -inf }
 0xf62   : > { %v8330_v17 = vpop.f32.mrb[15].mxu0  ;;  %2439 = vmax.xlane.f32.xlu0 %v2438_v16  ;;  %v2603_v18 = vsel %vm1308_vm3, %v2599_v15, -inf }
 0xf63   : > { %2604 = vmax.xlane.f32.xlu1 %v2603_v18 }
 0xf65   : > { %v2764_v20 = vpop.f32.mrb[16].mxu0 }
 0xf66   : > { %v8340_v23 = vpop.f32.mrb[17].mxu0  ;;  %v2768_v25 = vsel %vm1308_vm3, %v2764_v20, -inf }
 0xf67   : > { %2769 = vmax.xlane.f32.xlu0 %v2768_v25 }
 0xf69   : > { %v2929_v26 = vpop.f32.mrb[18].mxu0 }
 0xf6a   : > { %v8350_v27 = vpop.f32.mrb[19].mxu0  ;;  %v2933_v28 = vsel %vm1308_vm3, %v2929_v26, -inf }
 0xf6b   : > { %2934 = vmax.xlane.f32.xlu0 %v2933_v28 }
 0xf74   : > { %2449 = vrot.lane.b32.xlu1 %v10375_v5, %s11206_s1 }
 0xfef   : > { %v2440_v29 = vpop.xlane.xlu0 %2439 }
 0xff0   : > { %v2441_v30 = vsub.f32 %v2434_v13, %v2440_v29  ;;  %v2605_v31 = vpop.xlane.xlu1 %2604 }
 0xff1   : > { %v2606_v32 = vsub.f32 %v2599_v15, %v2605_v31 }
 0xff2   : > { %v2442_v33 = vmul.f32 1.442695, %v2441_v30 }
 0xff3   : > { %v2607_v34 = vmul.f32 1.442695, %v2606_v32  ;;  %v9721_v32 = vmov 0  }
 0xff4   : > { %9161 = vpow2.f32 %v2442_v33  ;;  %v2450_v35 = vpop.permute.xlu1 %2449  ;;  %v2770_v36 = vpop.xlane.xlu0 %2769  ;;  %9138 = vset.pattern.permute.xlu0 %v9721_v32 }
 0xff5   : > { %9163 = vpow2.f32 %v2607_v34  ;;  %v2771_v37 = vsub.f32 %v2764_v20, %v2770_v36  ;;  %8322 = vmatpush3.msra.mxu1 %v2450_v35 }
 0xff6   : > { %8331 = vmatprep.subr.mxu1 %v9706_v1 }
 0xff7   : > { %v2772_v38 = vmul.f32 1.442695, %v2771_v37 }
 0xff8   : > { %v2935_v40 = vpop.xlane.xlu0 %2934 }
 0xff9   : > { %9165 = vpow2.f32 %v2772_v38  ;;  %v2936_v41 = vsub.f32 %v2929_v26, %v2935_v40  ;;  %v7830_v38 = vld [vmem:[%s11202_s9 + $0x20] sm:$0xff]  ;;  %v7831_v40 = vld [vmem:[%s11202_s9 + $0x28] sm:$0xff] }
 0xffb   : > { %v2937_v42 = vmul.f32 1.442695, %v2936_v41  ;;  %v8810_v41 = vpack.c.bf16 %v7831_v40, %v7830_v38 }
 0xffd   : > { %9167 = vpow2.f32 %v2937_v42  ;;  %v7832_v42 = vld [vmem:[%s11202_s9 + $0x30] sm:$0xff] }
 0xffe   : > { %v9162_v43 = vpop.eup %9161 }
 0xfff   : > { %v9164_v44 = vpop.eup %9163  ;;  %v2444_v45 = vsel %vm1308_vm3, %v9162_v43, 0.0 }
0x1000   : > { %2445 = vadd.xlane.f32.xlu1 %v2444_v45  ;;  %v2609_v46 = vsel %vm1308_vm3, %v9164_v44, 0.0  ;;  %v7834_v45 = vld [vmem:[%s11203_s16 + $0x40] sm:$0xff] }
0x1001   : > { %2610 = vadd.xlane.f32.xlu0 %v2609_v46  ;;  %v7835_v46 = vld [vmem:[%s11203_s16 + $0x48] sm:$0xff] }
0x1003   : > { %v9166_v47 = vpop.eup %9165 }
0x1004   : > { %v2774_v48 = vsel %vm1308_vm3, %v9166_v47, 0.0 }
0x1005   : > { %2775 = vadd.xlane.f32.xlu1 %v2774_v48  ;;  %v8816_v48 = vpack.c.bf16 %v7835_v46, %v7834_v45 }
0x1007   : > { %v9168_v49 = vpop.eup %9167 }
0x1008   : > { %v2939_v50 = vsel %vm1308_vm3, %v9168_v49, 0.0 }
0x1009   : > { %2940 = vadd.xlane.f32.xlu0 %v2939_v50 }
0x1016   : > { %2779 = vrot.lane.b32.xlu1 %v10375_v5, %s11207_s23 }
0x101a   : > { %2944 = vrot.lane.b32.xlu1 %v10375_v5, %s11208_s8 }
0x101f   : > { %2614 = vrot.lane.b32.xlu0 %v10375_v5, %s11209_s14  ;;  %v7811_v5 = vld [vmem:[%s11168_s3 + $0x20] sm:$0xff]  ;;  %s11213_s3 = sld [smem:[#allocation30_spill]] }
0x1020   : > { %v8804_v6 = vpack.c.bf16 %v7812_v39, %v7811_v5 }
0x1022   : > { %8805 = vmatpush3.bf16.msra.mxu0 %v8804_v6 }
0x1023   : > { %8806 = vmatprep.subr.bf16.mxu0 %v9704_v0 }
0x1025   : > { %s1102_s21 = scalar_lea.vmem %s11213_s3, %s7784_s20  ;;  %s11215_s3 = sld [smem:[#allocation43_spill]] }
0x1026   : > { %8808 = vmatpush3.bf16.msra.mxu0 %v8807_v9  ;;  %s11216_s20 = smov 72  }
0x1027   : > { %8815 = vmatprep.subr.bf16.mxu0 %v9704_v0 }
0x102b   : > { %v3468_v38 = vld [vmem:[%s11215_s3 + $0x8] sm:$0xff] }
0x108d   : > { %v2446_v51 = vpop.xlane.xlu1 %2445 }
0x108e   : > { %9169 = vrcp.f32 %v2446_v51  ;;  %v2611_v52 = vpop.xlane.xlu0 %2610  ;;  %v7838_v51 = vld [vmem:[%s11203_s16 + $0x60] sm:$0xff] }
0x108f   : > { %9171 = vrcp.f32 %v2611_v52  ;;  %v7839_v52 = vld [vmem:[%s11203_s16 + $0x68] sm:$0xff] }
0x1092   : > { %v2776_v53 = vpop.xlane.xlu1 %2775 }
0x1093   : > { %9173 = vrcp.f32 %v2776_v53  ;;  %v8822_v53 = vpack.c.bf16 %v7839_v52, %v7838_v51  ;;  %v7850_v52 = vld [vmem:[#allocation10 + $0x1] ss:$0 sm:$0xff] }
0x1096   : > { %v2941_v54 = vpop.xlane.xlu0 %2940  ;;  %v2780_v59 = vpop.permute.xlu1 %2779 }
0x1097   : > { %9175 = vrcp.f32 %v2941_v54 }
0x1098   : > { %v9170_v55 = vpop.eup %9169 }
0x1099   : > { %v2448_v56 = vmul.f32 %v9170_v55, %v9162_v43  ;;  %v9172_v57 = vpop.eup %9171  ;;  %v7833_v43 = vld [vmem:[%s11202_s9 + $0x38] sm:$0xff]  ;;  %s11219_s9 = smov 120  }
0x109a   : > { %v2615_v58 = vpop.permute.xlu0 %2614  ;;  %v2613_v60 = vmul.f32 %v9172_v57, %v9164_v44  ;;  %v2945_v2 = vpop.permute.xlu1 %2944  ;;  %v8813_v44 = vpack.c.bf16 %v7833_v43, %v7832_v42  ;;  %v7815_v57 = vld [vmem:[%s11204_s0 + $0x2] sm:$0x3]  ;;  %v3470_v42 = vld [vmem:[%s11215_s3 + $0x18] sm:$0xff]  ;;  %s11218_s0 = smov 88  }
0x109b   : > { %8324 = vmatmul.mubr.msk.f32.vlgmr.msra.gmra.mrb[16].mxu1 %vm1308_vm3, %v2448_v56 }
0x109c   : > { %8332 = vmatpush3.msra.mxu1 %v2615_v58  ;;  %8333 = vmatprep.mubr.msk.f32.mxu1 %vm9705_vm0, %v9706_v1  ;;  %v3124_v58 = vrot.slane %v7815_v57, %v10342_v22 }
0x109d   : > { %8341 = vmatprep.subr.mxu1 %v9706_v1  ;;  %v9174_v61 = vpop.eup %9173 }
0x109e   : > { %v2778_v62 = vmul.f32 %v9174_v61, %v9166_v47  ;;  %v7836_v47 = vld [vmem:[%s11203_s16 + $0x50] sm:$0xff]  ;;  %v3129_v61 = vrot.slane %v7815_v57, %v10346_v24 }
0x109f   : > { %8334 = vmatmul.mubr.msk.f32.vlgmr.msra.gmra.mrb[18].mxu1 %vm1308_vm3, %v2613_v60 }
0x10a0   : > { %8342 = vmatpush3.msra.mxu1 %v2780_v59  ;;  %8343 = vmatprep.mubr.msk.f32.mxu1 %vm9705_vm0, %v9706_v1 }
0x10a1   : > { %8351 = vmatprep.subr.mxu1 %v9706_v1  ;;  %v9176_v63 = vpop.eup %9175 }
0x10a2   : > { %v2943_v3 = vmul.f32 %v9176_v63, %v9168_v49  ;;  %v7837_v49 = vld [vmem:[%s11203_s16 + $0x58] sm:$0xff] }
0x10a3   : > { %8344 = vmatmul.mubr.msk.f32.vlgmr.msra.gmra.mrb[20].mxu1 %vm1308_vm3, %v2778_v62  ;;  %v8819_v50 = vpack.c.bf16 %v7837_v49, %v7836_v47 }
0x10a4   : > { %8352 = vmatpush3.msra.mxu1 %v2945_v2  ;;  %8353 = vmatprep.mubr.msk.f32.mxu1 %vm9705_vm0, %v9706_v1 }
0x10a5   : > { %8809 = vmatprep.subr.bf16.mxu1 %v9704_v0 }
0x10a7   : > { %8354 = vmatmul.mubr.msk.f32.vlgmr.msra.gmra.mrb[22].mxu1 %vm1308_vm3, %v2943_v3 }
0x10a8   : > { %8375 = vmatprep.mubr.msk.f32.mxu1 %vm9705_vm0, %v9706_v1  ;;  %8811 = vmatpush3.bf16.msra.mxu1 %v8810_v41  ;;  %v3469_v41 = vld [vmem:[%s11215_s3 + $0x10] sm:$0xff] }
0x10a9   : > { %8812 = vmatprep.subr.bf16.mxu1 %v9704_v0  ;;  %v8840_v43 = vpack.c.bf16 %v3470_v42, %v3469_v41 }
0x10ac   : > { %8814 = vmatpush3.bf16.msra.mxu1 %v8813_v44 }
0x10ad   : > { %8827 = vmatprep.subr.bf16.mxu1 %v9704_v0 }
0x116e   : > { %v2521_v10 = vpop.f32.mrb[16].mxu1 }
0x116f   : > { %v8325_v11 = vpop.f32.mrb[17].mxu1 }
0x1172   : > { %v2686_v12 = vpop.f32.mrb[18].mxu1 }
0x1173   : > { %3021 = vrot.lane.b32.xlu0 %v2686_v12, %s11210_s12  ;;  %v8335_v13 = vpop.f32.mrb[19].mxu1 }
0x1176   : > { %v2851_v14 = vpop.f32.mrb[20].mxu1 }
0x1177   : > { %3025 = vrot.lane.b32.xlu1 %v2851_v14, %s11211_s4  ;;  %v8345_v15 = vpop.f32.mrb[21].mxu1 }
0x1178   : > { %v7841_v15 = vld [vmem:[%s11203_s16 + $0x78] sm:$0xff] }
0x117a   : > { %v3016_v16 = vpop.f32.mrb[22].mxu1 }
0x117b   : > { %3029 = vrot.lane.b32.xlu0 %v3016_v16, %s11212_s17  ;;  %v8355_v17 = vpop.f32.mrb[23].mxu1 }
0x117c   : > { %v7842_v17 = vld [vmem:[#allocation5 + $0x1] ss:$0 sm:$0xff] }
0x11e5   : > { %v3022_v18 = vpop.permute.xlu0 %3021 }
0x11e6   : > { %v3032_v23 = vsel %vm1308_vm3, %v2521_v10, %v3022_v18  ;;  %v10497_v10 = vand.u32 127, %v2068_v19  ;;  %v7840_v19 = vld [vmem:[%s11203_s16 + $0x70] sm:$0xff]  ;;  %s11220_s16 = smov 80  }
0x11e7   : > { %v8825_v16 = vpack.c.bf16 %v7841_v15, %v7840_v19 }
0x11e8   : > { %vm3459_vm11 = vcmp.le.s32.totalorder %v10497_v10, %v10339_v21 }
0x11e9   : > { %v3026_v20 = vpop.permute.xlu1 %3025 }
0x11ea   : > { %v3033_v25 = vsel %vm1978_vm4, %v3032_v23, %v3026_v20 }
0x11ed   : > { %v3030_v26 = vpop.permute.xlu0 %3029 }
0x11ee   : > { %v3034_v27 = vsel %vm1980_vm5, %v3033_v25, %v3030_v26 }
0x11ef   : > { %8365 = vmatmul.mubr.msk.f32.vlgmr.msra.gmra.mrb[20].mxu0 %vm1198_vm2, %v3034_v27 }
0x11f0   : > { %8394 = vmatprep.mubr.msk.f32.mxu0 %vm9705_vm0, %v9706_v1  ;;  %8817 = vmatpush3.bf16.msra.mxu0 %v8816_v48 }
0x11f1   : > { %8818 = vmatprep.subr.bf16.mxu0 %v9704_v0 }
0x11f4   : > { %8820 = vmatpush3.bf16.msra.mxu0 %v8819_v50  ;;  %v7849_v50 = vld [vmem:[#allocation10] ss:$0 sm:$0xff] }
0x11f5   : > { %8821 = vmatprep.subr.bf16.mxu0 %v9704_v0 }
0x11f8   : > { %8823 = vmatpush3.bf16.msra.mxu0 %v8822_v53 }
0x11f9   : > { %8824 = vmatprep.subr.bf16.mxu0 %v9704_v0 }
0x11fc   : > { %8826 = vmatpush3.bf16.msra.mxu0 %v8825_v16 }
0x11fd   : > { %8425 = vmatprep.subr.mxu0 %v9706_v1 }
0x12c2   : > { %v3104_v28 = vpop.f32.mrb[20].mxu0 }
0x12c3   : > { %v3105_v29 = vadd.f32 %v3104_v28, %v10369_v4  ;;  %v8366_v30 = vpop.f32.mrb[21].mxu0  ;;  %v3334_v4 = vld [vmem:[%s1102_s21] sm:$0xff]  ;;  %s11214_s21 = sld [smem:[#allocation41_spill]] }
0x12c5   : > { %v3108_v31 = vsel %vm1198_vm2, %v3105_v29, 0.0 }
0x12c6   : > { %3109 = vadd.xlane.f32.xlu1 %v3108_v31 }
0x12c9   : > { %v3343_v62 = vld [vmem:[%s11214_s21] sm:$0xff]  ;;  %v3344_v63 = vld [vmem:[%s11214_s21 + $0x8] sm:$0xff]  ;;  %v3345_v39 = vld [vmem:[%s11214_s21 + $0x10] sm:$0xff] }
0x12ca   : > { %v8828_v3 = vpack.c.bf16 %v3344_v63, %v3343_v62  ;;  %v3346_v6 = vld [vmem:[%s11214_s21 + $0x18] sm:$0xff]  ;;  %v3347_v8 = vld [vmem:[%s11214_s21 + $0x20] sm:$0xff]  ;;  %v3348_v9 = vld [vmem:[%s11214_s21 + $0x28] sm:$0xff] }
0x12cb   : > { %v8831_v7 = vpack.c.bf16 %v3346_v6, %v3345_v39  ;;  %v8834_v11 = vpack.c.bf16 %v3348_v9, %v3347_v8  ;;  %v3349_v13 = vld [vmem:[%s11214_s21 + $0x30] sm:$0x3]  ;;  %s11221_s21 = smov 112  }
0x1353   : > { %v3110_v33 = vpop.xlane.xlu1 %3109 }
0x1354   : > { %v3111_v34 = vmul.f32 0.03125, %v3110_v33 }
0x1356   : > { %v3112_v35 = vsub.f32 %v3105_v29, %v3111_v34  ;;  %v9259_v29 = vld [vmem:[%s10217_s22] ss:$0 sm:$0xff]  ;;  %s11217_s22 = smov 96  }
0x1358   : > { %v3113_v36 = vmul.f32 %v3112_v35, %v3112_v35 }
0x135a   : > { %v3114_v37 = vsel %vm1198_vm2, %v3113_v36, 0.0 }
0x135b   : > { %3115 = vadd.xlane.f32.xlu0 %v3114_v37 }
0x1371   : > { %3338 = vperm.xlu0 %9138, %v3334_v4   ;;  %v3467_v4 = vld [vmem:[%s11215_s3] sm:$0xff] }
0x1372   : > { %v8837_v40 = vpack.c.bf16 %v3468_v38, %v3467_v4 }
0x13e8   : > { %v3116_v54 = vpop.xlane.xlu0 %3115 }
0x13e9   : > { %v3117_v55 = vmul.f32 0.03125, %v3116_v54 }
0x13eb   : > { %v3118_v56 = vadd.f32 1e-06, %v3117_v55 }
0x13ed   : > { %9177 = vrsqrt.f32 %v3118_v56 }
0x13f0   : > { %v3339_v12 = vpop.permute.xlu0 %3338 }
0x13f1   : > { %vm3340_vm6 = vcmp.eq.s32.totalorder %v10497_v10, %v3339_v12 }
0x13f2   : > { %v7846_v14 = vsel %vm3340_vm6, 1.0, %v9706_v1 }
0x13f7   : > { %v9178_v59 = vpop.eup %9177 }
0x13f8   : > { %v3120_v60 = vmul.f32 %v9178_v59, %v3112_v35 }
0x13fa   : > { %v3125_v2 = vmul.f32 %v3124_v58, %v3120_v60 }
0x13fc   : > { %v10485_v5 = vadd.f32 %v3129_v61, %v3125_v2  ;;  %v3455_v2 = vld [vmem:[%s1098_s25] sm:$0x1]  ;;  %s11225_s25 = sld [smem:[#allocation44_spill]] }
0x13fd   : > { %vm3458_vm9 = vcmp.ne.s32.totalorder %v3455_v2, 0 }
0x13fe   : > { %8376 = vmatmul.mubr.msk.f32.vlgmr.msra.gmra.mrb[24].mxu1 %vm1198_vm2, %v10485_v5 }
0x13ff   : > { %8829 = vmatpush3.bf16.msra.mxu1 %v8828_v3  ;;  %8411 = vmatprep.mubr.msk.f32.mxu1 %vm9705_vm0, %v9706_v1  ;;  %v3460_v3 = vsel %vm3458_vm9, 1, %v9721_v32 }
0x1400   : > { %8830 = vmatprep.subr.bf16.mxu1 %v9704_v0  ;;  %v3464_v39 = vrot.slane %v3460_v3, %v10342_v22 }
0x1402   : > { %vm3465_vm10 = vcmp.eq.s32.totalorder %v3464_v39, 1  ;;  %v3472_v2 = vld [vmem:[%s11225_s25 + $0x8] sm:$0xff] }
0x1403   : > { %8832 = vmatpush3.bf16.msra.mxu1 %v8831_v7  ;;  %vm10573_vm12 = vmand %vm3465_vm10, %vm3459_vm11 }
0x1404   : > { %8833 = vmatprep.subr.bf16.mxu1 %v9704_v0 }
0x1407   : > { %8835 = vmatpush3.bf16.msra.mxu1 %v8834_v11 }
0x1408   : > { %8409 = vmatprep.subr.mxu1 %v9706_v1 }
0x140b   : > { %8410 = vmatpush3.msk.msra.mxu1 %vm3354_vm7, %v3349_v13 }
0x140c   : > { %8412 = vmatmul.mubr.msk.f32.vlgmr.msra.gmra.mrb[26].mxu1 %vm3350_vm8, %v7846_v14  ;;  %8836 = vmatprep.subr.bf16.mxu1 %v9704_v0 }
0x140d   : > { %8422 = vmatprep.mubr.msk.f32.mxu1 %vm9705_vm0, %v9706_v1  ;;  %8838 = vmatpush3.bf16.msra.mxu1 %v8837_v40 }
0x140e   : > { %8839 = vmatprep.subr.bf16.mxu1 %v9704_v0 }
0x1411   : > { %8841 = vmatpush3.bf16.msra.mxu1 %v8840_v43 }
0x1412   : > { %8435 = vmatprep.subr.mxu1 %v9706_v1 }
0x14d1   : > { %v3226_v18 = vpop.f32.mrb[24].mxu1 }
0x14d2   : > { %v3227_v20 = vadd.f32 %v7842_v17, %v3226_v18  ;;  %v8377_v23 = vpop.f32.mrb[25].mxu1 }
0x14d4   : > { %v3230_v25 = vmax.f32 %v3227_v20, 0.0 }
0x14d6   : > { %8395 = vmatmul.mubr.msk.f32.vlgmr.msra.gmra.mrb[22].mxu0 %vm1122_vm1, %v3230_v25 }
0x14d7   : > { %8427 = vmatprep.mubr.msk.f32.mxu0 %vm9705_vm0, %v9706_v1 }
0x14df   : > { %v3424_v26 = vpop.f32.mrb[26].mxu1 }
0x14e0   : > { %v3428_v27 = vmul.f32 5.656854, %v3424_v26  ;;  %v8413_v28 = vpop.f32.mrb[27].mxu1 }
0x14e2   : > { %v3429_v30 = vadd.f32 %v9259_v29, %v3428_v27 }
0x14e4   : > { %v3432_v31 = vsel %vm1198_vm2, %v3429_v30, 0.0 }
0x14e5   : > { %3433 = vadd.xlane.f32.xlu1 %v3432_v31 }
0x1572   : > { %v3434_v33 = vpop.xlane.xlu1 %3433 }
0x1573   : > { %v3435_v34 = vmul.f32 0.03125, %v3434_v33 }
0x1575   : > { %v3436_v35 = vsub.f32 %v3429_v30, %v3435_v34 }
0x1577   : > { %v3437_v36 = vmul.f32 %v3436_v35, %v3436_v35 }
0x1579   : > { %v3438_v37 = vsel %vm1198_vm2, %v3437_v36, 0.0 }
0x157a   : > { %3439 = vadd.xlane.f32.xlu1 %v3438_v37 }
0x15a9   : > { %v10522_v44 = vpop.f32.mrb[22].mxu0 }
0x15aa   : > { %v8396_v45 = vpop.f32.mrb[23].mxu0 }
0x1607   : > { %v3440_v46 = vpop.xlane.xlu1 %3439 }
0x1608   : > { %v3441_v47 = vmul.f32 0.03125, %v3440_v46 }
0x160a   : > { %v3442_v48 = vadd.f32 1e-06, %v3441_v47 }
0x160c   : > { %9179 = vrsqrt.f32 %v3442_v48 }
0x1616   : > { %v9180_v49 = vpop.eup %9179 }
0x1617   : > { %v3444_v51 = vmul.f32 %v9180_v49, %v3436_v35 }
0x1619   : > { %v3449_v53 = vmul.f32 %v7849_v50, %v3444_v51 }
0x161b   : > { %v10524_v54 = vadd.f32 %v7850_v52, %v3449_v53 }
0x161d   : > { %8423 = vmatmul.mubr.msk.f32.vlgmr.msra.gmra.mrb[28].mxu1 %vm1198_vm2, %v10524_v54 }
0x161e   : > { %8437 = vmatprep.mubr.msk.f32.mxu1 %vm9705_vm0, %v9706_v1 }
0x16f0   : > { %v10530_v55 = vpop.f32.mrb[28].mxu1 }
0x16f1   : > { %4048 = vrot.lane.b32.xlu0 %v10530_v55, %s11216_s20  ;;  %3550 = vrot.lane.b32.xlu1 %v10530_v55, %s11217_s22  ;;  %v8424_v56 = vpop.f32.mrb[29].mxu1 }
0x16f5   : > { %3716 = vrot.lane.b32.xlu1 %v10530_v55, %s11218_s0 }
0x16f9   : > { %3714 = vrot.lane.b32.xlu1 %v10530_v55, %s11219_s9 }
0x16fd   : > { %3882 = vrot.lane.b32.xlu1 %v10530_v55, %s11220_s16 }
0x1701   : > { %3880 = vrot.lane.b32.xlu1 %v10530_v55, %s11221_s21 }
0x1705   : > { %4046 = vrot.lane.b32.xlu1 %v10530_v55, %s11205_s5 }
0x1763   : > { %v3551_v57 = vpop.permute.xlu1 %3550  ;;  %v4049_v62 = vpop.permute.xlu0 %4048 }
0x1764   : > { %8426 = vmatpush3.xpose.msk.msra.mxu0 %vm1308_vm3, %v3551_v57 }
0x1765   : > { %8430 = vmatprep.subr.mxu0 %v9706_v1 }
0x1767   : > { %8428 = vmatmul.mubr.msk.f32.vlgmr.msra.gmra.mrb[24].mxu0 %vm1308_vm3, %v10530_v55  ;;  %v3717_v58 = vpop.permute.xlu1 %3716 }
0x1768   : > { %8436 = vmatpush3.xpose.msk.msra.mxu1 %vm1308_vm3, %v3717_v58  ;;  %8432 = vmatprep.mubr.msk.f32.mxu0 %vm9705_vm0, %v9706_v1 }
0x1769   : > { %8445 = vmatprep.subr.mxu1 %v9706_v1 }
0x176b   : > { %v3715_v59 = vpop.permute.xlu1 %3714 }
0x176c   : > { %8438 = vmatmul.mubr.msk.f32.vlgmr.msra.gmra.mrb[30].mxu1 %vm1308_vm3, %v3715_v59 }
0x176d   : > { %8447 = vmatprep.mubr.msk.f32.mxu1 %vm9705_vm0, %v9706_v1 }
0x176f   : > { %v3883_v60 = vpop.permute.xlu1 %3882 }
0x1770   : > { %8446 = vmatpush3.xpose.msk.msra.mxu1 %vm1308_vm3, %v3883_v60 }
0x1771   : > { %8455 = vmatprep.subr.mxu1 %v9706_v1 }
0x1773   : > { %v3881_v61 = vpop.permute.xlu1 %3880 }
0x1774   : > { %8448 = vmatmul.mubr.msk.f32.vlgmr.msra.gmra.mrb[32].mxu1 %vm1308_vm3, %v3881_v61 }
0x1775   : > { %8456 = vmatpush3.xpose.msk.msra.mxu1 %vm1308_vm3, %v4049_v62  ;;  %8457 = vmatprep.mubr.msk.f32.mxu1 %vm9705_vm0, %v9706_v1 }
0x1776   : > { %8842 = vmatprep.subr.bf16.mxu1 %v9704_v0 }
0x1777   : > { %v4047_v63 = vpop.permute.xlu1 %4046 }
0x1778   : > { %8458 = vmatmul.mubr.msk.f32.vlgmr.msra.gmra.mrb[34].mxu1 %vm1308_vm3, %v4047_v63  ;;  %v3471_v63 = vld [vmem:[%s11225_s25] sm:$0xff] }
0x1779   : > { %8473 = vmatprep.mubr.msk.f32.mxu1 %vm9705_vm0, %v9706_v1  ;;  %v8843_v3 = vpack.c.bf16 %v3472_v2, %v3471_v63 }
0x177b   : > { %8844 = vmatpush3.bf16.msra.mxu1 %v8843_v3 }
0x177c   : > { %8845 = vmatprep.subr.bf16.mxu1 %v9704_v0 }
0x183a   : > { %v3622_v7 = vpop.f32.mrb[24].mxu0 }
0x183b   : > { %v3626_v8 = vsel %vm10573_vm12, %v3622_v7, -1e+09  ;;  %v8429_v9 = vpop.f32.mrb[25].mxu0 }
0x183c   : > { %v3627_v11 = vsel %vm1308_vm3, %v3626_v8, -inf  ;;  %v3474_v9 = vld [vmem:[%s11225_s25 + $0x18] sm:$0xff] }
0x183d   : > { %3628 = vmax.xlane.f32.xlu0 %v3627_v11 }
0x183f   : > { %v3788_v12 = vpop.f32.mrb[30].mxu1 }
0x1840   : > { %v3792_v32 = vsel %vm10573_vm12, %v3788_v12, -1e+09  ;;  %v8439_v13 = vpop.f32.mrb[31].mxu1 }
0x1841   : > { %v3793_v14 = vsel %vm1308_vm3, %v3792_v32, -inf }
0x1842   : > { %3794 = vmax.xlane.f32.xlu1 %v3793_v14 }
0x1847   : > { %v3954_v21 = vpop.f32.mrb[32].mxu1 }
0x1848   : > { %v3958_v10 = vsel %vm10573_vm12, %v3954_v21, -1e+09  ;;  %v8449_v19 = vpop.f32.mrb[33].mxu1 }
0x1849   : > { %v3959_v15 = vsel %vm1308_vm3, %v3958_v10, -inf  ;;  %v7844_v19 = vld [vmem:[#allocation7 + $0x1] ss:$0 sm:$0xff] }
0x184a   : > { %3960 = vmax.xlane.f32.xlu0 %v3959_v15  ;;  %v3307_v15 = vadd.f32 %v7844_v19, %v10522_v44 }
0x184b   : > { %v4120_v16 = vpop.f32.mrb[34].mxu1 }
0x184c   : > { %v4124_v17 = vsel %vm10573_vm12, %v4120_v16, -1e+09  ;;  %v8459_v18 = vpop.f32.mrb[35].mxu1  ;;  %v3310_v16 = vadd.f32 %v3307_v15, %v10485_v5 }
0x184d   : > { %v4125_v20 = vsel %vm1308_vm3, %v4124_v17, -inf }
0x184e   : > { %4126 = vmax.xlane.f32.xlu0 %v4125_v20 }
0x1853   : > { %3638 = vrot.lane.b32.xlu1 %v10530_v55, %s11206_s1 }
0x18ca   : > { %v3629_v23 = vpop.xlane.xlu0 %3628 }
0x18cb   : > { %v3630_v25 = vsub.f32 %v3626_v8, %v3629_v23  ;;  %v3473_v8 = vld [vmem:[%s11225_s25 + $0x10] sm:$0xff] }
0x18cc   : > { %v8846_v11 = vpack.c.bf16 %v3474_v9, %v3473_v8 }
0x18cd   : > { %v3631_v26 = vmul.f32 1.442695, %v3630_v25 }
0x18ce   : > { %8847 = vmatpush3.bf16.msra.mxu1 %v8846_v11 }
0x18cf   : > { %9181 = vpow2.f32 %v3631_v26  ;;  %v3795_v27 = vpop.xlane.xlu1 %3794  ;;  %8854 = vmatprep.subr.bf16.mxu1 %v9704_v0 }
0x18d0   : > { %v3796_v28 = vsub.f32 %v3792_v32, %v3795_v27 }
0x18d2   : > { %v3797_v29 = vmul.f32 1.442695, %v3796_v28 }
0x18d3   : > { %v3639_v30 = vpop.permute.xlu1 %3638 }
0x18d4   : > { %9183 = vpow2.f32 %v3797_v29  ;;  %8431 = vmatpush3.msra.mxu0 %v3639_v30 }
0x18d5   : > { %8440 = vmatprep.subr.mxu0 %v9706_v1 }
0x18d7   : > { %v3961_v31 = vpop.xlane.xlu0 %3960 }
0x18d8   : > { %v3962_v33 = vsub.f32 %v3958_v10, %v3961_v31 }
0x18d9   : > { %v9182_v34 = vpop.eup %9181 }
0x18da   : > { %v3963_v35 = vmul.f32 1.442695, %v3962_v33  ;;  %v3633_v36 = vsel %vm1308_vm3, %v9182_v34, 0.0 }
0x18db   : > { %3634 = vadd.xlane.f32.xlu1 %v3633_v36  ;;  %v4127_v37 = vpop.xlane.xlu0 %4126  ;;  %v4327_v36 = vld [vmem:[%s11226_s24] sm:$0xff] }
0x18dc   : > { %9185 = vpow2.f32 %v3963_v35  ;;  %v4128_v4 = vsub.f32 %v4124_v17, %v4127_v37  ;;  %v3311_v17 = vsel %vm1198_vm2, %v3310_v16, 0.0  ;;  %v4328_v37 = vld [vmem:[%s11226_s24 + $0x8] sm:$0xff] }
0x18de   : > { %v9184_v38 = vpop.eup %9183  ;;  %v4129_v40 = vmul.f32 1.442695, %v4128_v4  ;;  %v8855_v4 = vpack.c.bf16 %v4328_v37, %v4327_v36 }
0x18df   : > { %v3799_v41 = vsel %vm1308_vm3, %v9184_v38, 0.0 }
0x18e0   : > { %9187 = vpow2.f32 %v4129_v40  ;;  %3800 = vadd.xlane.f32.xlu0 %v3799_v41  ;;  %v4330_v40 = vld [vmem:[%s11226_s24 + $0x18] sm:$0xff] }
0x18e6   : > { %v9186_v42 = vpop.eup %9185 }
0x18e7   : > { %v3965_v43 = vsel %vm1308_vm3, %v9186_v42, 0.0 }
0x18e8   : > { %3966 = vadd.xlane.f32.xlu1 %v3965_v43 }
0x18ea   : > { %v9188_v45 = vpop.eup %9187 }
0x18eb   : > { %v4131_v46 = vsel %vm1308_vm3, %v9188_v45, 0.0 }
0x18ec   : > { %4132 = vadd.xlane.f32.xlu0 %v4131_v46 }
0x18f9   : > { %3970 = vrot.lane.b32.xlu1 %v10530_v55, %s11207_s23 }
0x18fd   : > { %4136 = vrot.lane.b32.xlu1 %v10530_v55, %s11208_s8 }
0x1902   : > { %3804 = vrot.lane.b32.xlu0 %v10530_v55, %s11209_s14 }
0x1968   : > { %v3635_v47 = vpop.xlane.xlu1 %3634 }
0x1969   : > { %9189 = vrcp.f32 %v3635_v47 }
0x196d   : > { %v3801_v48 = vpop.xlane.xlu0 %3800 }
0x196e   : > { %9191 = vrcp.f32 %v3801_v48 }
0x1973   : > { %v9190_v49 = vpop.eup %9189 }
0x1974   : > { %v3637_v50 = vmul.f32 %v9190_v49, %v9182_v34 }
0x1975   : > { %v3967_v51 = vpop.xlane.xlu1 %3966 }
0x1976   : > { %9193 = vrcp.f32 %v3967_v51  ;;  %8433 = vmatmul.mubr.msk.f32.vlgmr.msra.gmra.mrb[26].mxu0 %vm1308_vm3, %v3637_v50  ;;  %v3150_v50 = vld [vmem:[#allocation8 + $0x2] sm:$0x3] }
0x1977   : > { %8442 = vmatprep.mubr.msk.f32.mxu0 %vm9705_vm0, %v9706_v1  ;;  %v3327_v51 = vrot.slane %v3150_v50, %v10342_v22 }
0x1978   : > { %v9192_v53 = vpop.eup %9191 }
0x1979   : > { %v4133_v52 = vpop.xlane.xlu0 %4132  ;;  %v3803_v56 = vmul.f32 %v9192_v53, %v9184_v38  ;;  %v3971_v57 = vpop.permute.xlu1 %3970  ;;  %v4329_v38 = vld [vmem:[%s11226_s24 + $0x10] sm:$0xff] }
0x197a   : > { %9195 = vrcp.f32 %v4133_v52  ;;  %v8858_v41 = vpack.c.bf16 %v4330_v40, %v4329_v38 }
0x197d   : > { %v3805_v58 = vpop.permute.xlu0 %3804  ;;  %v4137_v60 = vpop.permute.xlu1 %4136 }
0x197e   : > { %8441 = vmatpush3.msra.mxu0 %v3805_v58 }
0x197f   : > { %8443 = vmatmul.mubr.msk.f32.vlgmr.msra.gmra.mrb[28].mxu0 %vm1308_vm3, %v3803_v56  ;;  %8450 = vmatprep.subr.mxu0 %v9706_v1  ;;  %v3332_v56 = vrot.slane %v3150_v50, %v10346_v24 }
0x1980   : > { %v9194_v55 = vpop.eup %9193  ;;  %8451 = vmatpush3.msra.mxu0 %v3971_v57  ;;  %8452 = vmatprep.mubr.msk.f32.mxu0 %vm9705_vm0, %v9706_v1 }
0x1981   : > { %v3969_v59 = vmul.f32 %v9194_v55, %v9186_v42  ;;  %8460 = vmatprep.subr.mxu0 %v9706_v1  ;;  %v4323_v55 = vld [vmem:[%s11227_s13] sm:$0xff] }
0x1983   : > { %8453 = vmatmul.mubr.msk.f32.vlgmr.msra.gmra.mrb[30].mxu0 %vm1308_vm3, %v3969_v59  ;;  %v4324_v59 = vld [vmem:[%s11227_s13 + $0x8] sm:$0xff] }
0x1984   : > { %v9196_v61 = vpop.eup %9195  ;;  %8461 = vmatpush3.msra.mxu0 %v4137_v60  ;;  %8462 = vmatprep.mubr.msk.f32.mxu0 %vm9705_vm0, %v9706_v1  ;;  %v8849_v60 = vpack.c.bf16 %v4324_v59, %v4323_v55 }
0x1985   : > { %v4135_v62 = vmul.f32 %v9196_v61, %v9188_v45  ;;  %8848 = vmatprep.subr.bf16.mxu0 %v9704_v0  ;;  %v4325_v61 = vld [vmem:[%s11227_s13 + $0x10] sm:$0xff] }
0x1987   : > { %8463 = vmatmul.mubr.msk.f32.vlgmr.msra.gmra.mrb[32].mxu0 %vm1308_vm3, %v4135_v62  ;;  %v4326_v62 = vld [vmem:[%s11227_s13 + $0x18] sm:$0xff] }
0x1988   : > { %8484 = vmatprep.mubr.msk.f32.mxu0 %vm9705_vm0, %v9706_v1  ;;  %8850 = vmatpush3.bf16.msra.mxu0 %v8849_v60  ;;  %v8852_v63 = vpack.c.bf16 %v4326_v62, %v4325_v61 }
0x1989   : > { %8851 = vmatprep.subr.bf16.mxu0 %v9704_v0 }
0x198c   : > { %8853 = vmatpush3.bf16.msra.mxu0 %v8852_v63 }
0x198d   : > { %8498 = vmatprep.subr.mxu0 %v9706_v1 }
0x1a49   : > { %v3710_v39 = vpop.f32.mrb[26].mxu0 }
0x1a4a   : > { %v8434_v7 = vpop.f32.mrb[27].mxu0 }
0x1a4b   : > { %v3475_v7 = vld [vmem:[#allocation11] sm:$0x3] }
0x1a4c   : > { %v4316_v8 = vrot.slane %v3475_v7, %v10342_v22 }
0x1a52   : > { %v3876_v12 = vpop.f32.mrb[28].mxu0 }
0x1a53   : > { %4213 = vrot.lane.b32.xlu0 %v3876_v12, %s11210_s12  ;;  %v8444_v32 = vpop.f32.mrb[29].mxu0  ;;  %v4321_v12 = vrot.slane %v3475_v7, %v10346_v24 }
0x1a56   : > { %v4042_v13 = vpop.f32.mrb[30].mxu0 }
0x1a57   : > { %4217 = vrot.lane.b32.xlu1 %v4042_v13, %s11211_s4  ;;  %v8454_v14 = vpop.f32.mrb[31].mxu0 }
0x1a5a   : > { %v4208_v21 = vpop.f32.mrb[32].mxu0 }
0x1a5b   : > { %4221 = vrot.lane.b32.xlu0 %v4208_v21, %s11212_s17  ;;  %v8464_v10 = vpop.f32.mrb[33].mxu0 }
0x1a7b   : > { %3312 = vadd.xlane.f32.xlu1 %v3311_v17 }
0x1ac5   : > { %v4214_v18 = vpop.permute.xlu0 %4213 }
0x1ac6   : > { %v4224_v23 = vsel %vm1308_vm3, %v3710_v39, %v4214_v18 }
0x1ac9   : > { %v4218_v20 = vpop.permute.xlu1 %4217 }
0x1aca   : > { %v4225_v25 = vsel %vm1978_vm4, %v4224_v23, %v4218_v20 }
0x1acd   : > { %v4222_v26 = vpop.permute.xlu0 %4221 }
0x1ace   : > { %v4226_v27 = vsel %vm1980_vm5, %v4225_v25, %v4222_v26 }
0x1acf   : > { %8474 = vmatmul.mubr.msk.f32.vlgmr.msra.gmra.mrb[36].mxu1 %vm1198_vm2, %v4226_v27 }
0x1ad0   : > { %8495 = vmatprep.mubr.msk.f32.mxu1 %vm9705_vm0, %v9706_v1  ;;  %8856 = vmatpush3.bf16.msra.mxu1 %v8855_v4 }
0x1ad1   : > { %8857 = vmatprep.subr.bf16.mxu1 %v9704_v0 }
0x1ad4   : > { %8859 = vmatpush3.bf16.msra.mxu1 %v8858_v41 }
0x1ad5   : > { %8508 = vmatprep.subr.mxu1 %v9706_v1 }
0x1b08   : > { %v3313_v5 = vpop.xlane.xlu1 %3312 }
0x1b09   : > { %v3314_v44 = vmul.f32 0.03125, %v3313_v5 }
0x1b0b   : > { %v3315_v28 = vsub.f32 %v3310_v16, %v3314_v44 }
0x1b0d   : > { %v3316_v34 = vmul.f32 %v3315_v28, %v3315_v28 }
0x1b0f   : > { %v3317_v35 = vsel %vm1198_vm2, %v3316_v34, 0.0 }
0x1ba2   : > { %v4296_v29 = vpop.f32.mrb[36].mxu1 }
0x1ba3   : > { %v4297_v30 = vadd.f32 %v4296_v29, %v10524_v54  ;;  %v8475_v31 = vpop.f32.mrb[37].mxu1 }
0x1ba5   : > { %v4300_v33 = vsel %vm1198_vm2, %v4297_v30, 0.0 }
0x1ba6   : > { %4301 = vadd.xlane.f32.xlu0 %v4300_v33 }
0x1baa   : > { %3318 = vadd.xlane.f32.xlu0 %v3317_v35 }
0x1c33   : > { %v4302_v54 = vpop.xlane.xlu0 %4301 }
0x1c34   : > { %v4303_v42 = vmul.f32 0.03125, %v4302_v54 }
0x1c36   : > { %v4304_v43 = vsub.f32 %v4297_v30, %v4303_v42 }
0x1c37   : > { %v3319_v45 = vpop.xlane.xlu0 %3318 }
0x1c38   : > { %v3320_v46 = vmul.f32 0.03125, %v3319_v45  ;;  %v4305_v47 = vmul.f32 %v4304_v43, %v4304_v43 }
0x1c3a   : > { %v3321_v48 = vadd.f32 1e-06, %v3320_v46  ;;  %v4306_v49 = vsel %vm1198_vm2, %v4305_v47, 0.0 }
0x1c3b   : > { %4307 = vadd.xlane.f32.xlu1 %v4306_v49 }
0x1c3c   : > { %9197 = vrsqrt.f32 %v3321_v48 }
0x1c46   : > { %v9198_v52 = vpop.eup %9197 }
0x1c47   : > { %v3323_v53 = vmul.f32 %v9198_v52, %v3315_v28 }
0x1c49   : > { %v3328_v57 = vmul.f32 %v3327_v51, %v3323_v53 }
0x1c4b   : > { %v10647_v58 = vadd.f32 %v3332_v56, %v3328_v57 }
0x1c4d   : > { %8496 = vmatmul.mubr.msk.f32.vlgmr.msra.gmra.mrb[38].mxu1 %vm1198_vm2, %v10647_v58 }
0x1c4e   : > { %8510 = vmatprep.mubr.msk.f32.mxu1 %vm9705_vm0, %v9706_v1 }
0x1cc8   : > { %v4308_v2 = vpop.xlane.xlu1 %4307 }
0x1cc9   : > { %v4309_v3 = vmul.f32 0.03125, %v4308_v2 }
0x1ccb   : > { %v4310_v39 = vadd.f32 1e-06, %v4309_v3 }
0x1ccd   : > { %9199 = vrsqrt.f32 %v4310_v39 }
0x1cd7   : > { %v9200_v9 = vpop.eup %9199 }
0x1cd8   : > { %v4312_v11 = vmul.f32 %v9200_v9, %v4304_v43 }
0x1cda   : > { %v4317_v32 = vmul.f32 %v4316_v8, %v4312_v11 }
0x1cdc   : > { %v10661_v13 = vadd.f32 %v4321_v12, %v4317_v32 }
0x1cde   : > { %8485 = vmatmul.mubr.msk.f32.vlgmr.msra.gmra.mrb[34].mxu0 %vm1198_vm2, %v10661_v13 }
0x1cdf   : > { %8500 = vmatprep.mubr.msk.f32.mxu0 %vm9705_vm0, %v9706_v1 }
0x1d20   : > { %v10667_v14 = vpop.f32.mrb[38].mxu1 }
0x1d21   : > { %4647 = vrot.lane.b32.xlu0 %v10667_v14, %s11219_s9  ;;  %v8497_v21 = vpop.f32.mrb[39].mxu1  ;;  %8499 = vmatpush3.xpose.msk.msra.mxu0 %vm1308_vm3, %v10667_v14 }
0x1d22   : > { %8503 = vmatprep.subr.mxu0 %v9706_v1 }
0x1d93   : > { %v4648_v10 = vpop.permute.xlu0 %4647 }
0x1d94   : > { %8509 = vmatpush3.xpose.msk.msra.mxu1 %vm1308_vm3, %v4648_v10 }
0x1d95   : > { %8518 = vmatprep.subr.mxu1 %v9706_v1 }
0x1db1   : > { %v4405_v19 = vpop.f32.mrb[34].mxu0 }
0x1db2   : > { %4645 = vrot.lane.b32.xlu1 %v4405_v19, %s11219_s9  ;;  %v8486_v15 = vpop.f32.mrb[35].mxu0  ;;  %4810 = vrot.lane.b32.xlu0 %v4405_v19, %s11221_s21 }
0x1db3   : > { %8501 = vmatmul.mubr.msk.f32.vlgmr.msra.gmra.mrb[36].mxu0 %vm1308_vm3, %v4405_v19  ;;  %v4332_v15 = vld [vmem:[%s11228_s27 + $0x8] sm:$0xff] }
0x1db4   : > { %8505 = vmatprep.mubr.msk.f32.mxu0 %vm9705_vm0, %v9706_v1 }
0x1db6   : > { %4812 = vrot.lane.b32.xlu1 %v10667_v14, %s11221_s21  ;;  %4975 = vrot.lane.b32.xlu0 %v4405_v19, %s11205_s5  ;;  %v4331_v19 = vld [vmem:[%s11228_s27] sm:$0xff] }
0x1dba   : > { %4977 = vrot.lane.b32.xlu1 %v10667_v14, %s11205_s5 }
0x1e24   : > { %v4646_v16 = vpop.permute.xlu1 %4645  ;;  %v4811_v18 = vpop.permute.xlu0 %4810 }
0x1e25   : > { %8511 = vmatmul.mubr.msk.f32.vlgmr.msra.gmra.mrb[40].mxu1 %vm1308_vm3, %v4646_v16  ;;  %v8861_v16 = vpack.c.bf16 %v4332_v15, %v4331_v19 }
0x1e26   : > { %8520 = vmatprep.mubr.msk.f32.mxu1 %vm9705_vm0, %v9706_v1 }
0x1e28   : > { %v4813_v17 = vpop.permute.xlu1 %4812  ;;  %v4976_v23 = vpop.permute.xlu0 %4975 }
0x1e29   : > { %8519 = vmatpush3.xpose.msk.msra.mxu1 %vm1308_vm3, %v4813_v17  ;;  %v4333_v17 = vld [vmem:[%s11228_s27 + $0x10] sm:$0xff] }
0x1e2a   : > { %8528 = vmatprep.subr.mxu1 %v9706_v1 }
0x1e2c   : > { %v4978_v20 = vpop.permute.xlu1 %4977  ;;  %8521 = vmatmul.mubr.msk.f32.vlgmr.msra.gmra.mrb[42].mxu1 %vm1308_vm3, %v4811_v18  ;;  %v4334_v18 = vld [vmem:[%s11228_s27 + $0x18] sm:$0xff] }
0x1e2d   : > { %8529 = vmatpush3.xpose.msk.msra.mxu1 %vm1308_vm3, %v4978_v20  ;;  %8530 = vmatprep.mubr.msk.f32.mxu1 %vm9705_vm0, %v9706_v1  ;;  %v8864_v20 = vpack.c.bf16 %v4334_v18, %v4333_v17 }
0x1e2e   : > { %8860 = vmatprep.subr.bf16.mxu1 %v9704_v0 }
0x1e30   : > { %8531 = vmatmul.mubr.msk.f32.vlgmr.msra.gmra.mrb[44].mxu1 %vm1308_vm3, %v4976_v23 }
0x1e31   : > { %8546 = vmatprep.mubr.msk.f32.mxu1 %vm9705_vm0, %v9706_v1  ;;  %8862 = vmatpush3.bf16.msra.mxu1 %v8861_v16  ;;  %v7882_v16 = vld [vmem:[#allocation17] ss:$0 sm:$0xff] }
0x1e32   : > { %8863 = vmatprep.subr.bf16.mxu1 %v9704_v0 }
0x1e35   : > { %8865 = vmatpush3.bf16.msra.mxu1 %v8864_v20 }
0x1e36   : > { %8872 = vmatprep.subr.bf16.mxu1 %v9704_v0 }
0x1e86   : > { %v4554_v25 = vpop.f32.mrb[36].mxu0 }
0x1e87   : > { %v8502_v26 = vpop.f32.mrb[37].mxu0  ;;  %v4558_v27 = vsel %vm1308_vm3, %v4554_v25, -inf }
0x1e88   : > { %4559 = vmax.xlane.f32.xlu1 %v4558_v27 }
0x1ef8   : > { %v4719_v5 = vpop.f32.mrb[40].mxu1 }
0x1ef9   : > { %v8512_v44 = vpop.f32.mrb[41].mxu1  ;;  %v4723_v28 = vsel %vm1308_vm3, %v4719_v5, -inf }
0x1efa   : > { %4724 = vmax.xlane.f32.xlu0 %v4723_v28 }
0x1eff   : > { %v4884_v29 = vpop.f32.mrb[42].mxu1 }
0x1f00   : > { %v8522_v30 = vpop.f32.mrb[43].mxu1  ;;  %v4888_v31 = vsel %vm1308_vm3, %v4884_v29, -inf }
0x1f01   : > { %4889 = vmax.xlane.f32.xlu0 %v4888_v31 }
0x1f03   : > { %v5049_v33 = vpop.f32.mrb[44].mxu1 }
0x1f04   : > { %v8532_v34 = vpop.f32.mrb[45].mxu1  ;;  %v5053_v35 = vsel %vm1308_vm3, %v5049_v33, -inf }
0x1f05   : > { %5054 = vmax.xlane.f32.xlu1 %v5053_v35 }
0x1f15   : > { %v4560_v36 = vpop.xlane.xlu1 %4559 }
0x1f16   : > { %v4561_v37 = vsub.f32 %v4554_v25, %v4560_v36  ;;  %4734 = vrot.lane.b32.xlu1 %v10667_v14, %s11218_s0 }
0x1f18   : > { %v4562_v4 = vmul.f32 1.442695, %v4561_v37 }
0x1f1a   : > { %9201 = vpow2.f32 %v4562_v4 }
0x1f24   : > { %v9202_v38 = vpop.eup %9201 }
0x1f25   : > { %v4564_v40 = vsel %vm1308_vm3, %v9202_v38, 0.0 }
0x1f26   : > { %4565 = vadd.xlane.f32.xlu0 %v4564_v40 }
0x1f3c   : > { %4569 = vrot.lane.b32.xlu0 %v10667_v14, %s11217_s22 }
0x1f87   : > { %v4725_v41 = vpop.xlane.xlu0 %4724 }
0x1f88   : > { %v4726_v54 = vsub.f32 %v4719_v5, %v4725_v41 }
0x1f8a   : > { %v4727_v42 = vmul.f32 1.442695, %v4726_v54 }
0x1f8c   : > { %9203 = vpow2.f32 %v4727_v42 }
0x1f8e   : > { %v4890_v43 = vpop.xlane.xlu0 %4889 }
0x1f8f   : > { %v4891_v45 = vsub.f32 %v4884_v29, %v4890_v43  ;;  %v5251_v43 = vld [vmem:[#allocation14] sm:$0xff] }
0x1f91   : > { %v4892_v46 = vmul.f32 1.442695, %v4891_v45  ;;  %v5252_v45 = vld [vmem:[#allocation14 + $0x8] sm:$0xff] }
0x1f92   : > { %v5055_v47 = vpop.xlane.xlu1 %5054 }
0x1f93   : > { %9205 = vpow2.f32 %v4892_v46  ;;  %v5056_v48 = vsub.f32 %v5049_v33, %v5055_v47  ;;  %v8867_v46 = vpack.c.bf16 %v5252_v45, %v5251_v43  ;;  %v5254_v47 = vld [vmem:[#allocation14 + $0x18] sm:$0xff] }
0x1f95   : > { %v5057_v49 = vmul.f32 1.442695, %v5056_v48 }
0x1f96   : > { %v9204_v50 = vpop.eup %9203  ;;  %v4735_v62 = vpop.permute.xlu1 %4734 }
0x1f97   : > { %9207 = vpow2.f32 %v5057_v49  ;;  %v4729_v51 = vsel %vm1308_vm3, %v9204_v50, 0.0  ;;  %v5256_v49 = vld [vmem:[%s11229_s29] sm:$0xff] }
0x1f98   : > { %4730 = vadd.xlane.f32.xlu1 %v4729_v51  ;;  %v5258_v51 = vld [vmem:[%s11229_s29 + $0x10] sm:$0xff] }
0x1f9d   : > { %v9206_v52 = vpop.eup %9205 }
0x1f9e   : > { %v4894_v53 = vsel %vm1308_vm3, %v9206_v52, 0.0 }
0x1f9f   : > { %4895 = vadd.xlane.f32.xlu0 %v4894_v53  ;;  %v5259_v53 = vld [vmem:[%s11229_s29 + $0x18] sm:$0xff] }
0x1fa1   : > { %v9208_v56 = vpop.eup %9207 }
0x1fa2   : > { %v5059_v57 = vsel %vm1308_vm3, %v9208_v56, 0.0 }
0x1fa3   : > { %5060 = vadd.xlane.f32.xlu1 %v5059_v57  ;;  %v5260_v57 = vld [vmem:[%s11229_s29 + $0x20] sm:$0xff] }
0x1fb3   : > { %v4566_v55 = vpop.xlane.xlu0 %4565 }
0x1fb4   : > { %9209 = vrcp.f32 %v4566_v55  ;;  %4899 = vrot.lane.b32.xlu1 %v10667_v14, %s11220_s16  ;;  %v5261_v55 = vld [vmem:[%s11229_s29 + $0x28] sm:$0xff] }
0x1fb5   : > { %5064 = vrot.lane.b32.xlu0 %v10667_v14, %s11216_s20 }
0x1fb7   : > { %v4570_v59 = vpop.permute.xlu0 %4569 }
0x1fb8   : > { %8504 = vmatpush3.msra.mxu0 %v4570_v59  ;;  %v8879_v59 = vpack.c.bf16 %v5261_v55, %v5260_v57 }
0x1fb9   : > { %8513 = vmatprep.subr.mxu0 %v9706_v1 }
0x1fbe   : > { %v9210_v60 = vpop.eup %9209 }
0x1fbf   : > { %v4568_v61 = vmul.f32 %v9210_v60, %v9202_v38 }
0x1fc1   : > { %8506 = vmatmul.mubr.msk.f32.vlgmr.msra.gmra.mrb[38].mxu0 %vm1308_vm3, %v4568_v61 }
0x1fc2   : > { %8514 = vmatpush3.msra.mxu0 %v4735_v62  ;;  %8515 = vmatprep.mubr.msk.f32.mxu0 %vm9705_vm0, %v9706_v1 }
0x1fc3   : > { %8523 = vmatprep.subr.mxu0 %v9706_v1 }
0x2025   : > { %v4731_v63 = vpop.xlane.xlu1 %4730 }
0x2026   : > { %9211 = vrcp.f32 %v4731_v63  ;;  %v4335_v63 = vld [vmem:[#allocation13] sm:$0x3] }
0x202c   : > { %v4896_v2 = vpop.xlane.xlu0 %4895 }
0x202d   : > { %9213 = vrcp.f32 %v4896_v2  ;;  %v5244_v2 = vrot.slane %v4335_v63, %v10342_v22 }
0x2030   : > { %v9212_v3 = vpop.eup %9211  ;;  %v5061_v39 = vpop.xlane.xlu1 %5060 }
0x2031   : > { %v4733_v7 = vmul.f32 %v9212_v3, %v9204_v50  ;;  %9215 = vrcp.f32 %v5061_v39  ;;  %v5065_v12 = vpop.permute.xlu0 %5064  ;;  %v5257_v50 = vld [vmem:[%s11229_s29 + $0x8] sm:$0xff] }
0x2033   : > { %8516 = vmatmul.mubr.msk.f32.vlgmr.msra.gmra.mrb[40].mxu0 %vm1308_vm3, %v4733_v7  ;;  %v5249_v7 = vrot.slane %v4335_v63, %v10346_v24 }
0x2034   : > { %v4900_v8 = vpop.permute.xlu1 %4899  ;;  %8525 = vmatprep.mubr.msk.f32.mxu0 %vm9705_vm0, %v9706_v1 }
0x2035   : > { %8524 = vmatpush3.msra.mxu0 %v4900_v8 }
0x2036   : > { %8533 = vmatprep.subr.mxu0 %v9706_v1 }
0x2037   : > { %v9214_v9 = vpop.eup %9213 }
0x2038   : > { %v4898_v11 = vmul.f32 %v9214_v9, %v9206_v52  ;;  %v8873_v52 = vpack.c.bf16 %v5257_v50, %v5256_v49 }
0x203a   : > { %8526 = vmatmul.mubr.msk.f32.vlgmr.msra.gmra.mrb[42].mxu0 %vm1308_vm3, %v4898_v11  ;;  %v5262_v11 = vld [vmem:[%s11229_s29 + $0x30] sm:$0xff] }
0x203b   : > { %v9216_v32 = vpop.eup %9215  ;;  %8534 = vmatpush3.msra.mxu0 %v5065_v12  ;;  %8535 = vmatprep.mubr.msk.f32.mxu0 %vm9705_vm0, %v9706_v1  ;;  %v5263_v12 = vld [vmem:[%s11229_s29 + $0x38] sm:$0xff] }
0x203c   : > { %v5063_v14 = vmul.f32 %v9216_v32, %v9208_v56  ;;  %8866 = vmatprep.subr.bf16.mxu0 %v9704_v0  ;;  %v8876_v56 = vpack.c.bf16 %v5259_v53, %v5258_v51  ;;  %v8882_v32 = vpack.c.bf16 %v5263_v12, %v5262_v11 }
0x203e   : > { %8536 = vmatmul.mubr.msk.f32.vlgmr.msra.gmra.mrb[44].mxu0 %vm1308_vm3, %v5063_v14  ;;  %v7880_v14 = vld [vmem:[#allocation16] ss:$0 sm:$0xff] }
0x203f   : > { %8557 = vmatprep.mubr.msk.f32.mxu0 %vm9705_vm0, %v9706_v1  ;;  %8868 = vmatpush3.bf16.msra.mxu0 %v8867_v46 }
0x2040   : > { %8869 = vmatprep.subr.bf16.mxu0 %v9704_v0 }
0x2094   : > { %v4641_v21 = vpop.f32.mrb[38].mxu0 }
0x2095   : > { %v8507_v10 = vpop.f32.mrb[39].mxu0 }
0x2106   : > { %v4806_v23 = vpop.f32.mrb[40].mxu0 }
0x2107   : > { %5141 = vrot.lane.b32.xlu1 %v4806_v23, %s11210_s12  ;;  %v8517_v25 = vpop.f32.mrb[41].mxu0 }
0x210d   : > { %v4971_v26 = vpop.f32.mrb[42].mxu0 }
0x210e   : > { %5145 = vrot.lane.b32.xlu0 %v4971_v26, %s11211_s4  ;;  %v8527_v27 = vpop.f32.mrb[43].mxu0 }
0x2111   : > { %v5136_v5 = vpop.f32.mrb[44].mxu0 }
0x2112   : > { %5149 = vrot.lane.b32.xlu1 %v5136_v5, %s11212_s17  ;;  %v8537_v44 = vpop.f32.mrb[45].mxu0 }
0x2179   : > { %v5142_v28 = vpop.permute.xlu1 %5141 }
0x217a   : > { %v5152_v30 = vsel %vm1308_vm3, %v4641_v21, %v5142_v28 }
0x2180   : > { %v5146_v29 = vpop.permute.xlu0 %5145 }
0x2181   : > { %v5153_v31 = vsel %vm1978_vm4, %v5152_v30, %v5146_v29  ;;  %v7884_v29 = vld [vmem:[%s11215_s3 + $0x20] sm:$0xff]  ;;  %v7885_v30 = vld [vmem:[%s11215_s3 + $0x28] sm:$0xff] }
0x2184   : > { %v5150_v33 = vpop.permute.xlu1 %5149 }
0x2185   : > { %v5154_v34 = vsel %vm1980_vm5, %v5153_v31, %v5150_v33  ;;  %v8885_v31 = vpack.c.bf16 %v7885_v30, %v7884_v29  ;;  %v7886_v33 = vld [vmem:[%s11215_s3 + $0x30] sm:$0xff] }
0x2186   : > { %8547 = vmatmul.mubr.msk.f32.vlgmr.msra.gmra.mrb[46].mxu1 %vm1198_vm2, %v5154_v34  ;;  %v7887_v34 = vld [vmem:[%s11215_s3 + $0x38] sm:$0xff] }
0x2187   : > { %8576 = vmatprep.mubr.msk.f32.mxu1 %vm9705_vm0, %v9706_v1  ;;  %8874 = vmatpush3.bf16.msra.mxu1 %v8873_v52 }
0x2188   : > { %8875 = vmatprep.subr.bf16.mxu1 %v9704_v0 }
0x218b   : > { %8877 = vmatpush3.bf16.msra.mxu1 %v8876_v56 }
0x218c   : > { %8878 = vmatprep.subr.bf16.mxu1 %v9704_v0 }
0x218f   : > { %8880 = vmatpush3.bf16.msra.mxu1 %v8879_v59 }
0x2190   : > { %8881 = vmatprep.subr.bf16.mxu1 %v9704_v0 }
0x2193   : > { %8883 = vmatpush3.bf16.msra.mxu1 %v8882_v32 }
0x2194   : > { %8600 = vmatprep.subr.mxu1 %v9706_v1 }
0x2259   : > { %v5224_v35 = vpop.f32.mrb[46].mxu1 }
0x225a   : > { %v5225_v36 = vadd.f32 %v5224_v35, %v10661_v13  ;;  %v8548_v37 = vpop.f32.mrb[47].mxu1  ;;  %v5253_v13 = vld [vmem:[#allocation14 + $0x10] sm:$0xff]  ;;  %v8888_v35 = vpack.c.bf16 %v7887_v34, %v7886_v33 }
0x225b   : > { %v8870_v48 = vpack.c.bf16 %v5254_v47, %v5253_v13 }
0x225c   : > { %v5228_v4 = vsel %vm1198_vm2, %v5225_v36, 0.0 }
0x225d   : > { %5229 = vadd.xlane.f32.xlu0 %v5228_v4  ;;  %8871 = vmatpush3.bf16.msra.mxu0 %v8870_v48 }
0x225e   : > { %8884 = vmatprep.subr.bf16.mxu0 %v9704_v0 }
0x22ea   : > { %v5230_v38 = vpop.xlane.xlu0 %5229 }
0x22eb   : > { %v5231_v40 = vmul.f32 0.03125, %v5230_v38  ;;  %v5265_v38 = vld [vmem:[#allocation19] sm:$0x3] }
0x22ed   : > { %v5232_v41 = vsub.f32 %v5225_v36, %v5231_v40  ;;  %v5442_v40 = vrot.slane %v5265_v38, %v10342_v22 }
0x22ef   : > { %v5233_v54 = vmul.f32 %v5232_v41, %v5232_v41 }
0x22f1   : > { %v5234_v42 = vsel %vm1198_vm2, %v5233_v54, 0.0 }
0x22f2   : > { %5235 = vadd.xlane.f32.xlu1 %v5234_v42  ;;  %v5447_v42 = vrot.slane %v5265_v38, %v10346_v24 }
0x237f   : > { %v5236_v60 = vpop.xlane.xlu1 %5235 }
0x2380   : > { %v5237_v61 = vmul.f32 0.03125, %v5236_v60 }
0x2382   : > { %v5238_v62 = vadd.f32 1e-06, %v5237_v61 }
0x2384   : > { %9217 = vrsqrt.f32 %v5238_v62 }
0x238e   : > { %v9218_v3 = vpop.eup %9217 }
0x238f   : > { %v5240_v39 = vmul.f32 %v9218_v3, %v5232_v41 }
0x2391   : > { %v5245_v8 = vmul.f32 %v5244_v2, %v5240_v39 }
0x2393   : > { %v5250_v9 = vadd.f32 %v5249_v7, %v5245_v8 }
0x2395   : > { %8558 = vmatmul.mubr.msk.f32.vlgmr.msra.gmra.mrb[46].mxu0 %vm1198_vm2, %v5250_v9 }
0x2396   : > { %8587 = vmatprep.mubr.msk.f32.mxu0 %vm9705_vm0, %v9706_v1  ;;  %8886 = vmatpush3.bf16.msra.mxu0 %v8885_v31 }
0x2397   : > { %8887 = vmatprep.subr.bf16.mxu0 %v9704_v0 }
0x239a   : > { %8889 = vmatpush3.bf16.msra.mxu0 %v8888_v35 }
0x239b   : > { %8590 = vmatprep.subr.mxu0 %v9706_v1 }
0x2468   : > { %v5341_v21 = vpop.f32.mrb[46].mxu0 }
0x2469   : > { %v5342_v10 = vadd.f32 %v7880_v14, %v5341_v21  ;;  %v8559_v19 = vpop.f32.mrb[47].mxu0 }
0x246b   : > { %v5345_v15 = vmax.f32 %v5342_v10, 0.0 }
0x246d   : > { %8577 = vmatmul.mubr.msk.f32.vlgmr.msra.gmra.mrb[48].mxu1 %vm1122_vm1, %v5345_v15 }
0x246e   : > { %8602 = vmatprep.mubr.msk.f32.mxu1 %vm9705_vm0, %v9706_v1 }
0x2540   : > { %v5421_v17 = vpop.f32.mrb[48].mxu1 }
0x2541   : > { %v5422_v18 = vadd.f32 %v7882_v16, %v5421_v17  ;;  %v8578_v20 = vpop.f32.mrb[49].mxu1 }
0x2543   : > { %v5425_v23 = vadd.f32 %v5422_v18, %v5250_v9 }
0x2545   : > { %v5426_v25 = vsel %vm1198_vm2, %v5425_v23, 0.0 }
0x2546   : > { %5427 = vadd.xlane.f32.xlu0 %v5426_v25 }
0x25d3   : > { %v5428_v26 = vpop.xlane.xlu0 %5427 }
0x25d4   : > { %v5429_v27 = vmul.f32 0.03125, %v5428_v26 }
0x25d6   : > { %v5430_v5 = vsub.f32 %v5425_v23, %v5429_v27 }
0x25d8   : > { %v5431_v44 = vmul.f32 %v5430_v5, %v5430_v5 }
0x25da   : > { %v5432_v28 = vsel %vm1198_vm2, %v5431_v44, 0.0 }
0x25db   : > { %5433 = vadd.xlane.f32.xlu0 %v5432_v28 }
0x2668   : > { %v5434_v36 = vpop.xlane.xlu0 %5433 }
0x2669   : > { %v5435_v37 = vmul.f32 0.03125, %v5434_v36 }
0x266b   : > { %v5436_v4 = vadd.f32 1e-06, %v5435_v37 }
0x266d   : > { %9219 = vrsqrt.f32 %v5436_v4 }
0x2677   : > { %v9220_v41 = vpop.eup %9219 }
0x2678   : > { %v5438_v54 = vmul.f32 %v9220_v41, %v5430_v5 }
0x267a   : > { %v5443_v43 = vmul.f32 %v5442_v40, %v5438_v54 }
0x267c   : > { %v10781_v45 = vadd.f32 %v5447_v42, %v5443_v43 }
0x267e   : > { %8588 = vmatmul.mubr.msk.f32.vlgmr.msra.gmra.mrb[48].mxu0 %vm1198_vm2, %v10781_v45 }
0x267f   : > { %8592 = vmatprep.mubr.msk.f32.mxu0 %vm9705_vm0, %v9706_v1 }
0x2751   : > { %v10787_v46 = vpop.f32.mrb[48].mxu0 }
0x2752   : > { %5701 = vrot.lane.b32.xlu0 %v10787_v46, %s11218_s0  ;;  %5535 = vrot.lane.b32.xlu1 %v10787_v46, %s11217_s22  ;;  %v8589_v13 = vpop.f32.mrb[49].mxu0 }
0x2756   : > { %5865 = vrot.lane.b32.xlu0 %v10787_v46, %s11221_s21  ;;  %5699 = vrot.lane.b32.xlu1 %v10787_v46, %s11219_s9 }
0x275a   : > { %6031 = vrot.lane.b32.xlu0 %v10787_v46, %s11205_s5  ;;  %5867 = vrot.lane.b32.xlu1 %v10787_v46, %s11220_s16 }
0x275e   : > { %6033 = vrot.lane.b32.xlu1 %v10787_v46, %s11216_s20 }
0x27c4   : > { %v5702_v47 = vpop.permute.xlu0 %5701  ;;  %v5536_v48 = vpop.permute.xlu1 %5535 }
0x27c5   : > { %8591 = vmatpush3.xpose.msk.msra.mxu0 %vm1308_vm3, %v5536_v48  ;;  %8601 = vmatpush3.xpose.msk.msra.mxu1 %vm1308_vm3, %v5702_v47  ;;  %v7888_v48 = vld [vmem:[%s11225_s25 + $0x20] sm:$0xff] }
0x27c6   : > { %8610 = vmatprep.subr.mxu1 %v9706_v1  ;;  %8595 = vmatprep.subr.mxu0 %v9706_v1 }
0x27c8   : > { %8593 = vmatmul.mubr.msk.f32.vlgmr.msra.gmra.mrb[50].mxu0 %vm1308_vm3, %v10787_v46  ;;  %v5700_v49 = vpop.permute.xlu1 %5699  ;;  %v5866_v51 = vpop.permute.xlu0 %5865 }
0x27c9   : > { %8603 = vmatmul.mubr.msk.f32.vlgmr.msra.gmra.mrb[50].mxu1 %vm1308_vm3, %v5700_v49  ;;  %8597 = vmatprep.mubr.msk.f32.mxu0 %vm9705_vm0, %v9706_v1  ;;  %v7889_v49 = vld [vmem:[%s11225_s25 + $0x28] sm:$0xff] }
0x27ca   : > { %8612 = vmatprep.mubr.msk.f32.mxu1 %vm9705_vm0, %v9706_v1 }
0x27cc   : > { %v5868_v50 = vpop.permute.xlu1 %5867  ;;  %v6032_v53 = vpop.permute.xlu0 %6031 }
0x27cd   : > { %8611 = vmatpush3.xpose.msk.msra.mxu1 %vm1308_vm3, %v5868_v50  ;;  %v8891_v50 = vpack.c.bf16 %v7889_v49, %v7888_v48 }
0x27ce   : > { %8620 = vmatprep.subr.mxu1 %v9706_v1 }
0x27d0   : > { %8613 = vmatmul.mubr.msk.f32.vlgmr.msra.gmra.mrb[52].mxu1 %vm1308_vm3, %v5866_v51  ;;  %v6034_v52 = vpop.permute.xlu1 %6033 }
0x27d1   : > { %8621 = vmatpush3.xpose.msk.msra.mxu1 %vm1308_vm3, %v6034_v52  ;;  %8622 = vmatprep.mubr.msk.f32.mxu1 %vm9705_vm0, %v9706_v1 }
0x27d2   : > { %8890 = vmatprep.subr.bf16.mxu1 %v9704_v0 }
0x27d4   : > { %8623 = vmatmul.mubr.msk.f32.vlgmr.msra.gmra.mrb[54].mxu1 %vm1308_vm3, %v6032_v53 }
0x27d5   : > { %8638 = vmatprep.mubr.msk.f32.mxu1 %vm9705_vm0, %v9706_v1  ;;  %8892 = vmatpush3.bf16.msra.mxu1 %v8891_v50 }
0x27d6   : > { %8893 = vmatprep.subr.bf16.mxu1 %v9704_v0 }
0x289b   : > { %v5607_v56 = vpop.f32.mrb[50].mxu0 }
0x289c   : > { %v5611_v57 = vsel %vm10573_vm12, %v5607_v56, -1e+09  ;;  %v8594_v55 = vpop.f32.mrb[51].mxu0  ;;  %v5773_v59 = vpop.f32.mrb[50].mxu1 }
0x289d   : > { %v5612_v60 = vsel %vm1308_vm3, %v5611_v57, -inf  ;;  %v5777_v61 = vsel %vm10573_vm12, %v5773_v59, -1e+09  ;;  %v8604_v62 = vpop.f32.mrb[51].mxu1  ;;  %v7891_v55 = vld [vmem:[%s11225_s25 + $0x38] sm:$0xff] }
0x289e   : > { %v5778_v63 = vsel %vm1308_vm3, %v5777_v61, -inf  ;;  %5613 = vmax.xlane.f32.xlu1 %v5612_v60 }
0x289f   : > { %5779 = vmax.xlane.f32.xlu0 %v5778_v63 }
0x28a3   : > { %v5939_v2 = vpop.f32.mrb[52].mxu1 }
0x28a4   : > { %v5943_v3 = vsel %vm10573_vm12, %v5939_v2, -1e+09  ;;  %v8614_v39 = vpop.f32.mrb[53].mxu1 }
0x28a5   : > { %v5944_v7 = vsel %vm1308_vm3, %v5943_v3, -inf  ;;  %v7911_v39 = vld [vmem:[%s11226_s24 + $0x28] sm:$0xff] }
0x28a6   : > { %5945 = vmax.xlane.f32.xlu0 %v5944_v7 }
0x28a7   : > { %v6105_v8 = vpop.f32.mrb[54].mxu1 }
0x28a8   : > { %v6109_v9 = vsel %vm10573_vm12, %v6105_v8, -1e+09  ;;  %v8624_v11 = vpop.f32.mrb[55].mxu1 }
0x28a9   : > { %v6110_v12 = vsel %vm1308_vm3, %v6109_v9, -inf }
0x28aa   : > { %6111 = vmax.xlane.f32.xlu1 %v6110_v12 }
0x28bb   : > { %5789 = vrot.lane.b32.xlu1 %v10787_v46, %s11209_s14  ;;  %s7947_s14 = sshll.u32 %s9899_s18, 7 }
0x292b   : > { %v5614_v32 = vpop.xlane.xlu1 %5613 }
0x292c   : > { %v5615_v14 = vsub.f32 %v5611_v57, %v5614_v32  ;;  %v5780_v21 = vpop.xlane.xlu0 %5779  ;;  %v7890_v57 = vld [vmem:[%s11225_s25 + $0x30] sm:$0xff] }
0x292d   : > { %v5781_v10 = vsub.f32 %v5777_v61, %v5780_v21  ;;  %v8894_v59 = vpack.c.bf16 %v7891_v55, %v7890_v57  ;;  %v7912_v32 = vld [vmem:[%s11226_s24 + $0x30] sm:$0xff] }
0x292e   : > { %v5616_v19 = vmul.f32 1.442695, %v5615_v14  ;;  %v7913_v14 = vld [vmem:[%s11226_s24 + $0x38] sm:$0xff] }
0x292f   : > { %v5782_v15 = vmul.f32 1.442695, %v5781_v10  ;;  %8895 = vmatpush3.bf16.msra.mxu1 %v8894_v59  ;;  %v8906_v10 = vpack.c.bf16 %v7913_v14, %v7912_v32 }
0x2930   : > { %9221 = vpow2.f32 %v5616_v19  ;;  %8902 = vmatprep.subr.bf16.mxu1 %v9704_v0 }
0x2931   : > { %9223 = vpow2.f32 %v5782_v15 }
0x2933   : > { %v5946_v5 = vpop.xlane.xlu0 %5945 }
0x2934   : > { %v5947_v44 = vsub.f32 %v5943_v3, %v5946_v5  ;;  %v7910_v3 = vld [vmem:[%s11226_s24 + $0x20] sm:$0xff]  ;;  %v7907_v5 = vld [vmem:[%s11227_s13 + $0x28] sm:$0xff] }
0x2936   : > { %v5948_v28 = vmul.f32 1.442695, %v5947_v44 }
0x2937   : > { %v6112_v16 = vpop.xlane.xlu1 %6111 }
0x2938   : > { %v6113_v17 = vsub.f32 %v6109_v9, %v6112_v16  ;;  %v8903_v9 = vpack.c.bf16 %v7911_v39, %v7910_v3 }
0x293a   : > { %v9222_v18 = vpop.eup %9221  ;;  %v6114_v6 = vmul.f32 1.442695, %v6113_v17 }
0x293b   : > { %v9224_v20 = vpop.eup %9223  ;;  %v5618_v23 = vsel %vm1308_vm3, %v9222_v18, 0.0  ;;  %v5790_v31 = vpop.permute.xlu1 %5789 }
0x293c   : > { %9225 = vpow2.f32 %v6114_v6  ;;  %5619 = vadd.xlane.f32.xlu0 %v5618_v23  ;;  %v5784_v25 = vsel %vm1308_vm3, %v9224_v20, 0.0 }
0x293d   : > { %5785 = vadd.xlane.f32.xlu1 %v5784_v25  ;;  %9227 = vpow2.f32 %v5948_v28  ;;  %v7908_v28 = vld [vmem:[%s11227_s13 + $0x30] sm:$0xff] }
0x2946   : > { %v9226_v26 = vpop.eup %9225 }
0x2947   : > { %v6116_v27 = vsel %vm1308_vm3, %v9226_v26, 0.0  ;;  %v9228_v29 = vpop.eup %9227 }
0x2948   : > { %6117 = vadd.xlane.f32.xlu1 %v6116_v27  ;;  %v5950_v30 = vsel %vm1308_vm3, %v9228_v29, 0.0  ;;  %v7906_v27 = vld [vmem:[%s11227_s13 + $0x20] sm:$0xff] }
0x2949   : > { %v8897_v44 = vpack.c.bf16 %v7907_v5, %v7906_v27 }
0x2952   : > { %5623 = vrot.lane.b32.xlu0 %v10787_v46, %s11206_s1  ;;  %s7519_s1 = scalar_lea.sflag [#allocation4], %s10157_s19 }
0x2959   : > { %5955 = vrot.lane.b32.xlu1 %v10787_v46, %s11207_s23 }
0x2971   : > { %5951 = vadd.xlane.f32.xlu0 %v5950_v30 }
0x2987   : > { %6121 = vrot.lane.b32.xlu0 %v10787_v46, %s11208_s8 }
0x29c9   : > { %v5620_v33 = vpop.xlane.xlu0 %5619 }
0x29ca   : > { %9229 = vrcp.f32 %v5620_v33  ;;  %v5786_v34 = vpop.xlane.xlu1 %5785 }
0x29cb   : > { %9231 = vrcp.f32 %v5786_v34 }
0x29cd   : > { %v5624_v35 = vpop.permute.xlu0 %5623 }
0x29ce   : > { %8596 = vmatpush3.msra.mxu0 %v5624_v35  ;;  %v5460_v35 = vld [vmem:[#allocation11 + $0x2] sm:$0x3] }
0x29cf   : > { %8605 = vmatprep.subr.mxu0 %v9706_v1 }
0x29d4   : > { %v9230_v36 = vpop.eup %9229 }
0x29d5   : > { %v5622_v37 = vmul.f32 %v9230_v36, %v9222_v18  ;;  %v6118_v4 = vpop.xlane.xlu1 %6117  ;;  %v9232_v38 = vpop.eup %9231  ;;  %v6301_v36 = vrot.slane %v5460_v35, %v10342_v22 }
0x29d6   : > { %v5788_v40 = vmul.f32 %v9232_v38, %v9224_v20  ;;  %v6306_v38 = vrot.slane %v5460_v35, %v10346_v24 }
0x29d7   : > { %8598 = vmatmul.mubr.msk.f32.vlgmr.msra.gmra.mrb[52].mxu0 %vm1308_vm3, %v5622_v37 }
0x29d8   : > { %8606 = vmatpush3.msra.mxu0 %v5790_v31  ;;  %8607 = vmatprep.mubr.msk.f32.mxu0 %vm9705_vm0, %v9706_v1 }
0x29d9   : > { %v5956_v41 = vpop.permute.xlu1 %5955  ;;  %8615 = vmatprep.subr.mxu0 %v9706_v1 }
0x29db   : > { %8608 = vmatmul.mubr.msk.f32.vlgmr.msra.gmra.mrb[54].mxu0 %vm1308_vm3, %v5788_v40 }
0x29dc   : > { %8616 = vmatpush3.msra.mxu0 %v5956_v41  ;;  %8617 = vmatprep.mubr.msk.f32.mxu0 %vm9705_vm0, %v9706_v1 }
0x29dd   : > { %8625 = vmatprep.subr.mxu0 %v9706_v1 }
0x29fe   : > { %v5952_v54 = vpop.xlane.xlu0 %5951 }
0x29ff   : > { %9233 = vrcp.f32 %v5952_v54 }
0x2a00   : > { %9235 = vrcp.f32 %v6118_v4 }
0x2a02   : > { %v6122_v13 = vpop.permute.xlu0 %6121 }
0x2a09   : > { %v9234_v42 = vpop.eup %9233 }
0x2a0a   : > { %v5954_v43 = vmul.f32 %v9234_v42, %v9228_v29  ;;  %v9236_v46 = vpop.eup %9235  ;;  %v7909_v29 = vld [vmem:[%s11227_s13 + $0x38] sm:$0xff] }
0x2a0b   : > { %v6120_v47 = vmul.f32 %v9236_v46, %v9226_v26  ;;  %v8900_v30 = vpack.c.bf16 %v7909_v29, %v7908_v28 }
0x2a0c   : > { %8618 = vmatmul.mubr.msk.f32.vlgmr.msra.gmra.mrb[56].mxu0 %vm1308_vm3, %v5954_v43 }
0x2a0d   : > { %8626 = vmatpush3.msra.mxu0 %v6122_v13  ;;  %8627 = vmatprep.mubr.msk.f32.mxu0 %vm9705_vm0, %v9706_v1 }
0x2a0e   : > { %8896 = vmatprep.subr.bf16.mxu0 %v9704_v0 }
0x2a10   : > { %8628 = vmatmul.mubr.msk.f32.vlgmr.msra.gmra.mrb[58].mxu0 %vm1308_vm3, %v6120_v47 }
0x2a11   : > { %8649 = vmatprep.mubr.msk.f32.mxu0 %vm9705_vm0, %v9706_v1  ;;  %8898 = vmatpush3.bf16.msra.mxu0 %v8897_v44 }
0x2a12   : > { %8899 = vmatprep.subr.bf16.mxu0 %v9704_v0 }
0x2a15   : > { %8901 = vmatpush3.bf16.msra.mxu0 %v8900_v30 }
0x2a16   : > { %8663 = vmatprep.subr.mxu0 %v9706_v1 }
0x2aaa   : > { %v5695_v51 = vpop.f32.mrb[52].mxu0 }
0x2aab   : > { %v8599_v52 = vpop.f32.mrb[53].mxu0 }
0x2aae   : > { %v5861_v53 = vpop.f32.mrb[54].mxu0 }
0x2aaf   : > { %6198 = vrot.lane.b32.xlu1 %v5861_v53, %s11210_s12  ;;  %v8609_v56 = vpop.f32.mrb[55].mxu0 }
0x2adf   : > { %v6027_v60 = vpop.f32.mrb[56].mxu0 }
0x2ae0   : > { %6202 = vrot.lane.b32.xlu0 %v6027_v60, %s11211_s4  ;;  %v8619_v61 = vpop.f32.mrb[57].mxu0 }
0x2ae3   : > { %v6193_v62 = vpop.f32.mrb[58].mxu0 }
0x2ae4   : > { %6206 = vrot.lane.b32.xlu1 %v6193_v62, %s11212_s17  ;;  %v8629_v63 = vpop.f32.mrb[59].mxu0 }
0x2b21   : > { %v6199_v2 = vpop.permute.xlu1 %6198 }
0x2b22   : > { %v6209_v8 = vsel %vm1308_vm3, %v5695_v51, %v6199_v2 }
0x2b52   : > { %v6203_v7 = vpop.permute.xlu0 %6202 }
0x2b53   : > { %v6210_v11 = vsel %vm1978_vm4, %v6209_v8, %v6203_v7 }
0x2b56   : > { %v6207_v12 = vpop.permute.xlu1 %6206 }
0x2b57   : > { %v6211_v21 = vsel %vm1980_vm5, %v6210_v11, %v6207_v12 }
0x2b58   : > { %8639 = vmatmul.mubr.msk.f32.vlgmr.msra.gmra.mrb[56].mxu1 %vm1198_vm2, %v6211_v21 }
0x2b59   : > { %8904 = vmatpush3.bf16.msra.mxu1 %v8903_v9  ;;  %8660 = vmatprep.mubr.msk.f32.mxu1 %vm9705_vm0, %v9706_v1 }
0x2b5a   : > { %8905 = vmatprep.subr.bf16.mxu1 %v9704_v0 }
0x2b5d   : > { %8907 = vmatpush3.bf16.msra.mxu1 %v8906_v10 }
0x2b5e   : > { %8673 = vmatprep.subr.mxu1 %v9706_v1 }
0x2b60   : > { %8661 = vmatmul.mubr.msk.f32.vlgmr.msra.gmra.mrb[58].mxu1 %vm1198_vm2, %v10647_v58 }
0x2b61   : > { %8675 = vmatprep.mubr.msk.f32.mxu1 %vm9705_vm0, %v9706_v1 }
0x2c2b   : > { %v6281_v19 = vpop.f32.mrb[56].mxu1 }
0x2c2c   : > { %v6282_v15 = vadd.f32 %v6281_v19, %v10781_v45  ;;  %v8640_v16 = vpop.f32.mrb[57].mxu1 }
0x2c2e   : > { %v6285_v17 = vsel %vm1198_vm2, %v6282_v15, 0.0 }
0x2c2f   : > { %6286 = vadd.xlane.f32.xlu0 %v6285_v17 }
0x2c33   : > { %v10891_v18 = vpop.f32.mrb[58].mxu1 }
0x2c34   : > { %v8662_v6 = vpop.f32.mrb[59].mxu1 }
0x2c45   : > { %6633 = vrot.lane.b32.xlu0 %v10891_v18, %s11219_s9 }
0x2c49   : > { %6798 = vrot.lane.b32.xlu0 %v10891_v18, %s11221_s21 }
0x2c4d   : > { %6963 = vrot.lane.b32.xlu0 %v10891_v18, %s11205_s5 }
0x2cbc   : > { %v6287_v58 = vpop.xlane.xlu0 %6286 }
0x2cbd   : > { %v6288_v45 = vmul.f32 0.03125, %v6287_v58 }
0x2cbf   : > { %v6289_v20 = vsub.f32 %v6282_v15, %v6288_v45 }
0x2cc0   : > { %v6634_v23 = vpop.permute.xlu0 %6633 }
0x2cc1   : > { %8674 = vmatpush3.xpose.msk.msra.mxu1 %vm1308_vm3, %v6634_v23  ;;  %v6290_v25 = vmul.f32 %v6289_v20, %v6289_v20 }
0x2cc2   : > { %8683 = vmatprep.subr.mxu1 %v9706_v1 }
0x2cc3   : > { %v6291_v26 = vsel %vm1198_vm2, %v6290_v25, 0.0 }
0x2cc4   : > { %6292 = vadd.xlane.f32.xlu1 %v6291_v26  ;;  %v6799_v43 = vpop.permute.xlu0 %6798 }
0x2cc8   : > { %v6964_v47 = vpop.permute.xlu0 %6963 }
0x2d51   : > { %v6293_v31 = vpop.xlane.xlu1 %6292 }
0x2d52   : > { %v6294_v33 = vmul.f32 0.03125, %v6293_v31 }
0x2d54   : > { %v6295_v34 = vadd.f32 1e-06, %v6294_v33 }
0x2d56   : > { %9237 = vrsqrt.f32 %v6295_v34 }
0x2d60   : > { %v9238_v37 = vpop.eup %9237 }
0x2d61   : > { %v6297_v4 = vmul.f32 %v9238_v37, %v6289_v20 }
0x2d63   : > { %v6302_v40 = vmul.f32 %v6301_v36, %v6297_v4 }
0x2d65   : > { %v10910_v41 = vadd.f32 %v6306_v38, %v6302_v40  ;;  %v7914_v38 = vld [vmem:[%s11228_s27 + $0x20] sm:$0xff]  ;;  %v7915_v40 = vld [vmem:[%s11228_s27 + $0x28] sm:$0xff] }
0x2d67   : > { %8650 = vmatmul.mubr.msk.f32.vlgmr.msra.gmra.mrb[60].mxu0 %vm1198_vm2, %v10910_v41 }
0x2d68   : > { %8664 = vmatpush3.xpose.msk.msra.mxu0 %vm1308_vm3, %v10891_v18  ;;  %8665 = vmatprep.mubr.msk.f32.mxu0 %vm9705_vm0, %v9706_v1 }
0x2d69   : > { %8668 = vmatprep.subr.mxu0 %v9706_v1 }
0x2e3a   : > { %v6394_v54 = vpop.f32.mrb[60].mxu0 }
0x2e3b   : > { %6631 = vrot.lane.b32.xlu1 %v6394_v54, %s11219_s9  ;;  %v8651_v42 = vpop.f32.mrb[61].mxu0  ;;  %8666 = vmatmul.mubr.msk.f32.vlgmr.msra.gmra.mrb[62].mxu0 %vm1308_vm3, %v6394_v54  ;;  %s9722_s9 = smov [#allocation20]  }
0x2e3c   : > { %8670 = vmatprep.mubr.msk.f32.mxu0 %vm9705_vm0, %v9706_v1  ;;  %v7916_v42 = vld [vmem:[%s11228_s27 + $0x30] sm:$0xff] }
0x2e3f   : > { %6796 = vrot.lane.b32.xlu1 %v6394_v54, %s11221_s21 }
0x2e43   : > { %6961 = vrot.lane.b32.xlu1 %v6394_v54, %s11205_s5  ;;  %v8909_v54 = vpack.c.bf16 %v7915_v40, %v7914_v38  ;;  %s11230_s5 = sld [smem:[#allocation55_spill]]  ;;  %v7943_v38 = vld [vmem:[#allocation17 + $0x1] ss:$0 sm:$0xff] }
0x2ead   : > { %v6632_v46 = vpop.permute.xlu1 %6631 }
0x2eae   : > { %8676 = vmatmul.mubr.msk.f32.vlgmr.msra.gmra.mrb[60].mxu1 %vm1308_vm3, %v6632_v46 }
0x2eaf   : > { %8684 = vmatpush3.xpose.msk.msra.mxu1 %vm1308_vm3, %v6799_v43  ;;  %8685 = vmatprep.mubr.msk.f32.mxu1 %vm9705_vm0, %v9706_v1  ;;  %v7917_v43 = vld [vmem:[%s11228_s27 + $0x38] sm:$0xff] }
0x2eb0   : > { %8693 = vmatprep.subr.mxu1 %v9706_v1  ;;  %v8912_v46 = vpack.c.bf16 %v7917_v43, %v7916_v42 }
0x2eb1   : > { %v6797_v13 = vpop.permute.xlu1 %6796 }
0x2eb2   : > { %8686 = vmatmul.mubr.msk.f32.vlgmr.msra.gmra.mrb[62].mxu1 %vm1308_vm3, %v6797_v13 }
0x2eb3   : > { %8694 = vmatpush3.xpose.msk.msra.mxu1 %vm1308_vm3, %v6964_v47  ;;  %8695 = vmatprep.mubr.msk.f32.mxu1 %vm9705_vm0, %v9706_v1 }
0x2eb4   : > { %8908 = vmatprep.subr.bf16.mxu1 %v9704_v0 }
0x2eb5   : > { %v6962_v48 = vpop.permute.xlu1 %6961 }
0x2eb6   : > { %8696 = vmatmul.mubr.msk.f32.vlgmr.msra.gmra.mrb[64].mxu1 %vm1308_vm3, %v6962_v48 }
0x2eb7   : > { %8711 = vmatprep.mubr.msk.f32.mxu1 %vm9705_vm0, %v9706_v1  ;;  %8910 = vmatpush3.bf16.msra.mxu1 %v8909_v54 }
0x2eb8   : > { %8911 = vmatprep.subr.bf16.mxu1 %v9704_v0 }
0x2ebb   : > { %8913 = vmatpush3.bf16.msra.mxu1 %v8912_v46 }
0x2ebc   : > { %8920 = vmatprep.subr.bf16.mxu1 %v9704_v0 }
0x2f0e   : > { %v6540_v49 = vpop.f32.mrb[62].mxu0 }
0x2f0f   : > { %v8667_v50 = vpop.f32.mrb[63].mxu0  ;;  %v6544_v51 = vsel %vm1308_vm3, %v6540_v49, -inf }
0x2f10   : > { %6545 = vmax.xlane.f32.xlu0 %v6544_v51 }
0x2f81   : > { %v6705_v52 = vpop.f32.mrb[60].mxu1 }
0x2f82   : > { %v8677_v53 = vpop.f32.mrb[61].mxu1  ;;  %v6709_v56 = vsel %vm1308_vm3, %v6705_v52, -inf }
0x2f83   : > { %6710 = vmax.xlane.f32.xlu1 %v6709_v56 }
0x2f85   : > { %v6870_v57 = vpop.f32.mrb[62].mxu1 }
0x2f86   : > { %v8687_v55 = vpop.f32.mrb[63].mxu1  ;;  %v6874_v59 = vsel %vm1308_vm3, %v6870_v57, -inf }
0x2f87   : > { %6875 = vmax.xlane.f32.xlu0 %v6874_v59 }
0x2f89   : > { %v7035_v60 = vpop.f32.mrb[64].mxu1 }
0x2f8a   : > { %v8697_v61 = vpop.f32.mrb[65].mxu1  ;;  %v7039_v62 = vsel %vm1308_vm3, %v7035_v60, -inf }
0x2f8b   : > { %7040 = vmax.xlane.f32.xlu0 %v7039_v62 }
0x2f94   : > { %6555 = vrot.lane.b32.xlu1 %v10891_v18, %s11217_s22 }
0x2f9d   : > { %v6546_v63 = vpop.xlane.xlu0 %6545 }
0x2f9e   : > { %v6547_v2 = vsub.f32 %v6540_v49, %v6546_v63 }
0x2fa0   : > { %v6548_v3 = vmul.f32 1.442695, %v6547_v2 }
0x2fa2   : > { %9239 = vpow2.f32 %v6548_v3 }
0x2fac   : > { %v9240_v39 = vpop.eup %9239 }
0x2fad   : > { %v6550_v7 = vsel %vm1308_vm3, %v9240_v39, 0.0 }
0x2fb8   : > { %6551 = vadd.xlane.f32.xlu1 %v6550_v7 }
0x3010   : > { %v6711_v8 = vpop.xlane.xlu1 %6710 }
0x3011   : > { %v6712_v9 = vsub.f32 %v6705_v52, %v6711_v8 }
0x3013   : > { %v6713_v11 = vmul.f32 1.442695, %v6712_v9  ;;  %v7238_v9 = vld [vmem:[#allocation14 + $0x20] sm:$0xff] }
0x3014   : > { %v6556_v12 = vpop.permute.xlu1 %6555  ;;  %v6876_v32 = vpop.xlane.xlu0 %6875 }
0x3015   : > { %9241 = vpow2.f32 %v6713_v11  ;;  %v6877_v14 = vsub.f32 %v6870_v57, %v6876_v32  ;;  %8669 = vmatpush3.msra.mxu0 %v6556_v12  ;;  %v7239_v11 = vld [vmem:[#allocation14 + $0x28] sm:$0xff]  ;;  %v7241_v32 = vld [vmem:[#allocation14 + $0x38] sm:$0xff] }
0x3016   : > { %8678 = vmatprep.subr.mxu0 %v9706_v1  ;;  %v8915_v12 = vpack.c.bf16 %v7239_v11, %v7238_v9 }
0x3017   : > { %v6878_v21 = vmul.f32 1.442695, %v6877_v14 }
0x3018   : > { %v7041_v10 = vpop.xlane.xlu0 %7040 }
0x3019   : > { %9243 = vpow2.f32 %v6878_v21  ;;  %v7042_v19 = vsub.f32 %v7035_v60, %v7041_v10  ;;  %v7933_v21 = vld [vmem:[%s11229_s29 + $0x40] sm:$0xff]  ;;  %v7934_v10 = vld [vmem:[%s11229_s29 + $0x48] sm:$0xff] }
0x301b   : > { %v7043_v15 = vmul.f32 1.442695, %v7042_v19  ;;  %v7935_v19 = vld [vmem:[%s11229_s29 + $0x50] sm:$0xff] }
0x301d   : > { %9245 = vpow2.f32 %v7043_v15  ;;  %v8921_v15 = vpack.c.bf16 %v7934_v10, %v7933_v21 }
0x301f   : > { %v9242_v16 = vpop.eup %9241 }
0x3020   : > { %v6715_v17 = vsel %vm1308_vm3, %v9242_v16, 0.0 }
0x3021   : > { %6716 = vadd.xlane.f32.xlu0 %v6715_v17 }
0x3023   : > { %v9244_v6 = vpop.eup %9243 }
0x3024   : > { %v6880_v58 = vsel %vm1308_vm3, %v9244_v6, 0.0 }
0x3025   : > { %6881 = vadd.xlane.f32.xlu1 %v6880_v58  ;;  %v7938_v58 = vld [vmem:[%s11229_s29 + $0x68] sm:$0xff] }
0x3027   : > { %v9246_v45 = vpop.eup %9245 }
0x3028   : > { %v7045_v20 = vsel %vm1308_vm3, %v9246_v45, 0.0 }
0x3029   : > { %7046 = vadd.xlane.f32.xlu0 %v7045_v20 }
0x3036   : > { %6885 = vrot.lane.b32.xlu1 %v10891_v18, %s11220_s16  ;;  %s11232_s16 = sshll.u32 %s10157_s19, 3 }
0x3037   : > { %s1095_s8 = scalar_lea.vmem [#allocation20], %s11232_s16 }
0x303a   : > { %7050 = vrot.lane.b32.xlu1 %v10891_v18, %s11216_s20 }
0x303f   : > { %6720 = vrot.lane.b32.xlu0 %v10891_v18, %s11218_s0  ;;  %s9574_s0 = sshll.u32 %s9722_s9, 4  ;;  %s9575_s0 = int_to_ptr.vmem [resolvable:$false] %s9574_s0 }
0x3040   : > { %s9576_s18 = scalar_lea.vmem %s9575_s0, 256 }
0x3045   : > { %v6552_v23 = vpop.xlane.xlu1 %6551 }
0x3046   : > { %9247 = vrcp.f32 %v6552_v23 }
0x3050   : > { %v9248_v25 = vpop.eup %9247 }
0x3051   : > { %v6554_v26 = vmul.f32 %v9248_v25, %v9240_v39 }
0x3053   : > { %8671 = vmatmul.mubr.msk.f32.vlgmr.msra.gmra.mrb[64].mxu0 %vm1308_vm3, %v6554_v26  ;;  %v6324_v26 = vld [vmem:[#allocation13 + $0x2] sm:$0x3] }
0x3054   : > { %8680 = vmatprep.mubr.msk.f32.mxu0 %vm9705_vm0, %v9706_v1 }
0x30ae   : > { %v6717_v27 = vpop.xlane.xlu0 %6716 }
0x30af   : > { %9249 = vrcp.f32 %v6717_v27  ;;  %v7230_v27 = vrot.slane %v6324_v26, %v10342_v22 }
0x30b2   : > { %v6882_v5 = vpop.xlane.xlu1 %6881 }
0x30b3   : > { %9251 = vrcp.f32 %v6882_v5 }
0x30b6   : > { %v7047_v44 = vpop.xlane.xlu0 %7046  ;;  %v6886_v30 = vpop.permute.xlu1 %6885 }
0x30b7   : > { %9253 = vrcp.f32 %v7047_v44 }
0x30b9   : > { %v9250_v28 = vpop.eup %9249 }
0x30ba   : > { %v6719_v29 = vmul.f32 %v9250_v28, %v9242_v16  ;;  %v6721_v31 = vpop.permute.xlu0 %6720  ;;  %v7051_v34 = vpop.permute.xlu1 %7050  ;;  %v7936_v16 = vld [vmem:[%s11229_s29 + $0x58] sm:$0xff]  ;;  %v7235_v28 = vrot.slane %v6324_v26, %v10346_v24 }
0x30bb   : > { %8679 = vmatpush3.msra.mxu0 %v6721_v31  ;;  %v8924_v17 = vpack.c.bf16 %v7936_v16, %v7935_v19  ;;  %v7939_v31 = vld [vmem:[%s11229_s29 + $0x70] sm:$0xff] }
0x30bc   : > { %8681 = vmatmul.mubr.msk.f32.vlgmr.msra.gmra.mrb[66].mxu0 %vm1308_vm3, %v6719_v29  ;;  %8688 = vmatprep.subr.mxu0 %v9706_v1 }
0x30bd   : > { %v9252_v18 = vpop.eup %9251  ;;  %8689 = vmatpush3.msra.mxu0 %v6886_v30  ;;  %8690 = vmatprep.mubr.msk.f32.mxu0 %vm9705_vm0, %v9706_v1 }
0x30be   : > { %v6884_v33 = vmul.f32 %v9252_v18, %v9244_v6  ;;  %8698 = vmatprep.subr.mxu0 %v9706_v1  ;;  %v7937_v6 = vld [vmem:[%s11229_s29 + $0x60] sm:$0xff]  ;;  %v7940_v18 = vld [vmem:[%s11229_s29 + $0x78] sm:$0xff] }
0x30c0   : > { %8691 = vmatmul.mubr.msk.f32.vlgmr.msra.gmra.mrb[68].mxu0 %vm1308_vm3, %v6884_v33  ;;  %v8930_v33 = vpack.c.bf16 %v7940_v18, %v7939_v31 }
0x30c1   : > { %v9254_v35 = vpop.eup %9253  ;;  %8699 = vmatpush3.msra.mxu0 %v7051_v34  ;;  %8700 = vmatprep.mubr.msk.f32.mxu0 %vm9705_vm0, %v9706_v1  ;;  %v7941_v34 = vld [vmem:[#allocation16 + $0x1] ss:$0 sm:$0xff] }
0x30c2   : > { %v7049_v36 = vmul.f32 %v9254_v35, %v9246_v45  ;;  %8914 = vmatprep.subr.bf16.mxu0 %v9704_v0  ;;  %v8927_v45 = vpack.c.bf16 %v7938_v58, %v7937_v6 }
0x30c4   : > { %8701 = vmatmul.mubr.msk.f32.vlgmr.msra.gmra.mrb[70].mxu0 %vm1308_vm3, %v7049_v36 }
0x30c5   : > { %8722 = vmatprep.mubr.msk.f32.mxu0 %vm9705_vm0, %v9706_v1  ;;  %8916 = vmatpush3.bf16.msra.mxu0 %v8915_v12 }
0x30c6   : > { %8917 = vmatprep.subr.bf16.mxu0 %v9704_v0 }
0x3126   : > { %v6627_v37 = vpop.f32.mrb[64].mxu0 }
0x3127   : > { %v8672_v4 = vpop.f32.mrb[65].mxu0 }
0x318f   : > { %v6792_v13 = vpop.f32.mrb[66].mxu0 }
0x3190   : > { %7127 = vrot.lane.b32.xlu0 %v6792_v13, %s11210_s12  ;;  %v8682_v47 = vpop.f32.mrb[67].mxu0  ;;  %s7532_s12 = sshll.u32 %s1095_s8, 4  ;;  %s11020_s12 = int_to_ptr.vmem [resolvable:$true] %s7532_s12 }
0x3191   : > { %p9577_p0 = scmp.lt.s32.totalorder %s11020_s12, %s9575_s0 }
0x3193   : > { %v6957_v48 = vpop.f32.mrb[68].mxu0 }
0x3194   : > { %7131 = vrot.lane.b32.xlu1 %v6957_v48, %s11211_s4  ;;  %v8692_v49 = vpop.f32.mrb[69].mxu0  ;;  %s9570_s4 = scalar_lea.vmem %s11020_s12, 128 }
0x3195   : > { %p9571_p9 = scmp.ne.s32.totalorder %s11020_s12, %s9570_s4  ;;  %p9578_p2 = scmp.lt.s32.totalorder %s9576_s18, %s9570_s4 }
0x3197   : > { %v7122_v50 = vpop.f32.mrb[70].mxu0  ;;  %p9572_p6 = pnand %p9571_p9, %p11233_p4  ;;  %p9579_p8 = por %p9578_p2, %p9577_p0 }
0x3198   : > { %7135 = vrot.lane.b32.xlu0 %v7122_v50, %s11212_s17  ;;  %v8702_v51 = vpop.f32.mrb[71].mxu0  ;;  %v7440_v50 = vld [vmem:[%s11230_s5] sm:$0xff]  ;;  %s11231_s17 = sld [smem:[#allocation56_spill]] }
0x3199   : > { %v7441_v51 = vld [vmem:[%s11230_s5 + $0x8] sm:$0xff]  ;;  %p9573_p13 = pneg %p9572_p6 }
0x319b   : > { %p9580_p10 = pnand %p9579_p8, %p9573_p13 }
0x319e   : > { %s11023_s23 = scalar_lea.hbm %s11231_s17, %s7947_s14 }
0x3202   : > { %v7128_v52 = vpop.permute.xlu0 %7127 }
0x3203   : > { %v7138_v56 = vsel %vm1308_vm3, %v6627_v37, %v7128_v52  ;;  %v8933_v52 = vpack.c.bf16 %v7441_v51, %v7440_v50 }
0x3206   : > { %v7132_v53 = vpop.permute.xlu1 %7131 }
0x3207   : > { %v7139_v57 = vsel %vm1978_vm4, %v7138_v56, %v7132_v53  ;;  %v7442_v53 = vld [vmem:[%s11230_s5 + $0x10] sm:$0xff]  ;;  %v7443_v56 = vld [vmem:[%s11230_s5 + $0x18] sm:$0xff] }
0x320a   : > { %v7136_v55 = vpop.permute.xlu0 %7135 }
0x320b   : > { %v7140_v59 = vsel %vm1980_vm5, %v7139_v57, %v7136_v55  ;;  %v8936_v57 = vpack.c.bf16 %v7443_v56, %v7442_v53 }
0x320c   : > { %8712 = vmatmul.mubr.msk.f32.vlgmr.msra.gmra.mrb[66].mxu1 %vm1198_vm2, %v7140_v59 }
0x320d   : > { %8741 = vmatprep.mubr.msk.f32.mxu1 %vm9705_vm0, %v9706_v1  ;;  %8922 = vmatpush3.bf16.msra.mxu1 %v8921_v15 }
0x320e   : > { %8923 = vmatprep.subr.bf16.mxu1 %v9704_v0 }
0x3211   : > { %8925 = vmatpush3.bf16.msra.mxu1 %v8924_v17 }
0x3212   : > { %8926 = vmatprep.subr.bf16.mxu1 %v9704_v0 }
0x3215   : > { %8928 = vmatpush3.bf16.msra.mxu1 %v8927_v45 }
0x3216   : > { %8929 = vmatprep.subr.bf16.mxu1 %v9704_v0 }
0x3219   : > { %8931 = vmatpush3.bf16.msra.mxu1 %v8930_v33 }
0x32df   : > { %v7210_v60 = vpop.f32.mrb[66].mxu1 }
0x32e0   : > { %v7211_v61 = vadd.f32 %v7210_v60, %v10910_v41  ;;  %v8713_v62 = vpop.f32.mrb[67].mxu1  ;;  %v7240_v41 = vld [vmem:[#allocation14 + $0x30] sm:$0xff] }
0x32e1   : > { %v8918_v14 = vpack.c.bf16 %v7241_v32, %v7240_v41 }
0x32e2   : > { %v7214_v63 = vsel %vm1198_vm2, %v7211_v61, 0.0 }
0x32e3   : > { %7215 = vadd.xlane.f32.xlu1 %v7214_v63  ;;  %8919 = vmatpush3.bf16.msra.mxu0 %v8918_v14 }
0x32e4   : > { %8932 = vmatprep.subr.bf16.mxu0 %v9704_v0 }
0x3370   : > { %v7216_v2 = vpop.xlane.xlu1 %7215 }
0x3371   : > { %v7217_v3 = vmul.f32 0.03125, %v7216_v2 }
0x3373   : > { %v7218_v39 = vsub.f32 %v7211_v61, %v7217_v3  ;;  %v7256_v61 = vld [vmem:[#allocation19 + $0x2] sm:$0x3] }
0x3374   : > { %v7433_v62 = vrot.slane %v7256_v61, %v10342_v22 }
0x3375   : > { %v7219_v7 = vmul.f32 %v7218_v39, %v7218_v39 }
0x3377   : > { %v7220_v8 = vsel %vm1198_vm2, %v7219_v7, 0.0 }
0x3378   : > { %7221 = vadd.xlane.f32.xlu0 %v7220_v8 }
0x3405   : > { %v7222_v20 = vpop.xlane.xlu0 %7221 }
0x3406   : > { %v7223_v23 = vmul.f32 0.03125, %v7222_v20 }
0x3408   : > { %v7224_v25 = vadd.f32 1e-06, %v7223_v23 }
0x340a   : > { %9255 = vrsqrt.f32 %v7224_v25 }
0x3414   : > { %v9256_v5 = vpop.eup %9255 }
0x3415   : > { %v7226_v44 = vmul.f32 %v9256_v5, %v7218_v39 }
0x3417   : > { %v7231_v29 = vmul.f32 %v7230_v27, %v7226_v44 }
0x3419   : > { %v7236_v30 = vadd.f32 %v7235_v28, %v7231_v29 }
0x341b   : > { %8723 = vmatmul.mubr.msk.f32.vlgmr.msra.gmra.mrb[72].mxu0 %vm1198_vm2, %v7236_v30 }
0x341c   : > { %8752 = vmatprep.mubr.msk.f32.mxu0 %vm9705_vm0, %v9706_v1  ;;  %8934 = vmatpush3.bf16.msra.mxu0 %v8933_v52 }
0x341d   : > { %8935 = vmatprep.subr.bf16.mxu0 %v9704_v0  ;;  %v7438_v0 = vrot.slane %v7256_v61, %v10346_v24 }
0x3420   : > { %8937 = vmatpush3.bf16.msra.mxu0 %v8936_v57 }
0x34ee   : > { %v7332_v35 = vpop.f32.mrb[72].mxu0 }
0x34ef   : > { %v7333_v36 = vadd.f32 %v7941_v34, %v7332_v35  ;;  %v8724_v37 = vpop.f32.mrb[73].mxu0 }
0x34f1   : > { %v7336_v4 = vmax.f32 %v7333_v36, 0.0 }
0x34f3   : > { %8742 = vmatmul.mubr.msk.f32.vlgmr.msra.gmra.mrb[68].mxu1 %vm1122_vm1, %v7336_v4 }
0x35c6   : > { %v7412_v40 = vpop.f32.mrb[68].mxu1 }
0x35c7   : > { %v7413_v54 = vadd.f32 %v7943_v38, %v7412_v40  ;;  %v8743_v42 = vpop.f32.mrb[69].mxu1 }
0x35c9   : > { %v7416_v1 = vadd.f32 %v7413_v54, %v7236_v30 }
0x35cb   : > { %v7417_v43 = vsel %vm1198_vm2, %v7416_v1, 0.0 }
0x35cc   : > { %7418 = vadd.xlane.f32.xlu0 %v7417_v43 }
0x3659   : > { %v7419_v46 = vpop.xlane.xlu0 %7418 }
0x365a   : > { %v7420_v13 = vmul.f32 0.03125, %v7419_v46 }
0x365c   : > { %v7421_v47 = vsub.f32 %v7416_v1, %v7420_v13 }
0x365e   : > { %v7422_v48 = vmul.f32 %v7421_v47, %v7421_v47 }
0x3660   : > { %v7423_v49 = vsel %vm1198_vm2, %v7422_v48, 0.0 }
0x3661   : > { %7424 = vadd.xlane.f32.xlu1 %v7423_v49 }
0x36ee   : > { %v7425_v55 = vpop.xlane.xlu1 %7424 }
0x36ef   : > { %v7426_v59 = vmul.f32 0.03125, %v7425_v55 }
0x36f1   : > { %v7427_v60 = vadd.f32 1e-06, %v7426_v59 }
0x36f3   : > { %9257 = vrsqrt.f32 %v7427_v60 }
0x36fd   : > { %v9258_v63 = vpop.eup %9257 }
0x36fe   : > { %v7429_v2 = vmul.f32 %v9258_v63, %v7421_v47 }
0x3700   : > { %v7434_v3 = vmul.f32 %v7433_v62, %v7429_v2 }
0x3702   : > { %v7439_v39 = vadd.f32 %v7438_v0, %v7434_v3 }
0x3704   : > { %8753 = vmatmul.mubr.msk.f32.vlgmr.msra.gmra.mrb[74].mxu0 %vm1198_vm2, %v7439_v39 }
0x37d7   : > { %v7513_v22 = vpop.f32.mrb[74].mxu0 }
0x37d8   : > { %7517 = vst [vmem:[%s1095_s8] sm:$0xff] %v7513_v22  ;;  %v8754_v7 = vpop.f32.mrb[75].mxu0 }
0x37d9   : > { %9583 = shalt.err (!%p9580_p10)
}
0x37da   : > { %s9584_s19 = scalar_lea.hbm %s11023_s23, 128  ;;  %s9588_s21 = scalar_lea.hbm %s11231_s17, 256 }
0x37db   : > { %p9585_p11 = scmp.ne.s32.totalorder %s11023_s23, %s9584_s19  ;;  %p9589_p5 = scmp.lt.u32.totalorder %s11023_s23, %s11231_s17 }
0x37dc   : > { %p9590_p7 = scmp.lt.u32.totalorder %s9588_s21, %s9584_s19  ;;  %p9592_p9 = scmp.lt.u32.totalorder %s9584_s19, %s11023_s23 }
0x37dd   : > { %p9586_p3 = pnand %p9585_p11, %p11233_p4 }
0x37de   : > { %p9591_p1 = por %p9590_p7, %p9589_p5 }
0x37df   : > { %p9587_p12 = pneg %p9586_p3 }
0x37e0   : > { %p9593_p6 = por %p9592_p9, %p9591_p1 }
0x37e2   : > { %p9594_p13 = pnand %p9593_p6, %p9587_p12 }
0x37e4   : > { %9597 = shalt.err (!%p9594_p13)
}
0x37e5   : > { %8980 = dma.vmem_to_hbm [thread:$0]  (%p11233_p4), %s11020_s12, 128, %s11023_s23, %s7519_s1  }
0x37e6 PF: > { %s7544_s20 = sand.u32 1, %s9644_s7   ;;  %p11234_p0 = scmp.ne.s32.totalorder %s11187_s6, 0 }
0x37e7   : > { %p11235_p2 = scmp.ge.s32.totalorder %s9656_s15, 2  ;;  %s7545_s22 = scalar_lea.sflag [#allocation4], %s7544_s20 }
0x37e9   : > { %p9018_p8 = pnand %p11235_p2, %p11234_p0 }
0x37eb   : > { %9639 = dma.done.wait (!%p9018_p8), %s7545_s22, 128  }
0x37ec   : > { %9641 = vsyncadd (!%p9018_p8), %s7545_s22, 4294967168  ;;  %p77_p10 = scmp.ge.s32.totalorder %s10087_s28, 4   ;;  %s11236_s7 = smov %s9648_s10 }
0x37ed   : > { %s11237_s10 = smov %s9652_s11  ;;  %s11238_s11 = smov %s10098_s2 }
0x37ee   : > { %s11239_s15 = smov %s10087_s28  ;;  %79 = sbr.rel (!%p77_p10) target bundleno = 74 (0x4a), region = 279 }
0x37f5   :  { %7550 = vsyncpa [#allocation3], 1 }
0x37f6   :  { %7552 = vsyncpa [#allocation3 + $0x1], 1 }
0x37f7   :  { %7553 = vsyncpa [#allocation6], 1 }
0x37f8   :  { %7554 = vsyncpa [#allocation9], 1 }
0x37f9   :  { %7555 = vsyncpa [#allocation12], 1 }
0x37fa   :  { %7556 = vsyncpa [#allocation15], 1 }
0x37fb   :  { %7557 = vsyncpa [#allocation18], 1 }
0x37fc   :  { %7558 = vsyncpa [#allocation4], 1 }
0x37fd   :  { %7560 = vsyncpa [#allocation4 + $0x1], 1 }

</bundles_post_ra>
